<compile_context>
chip_gen: v7x
topology: tpu7x:2x2x1
jax: 0.10.0
libtpu: 0.0.40
codegen_flags: <defaults>
</compile_context>

<pallas_src>
import math

import jax
import jax.numpy as jnp
import numpy as np
from jax.experimental import pallas as pl


# (kind, Cin, Cout, K) for the 9 conv layers of en_cov, in execution order.
_ARCH = [
    ("down", 1, 4, 6),
    ("res", 4, 4, 3),
    ("res", 4, 4, 3),
    ("down", 4, 8, 6),
    ("res", 8, 8, 3),
    ("res", 8, 8, 3),
    ("down", 8, 12, 6),
    ("res", 12, 12, 3),
    ("res", 12, 12, 3),
]


def _row_offsets():
    offs, r = [], 0
    for _, _, cout, _ in _ARCH:
        offs.append(r)
        r += cout
    return offs, r


# ----------------------------- fused kernel --------------------------------

def _make_kernel(N, L1, L2, L3):
    """Fused en_cov body for static batch N and per-stage lengths L1..L3."""
    B1, B2, B3 = L1 + 2, L2 + 2, L3 + 2          # per-sample padded block widths
    offs, _ = _row_offsets()
    HI = jax.lax.Precision.HIGHEST

    def kernel(xph_ref, wpk_ref, o_ref):
        f32 = jnp.float32

        def silu(v):
            return v * jax.nn.sigmoid(v)

        def get_wb(idx):
            # Static slice of the packed slab: rows = output channels,
            # cols 0..K*Cin-1 = weight (k-major, cin-minor), col K*Cin = bias.
            _, cin, cout, k = _ARCH[idx]
            kc = k * cin
            blk = wpk_ref[offs[idx]:offs[idx] + cout, 0:kc + 1]
            return blk[:, 0:kc], blk[:, kc:kc + 1]

        def nvec_of(p, blk):
            # sample index per lane (p // blk) without vector div: N is tiny.
            n = jnp.zeros_like(p)
            for m in range(1, N):
                n = n + jnp.where(p >= m * blk, 1, 0)
            return n

        def data_mask(B, ldat):
            # (1, N*B) mask: 1 on data lanes, 0 on the per-sample halo lanes.
            p = jax.lax.broadcasted_iota(jnp.int32, (1, N * B), 1)
            r = p - nvec_of(p, B) * B
            return jnp.where((r >= 1) & (r <= ldat), 1.0, 0.0)

        def phase_selector(b_in, g, phase):
            # 0/1 matrix D (N*b_in, N*g): D[q, n*g + j] = 1 iff
            # q == n*b_in + 1 + 2*j + phase  (stride-2 lane de-interleave).
            q = jax.lax.broadcasted_iota(jnp.int32, (N * b_in, N * g), 0)
            p = jax.lax.broadcasted_iota(jnp.int32, (N * b_in, N * g), 1)
            n = nvec_of(p, g)
            t = n * b_in + 1 + 2 * (p - n * g) + phase
            return jnp.where(q == t, 1.0, 0.0)

        def phases(a, b_in, g):
            # Extract even/odd stride-2 phases of a padded activation slab.
            de = phase_selector(b_in, g, 0)
            do = phase_selector(b_in, g, 1)
            e = jnp.dot(a, de, preferred_element_type=f32, precision=HI)
            o = jnp.dot(a, do, preferred_element_type=f32, precision=HI)
            return e, o

        def shift_mask(y, mask):
            # Align conv output to the padded-block layout (data at offset 1)
            # and zero the halo / junk lanes.
            z = jnp.zeros((y.shape[0], 1), f32)
            return mask * jnp.concatenate([z, y, z], axis=1)

        def down_conv(e, o, idx, mask):
            # Conv1d(K=6, stride=2) + bias + SiLU as one im2col dot.
            w_mat, b = get_wb(idx)
            w = e.shape[1] - 2
            cols = []
            for a in range(3):                      # taps k = 2a (even) / 2a+1 (odd)
                cols.append(e[:, a:a + w])
                cols.append(o[:, a:a + w])
            im2col = jnp.concatenate(cols, axis=0)  # (6*Cin, N*G - 2)
            y = silu(jnp.dot(w_mat, im2col, preferred_element_type=f32,
                             precision=HI) + b)
            return shift_mask(y, mask)

        def res_block(a, idx, mask):
            # x + SiLU(Conv1d(K=3, stride=1, pad=1)(x)); halo lanes are the pad.
            w_mat, b = get_wb(idx)
            w = a.shape[1] - 2
            im2col = jnp.concatenate([a[:, t:t + w] for t in range(3)], axis=0)
            y = silu(jnp.dot(w_mat, im2col, preferred_element_type=f32,
                             precision=HI) + b)
            return a + shift_mask(y, mask)

        m1, m2, m3 = data_mask(B1, L1), data_mask(B2, L2), data_mask(B3, L3)

        # ---- stage 1: Conv(1->4, K=6, s=2) + SiLU, then 2 res blocks
        e, o = xph_ref[0:1, :], xph_ref[1:2, :]      # host-prepared phases of x
        a = down_conv(e, o, 0, m1)                   # (4, N*B1)
        a = res_block(a, 1, m1)
        a = res_block(a, 2, m1)

        # ---- stage 2: Conv(4->8, K=6, s=2) + SiLU, then 2 res blocks
        e, o = phases(a, B1, B2)
        a = down_conv(e, o, 3, m2)                   # (8, N*B2)
        a = res_block(a, 4, m2)
        a = res_block(a, 5, m2)

        # ---- stage 3: Conv(8->12, K=6, s=2) + SiLU, then 2 res blocks
        e, o = phases(a, B2, B3)
        a = down_conv(e, o, 6, m3)                   # (12, N*B3)
        a = res_block(a, 7, m3)
        a = res_block(a, 8, m3)

        o_ref[...] = a                               # single store, whole batch

    return kernel


# ------------------------------- wrapper ------------------------------------

def en_cov_forward(wpack, x_ncl):
    """en_cov forward: (N, 1, L) -> (N, 12, L3), torch NCL layout."""
    N, cin, L = x_ncl.shape
    assert cin == 1 and L % 2 == 0
    L1 = (L - 6) // 2 + 1
    L2 = (L1 - 6) // 2 + 1
    L3 = (L2 - 6) // 2 + 1
    assert L1 >= 6 and L2 >= 6 and L3 >= 1
    B1, B3 = L1 + 2, L3 + 2
    cout_final = _ARCH[-1][2]

    # De-interleave stride-2 phases and fold batch onto lanes (plumbing only).
    x2 = jnp.reshape(x_ncl, (N, L))
    xe = x2[:, 0::2][:, :B1].reshape(N * B1)
    xo = x2[:, 1::2][:, :B1].reshape(N * B1)
    xph = jnp.stack([xe, xo], axis=0)                # (2, N*B1), dense DMA

    out_slab = pl.pallas_call(
        _make_kernel(N, L1, L2, L3),
        out_shape=jax.ShapeDtypeStruct((cout_final, N * B3), jnp.float32),
    )(xph, wpack)

    # Strip per-sample halo lanes -> (N, 12, L3) torch NCL.
    return jnp.stack(
        [out_slab[:, n * B3 + 1: n * B3 + 1 + L3] for n in range(N)], axis=0)


# ----------------------------- parameters -----------------------------------

def init_params(key):
    """PyTorch-style Conv1d params: list of (w (Cout,Cin,K), b (Cout,))."""
    params = []
    for _, cin, cout, k in _ARCH:
        key, kw, kb = jax.random.split(key, 3)
        bound = 1.0 / math.sqrt(cin * k)
        w = jax.random.uniform(kw, (cout, cin, k), jnp.float32, -bound, bound)
        b = jax.random.uniform(kb, (cout,), jnp.float32, -bound, bound)
        params.append((w, b))
    return params


def pack_params(params):
    """Pack all 18 weight/bias arrays into one (72, 49) f32 slab (one DMA)."""
    width = max(k * cin for _, cin, _, k in _ARCH) + 1       # 49
    rows = []
    for (_, cin, cout, k), (w, b) in zip(_ARCH, params):
        wm = np.transpose(np.asarray(w), (0, 2, 1)).reshape(cout, k * cin)
        blk = np.zeros((cout, width), np.float32)
        blk[:, :k * cin] = wm                                 # k-major, cin-minor
        blk[:, k * cin] = np.asarray(b)                       # bias column
        rows.append(blk)
    return jnp.asarray(np.concatenate(rows, axis=0))          # (72, 49)


# ------------------------- pure-JAX reference --------------------------------

def ref_forward(params, x_ncl):
    y = x_ncl
    for (kind, _, _, _), (w, b) in zip(_ARCH, params):
        stride, pad = (2, 0) if kind == "down" else (1, 1)
        c = jax.lax.conv_general_dilated(
            y, w, (stride,), [(pad, pad)],
            dimension_numbers=("NCH", "OIH", "NCH"),
            precision=jax.lax.Precision.HIGHEST) + b.reshape(1, -1, 1)
        act = c * jax.nn.sigmoid(c)
        y = act if kind == "down" else y + act
    return y


if __name__ == "__main__":
    key = jax.random.PRNGKey(0)
    kp, kx = jax.random.split(key)
    params = init_params(kp)
    wpack = pack_params(params)

    # torch-style input: (N, C=1, L)
    x = jax.random.normal(kx, (2, 1, 128), jnp.float32)

    fwd = jax.jit(en_cov_forward)
    out = jax.block_until_ready(fwd(wpack, x))
    assert out.shape == (2, 12, 12), out.shape

    ref = jax.block_until_ready(ref_forward(params, x))
    np.testing.assert_allclose(np.asarray(out), np.asarray(ref),
                               rtol=1e-5, atol=1e-5)
    print("KERNEL_OK")
</pallas_src>

<mosaic_0001>
module attributes {stable_mosaic.version = 11 : i64} {
  func.func @kernel(%arg0: memref<2x128xf32, #tpu.memory_space<vmem>>, %arg1: memref<72x49xf32, #tpu.memory_space<vmem>>, %arg2: memref<12x28xf32, #tpu.memory_space<vmem>>) attributes {dimension_semantics = [], scalar_prefetch = 0 : i64, scratch_operands = 0 : i64, tpu.core_type = #tpu.core_type<tc>} {
    %0 = tpu.iota {dimensions = array<i32: 1>} : vector<1x128xi32>
    %c0_i32 = arith.constant 0 : i32
    %1 = vector.broadcast %c0_i32 : i32 to vector<1x128xi32>
    %c64_i32 = arith.constant 64 : i32
    %2 = vector.broadcast %c64_i32 : i32 to vector<1x128xi32>
    %3 = arith.cmpi sge, %0, %2 : vector<1x128xi32>
    %c1_i32 = arith.constant 1 : i32
    %c0_i32_0 = arith.constant 0 : i32
    %4 = vector.broadcast %c1_i32 : i32 to vector<1x128xi32>
    %5 = vector.broadcast %c0_i32_0 : i32 to vector<1x128xi32>
    %6 = arith.select %3, %4, %5 : vector<1x128xi1>, vector<1x128xi32>
    %7 = arith.addi %1, %6 : vector<1x128xi32>
    %c64_i32_1 = arith.constant 64 : i32
    %8 = vector.broadcast %c64_i32_1 : i32 to vector<1x128xi32>
    %9 = arith.muli %7, %8 : vector<1x128xi32>
    %10 = arith.subi %0, %9 : vector<1x128xi32>
    %c1_i32_2 = arith.constant 1 : i32
    %11 = vector.broadcast %c1_i32_2 : i32 to vector<1x128xi32>
    %12 = arith.cmpi sge, %10, %11 : vector<1x128xi32>
    %c62_i32 = arith.constant 62 : i32
    %13 = vector.broadcast %c62_i32 : i32 to vector<1x128xi32>
    %14 = arith.cmpi sle, %10, %13 : vector<1x128xi32>
    %15 = arith.andi %12, %14 : vector<1x128xi1>
    %cst = arith.constant 1.000000e+00 : f32
    %cst_3 = arith.constant 0.000000e+00 : f32
    %16 = vector.broadcast %cst : f32 to vector<1x128xf32>
    %17 = vector.broadcast %cst_3 : f32 to vector<1x128xf32>
    %18 = arith.select %15, %16, %17 : vector<1x128xi1>, vector<1x128xf32>
    %19 = tpu.iota {dimensions = array<i32: 1>} : vector<1x62xi32>
    %c0_i32_4 = arith.constant 0 : i32
    %20 = vector.broadcast %c0_i32_4 : i32 to vector<1x62xi32>
    %c31_i32 = arith.constant 31 : i32
    %21 = vector.broadcast %c31_i32 : i32 to vector<1x62xi32>
    %22 = arith.cmpi sge, %19, %21 : vector<1x62xi32>
    %c1_i32_5 = arith.constant 1 : i32
    %c0_i32_6 = arith.constant 0 : i32
    %23 = vector.broadcast %c1_i32_5 : i32 to vector<1x62xi32>
    %24 = vector.broadcast %c0_i32_6 : i32 to vector<1x62xi32>
    %25 = arith.select %22, %23, %24 : vector<1x62xi1>, vector<1x62xi32>
    %26 = arith.addi %20, %25 : vector<1x62xi32>
    %c31_i32_7 = arith.constant 31 : i32
    %27 = vector.broadcast %c31_i32_7 : i32 to vector<1x62xi32>
    %28 = arith.muli %26, %27 : vector<1x62xi32>
    %29 = arith.subi %19, %28 : vector<1x62xi32>
    %c1_i32_8 = arith.constant 1 : i32
    %30 = vector.broadcast %c1_i32_8 : i32 to vector<1x62xi32>
    %31 = arith.cmpi sge, %29, %30 : vector<1x62xi32>
    %c29_i32 = arith.constant 29 : i32
    %32 = vector.broadcast %c29_i32 : i32 to vector<1x62xi32>
    %33 = arith.cmpi sle, %29, %32 : vector<1x62xi32>
    %34 = arith.andi %31, %33 : vector<1x62xi1>
    %cst_9 = arith.constant 1.000000e+00 : f32
    %cst_10 = arith.constant 0.000000e+00 : f32
    %35 = vector.broadcast %cst_9 : f32 to vector<1x62xf32>
    %36 = vector.broadcast %cst_10 : f32 to vector<1x62xf32>
    %37 = arith.select %34, %35, %36 : vector<1x62xi1>, vector<1x62xf32>
    %38 = tpu.iota {dimensions = array<i32: 1>} : vector<1x28xi32>
    %c0_i32_11 = arith.constant 0 : i32
    %39 = vector.broadcast %c0_i32_11 : i32 to vector<1x28xi32>
    %c14_i32 = arith.constant 14 : i32
    %40 = vector.broadcast %c14_i32 : i32 to vector<1x28xi32>
    %41 = arith.cmpi sge, %38, %40 : vector<1x28xi32>
    %c1_i32_12 = arith.constant 1 : i32
    %c0_i32_13 = arith.constant 0 : i32
    %42 = vector.broadcast %c1_i32_12 : i32 to vector<1x28xi32>
    %43 = vector.broadcast %c0_i32_13 : i32 to vector<1x28xi32>
    %44 = arith.select %41, %42, %43 : vector<1x28xi1>, vector<1x28xi32>
    %45 = arith.addi %39, %44 : vector<1x28xi32>
    %c14_i32_14 = arith.constant 14 : i32
    %46 = vector.broadcast %c14_i32_14 : i32 to vector<1x28xi32>
    %47 = arith.muli %45, %46 : vector<1x28xi32>
    %48 = arith.subi %38, %47 : vector<1x28xi32>
    %c1_i32_15 = arith.constant 1 : i32
    %49 = vector.broadcast %c1_i32_15 : i32 to vector<1x28xi32>
    %50 = arith.cmpi sge, %48, %49 : vector<1x28xi32>
    %c12_i32 = arith.constant 12 : i32
    %51 = vector.broadcast %c12_i32 : i32 to vector<1x28xi32>
    %52 = arith.cmpi sle, %48, %51 : vector<1x28xi32>
    %53 = arith.andi %50, %52 : vector<1x28xi1>
    %cst_16 = arith.constant 1.000000e+00 : f32
    %cst_17 = arith.constant 0.000000e+00 : f32
    %54 = vector.broadcast %cst_16 : f32 to vector<1x28xf32>
    %55 = vector.broadcast %cst_17 : f32 to vector<1x28xf32>
    %56 = arith.select %53, %54, %55 : vector<1x28xi1>, vector<1x28xf32>
    %c0 = arith.constant 0 : index
    %c0_18 = arith.constant 0 : index
    %57 = vector.load %arg0[%c0, %c0_18] : memref<2x128xf32, #tpu.memory_space<vmem>>, vector<1x128xf32>
    %c1 = arith.constant 1 : index
    %c0_19 = arith.constant 0 : index
    %58 = vector.load %arg0[%c1, %c0_19] : memref<2x128xf32, #tpu.memory_space<vmem>>, vector<1x128xf32>
    %c0_20 = arith.constant 0 : index
    %c0_21 = arith.constant 0 : index
    %59 = vector.load %arg1[%c0_20, %c0_21] : memref<72x49xf32, #tpu.memory_space<vmem>>, vector<4x7xf32>
    %60 = vector.extract_strided_slice %59 {offsets = [0, 0], sizes = [4, 6], strides = [1, 1]} : vector<4x7xf32> to vector<4x6xf32>
    %61 = vector.extract_strided_slice %59 {offsets = [0, 6], sizes = [4, 1], strides = [1, 1]} : vector<4x7xf32> to vector<4x1xf32>
    %62 = vector.extract_strided_slice %57 {offsets = [0, 0], sizes = [1, 126], strides = [1, 1]} : vector<1x128xf32> to vector<1x126xf32>
    %63 = vector.extract_strided_slice %58 {offsets = [0, 0], sizes = [1, 126], strides = [1, 1]} : vector<1x128xf32> to vector<1x126xf32>
    %64 = vector.extract_strided_slice %57 {offsets = [0, 1], sizes = [1, 126], strides = [1, 1]} : vector<1x128xf32> to vector<1x126xf32>
    %65 = vector.extract_strided_slice %58 {offsets = [0, 1], sizes = [1, 126], strides = [1, 1]} : vector<1x128xf32> to vector<1x126xf32>
    %66 = vector.extract_strided_slice %57 {offsets = [0, 2], sizes = [1, 126], strides = [1, 1]} : vector<1x128xf32> to vector<1x126xf32>
    %67 = vector.extract_strided_slice %58 {offsets = [0, 2], sizes = [1, 126], strides = [1, 1]} : vector<1x128xf32> to vector<1x126xf32>
    %68 = tpu.concatenate %62, %63, %64, %65, %66, %67 in 0 : vector<1x126xf32>, vector<1x126xf32>, vector<1x126xf32>, vector<1x126xf32>, vector<1x126xf32>, vector<1x126xf32> -> vector<6x126xf32>
    %cst_22 = arith.constant dense<0.000000e+00> : vector<4x126xf32>
    %69 = tpu.matmul %60, %68, %cst_22 {dimension_numbers = #tpu.dot_dimension_numbers<[1], [0], [0], [1], [0, 0, 1, 1], [], []>, precision = #tpu.contract_precision<fp32>} : vector<4x6xf32>, vector<6x126xf32>, vector<4x126xf32> -> vector<4x126xf32>
    %70 = vector.broadcast %61 : vector<4x1xf32> to vector<4x126xf32>
    %71 = arith.addf %69, %70 : vector<4x126xf32>
    %72 = arith.negf %71 : vector<4x126xf32>
    %73 = math.exp %72 : vector<4x126xf32>
    %cst_23 = arith.constant 1.000000e+00 : f32
    %74 = vector.broadcast %cst_23 : f32 to vector<4x126xf32>
    %75 = arith.addf %74, %73 : vector<4x126xf32>
    %76 = arith.divf %74, %75 : vector<4x126xf32>
    %77 = arith.mulf %71, %76 : vector<4x126xf32>
    %cst_24 = arith.constant 0.000000e+00 : f32
    %78 = vector.broadcast %cst_24 : f32 to vector<4x1xf32>
    %79 = tpu.concatenate %78, %77, %78 in 1 : vector<4x1xf32>, vector<4x126xf32>, vector<4x1xf32> -> vector<4x128xf32>
    %80 = vector.broadcast %18 : vector<1x128xf32> to vector<4x128xf32>
    %81 = arith.mulf %80, %79 : vector<4x128xf32>
    %c4 = arith.constant 4 : index
    %c0_25 = arith.constant 0 : index
    %82 = vector.load %arg1[%c4, %c0_25] : memref<72x49xf32, #tpu.memory_space<vmem>>, vector<4x13xf32>
    %83 = vector.extract_strided_slice %82 {offsets = [0, 0], sizes = [4, 12], strides = [1, 1]} : vector<4x13xf32> to vector<4x12xf32>
    %84 = vector.extract_strided_slice %82 {offsets = [0, 12], sizes = [4, 1], strides = [1, 1]} : vector<4x13xf32> to vector<4x1xf32>
    %85 = vector.extract_strided_slice %81 {offsets = [0, 0], sizes = [4, 126], strides = [1, 1]} : vector<4x128xf32> to vector<4x126xf32>
    %86 = vector.extract_strided_slice %81 {offsets = [0, 1], sizes = [4, 126], strides = [1, 1]} : vector<4x128xf32> to vector<4x126xf32>
    %87 = vector.extract_strided_slice %81 {offsets = [0, 2], sizes = [4, 126], strides = [1, 1]} : vector<4x128xf32> to vector<4x126xf32>
    %88 = tpu.concatenate %85, %86, %87 in 0 : vector<4x126xf32>, vector<4x126xf32>, vector<4x126xf32> -> vector<12x126xf32>
    %cst_26 = arith.constant dense<0.000000e+00> : vector<4x126xf32>
    %89 = tpu.matmul %83, %88, %cst_26 {dimension_numbers = #tpu.dot_dimension_numbers<[1], [0], [0], [1], [0, 0, 1, 1], [], []>, precision = #tpu.contract_precision<fp32>} : vector<4x12xf32>, vector<12x126xf32>, vector<4x126xf32> -> vector<4x126xf32>
    %90 = vector.broadcast %84 : vector<4x1xf32> to vector<4x126xf32>
    %91 = arith.addf %89, %90 : vector<4x126xf32>
    %92 = arith.negf %91 : vector<4x126xf32>
    %93 = math.exp %92 : vector<4x126xf32>
    %cst_27 = arith.constant 1.000000e+00 : f32
    %94 = vector.broadcast %cst_27 : f32 to vector<4x126xf32>
    %95 = arith.addf %94, %93 : vector<4x126xf32>
    %96 = arith.divf %94, %95 : vector<4x126xf32>
    %97 = arith.mulf %91, %96 : vector<4x126xf32>
    %cst_28 = arith.constant 0.000000e+00 : f32
    %98 = vector.broadcast %cst_28 : f32 to vector<4x1xf32>
    %99 = tpu.concatenate %98, %97, %98 in 1 : vector<4x1xf32>, vector<4x126xf32>, vector<4x1xf32> -> vector<4x128xf32>
    %100 = vector.broadcast %18 : vector<1x128xf32> to vector<4x128xf32>
    %101 = arith.mulf %100, %99 : vector<4x128xf32>
    %102 = arith.addf %81, %101 : vector<4x128xf32>
    %c8 = arith.constant 8 : index
    %c0_29 = arith.constant 0 : index
    %103 = vector.load %arg1[%c8, %c0_29] : memref<72x49xf32, #tpu.memory_space<vmem>>, vector<4x13xf32>
    %104 = vector.extract_strided_slice %103 {offsets = [0, 0], sizes = [4, 12], strides = [1, 1]} : vector<4x13xf32> to vector<4x12xf32>
    %105 = vector.extract_strided_slice %103 {offsets = [0, 12], sizes = [4, 1], strides = [1, 1]} : vector<4x13xf32> to vector<4x1xf32>
    %106 = vector.extract_strided_slice %102 {offsets = [0, 0], sizes = [4, 126], strides = [1, 1]} : vector<4x128xf32> to vector<4x126xf32>
    %107 = vector.extract_strided_slice %102 {offsets = [0, 1], sizes = [4, 126], strides = [1, 1]} : vector<4x128xf32> to vector<4x126xf32>
    %108 = vector.extract_strided_slice %102 {offsets = [0, 2], sizes = [4, 126], strides = [1, 1]} : vector<4x128xf32> to vector<4x126xf32>
    %109 = tpu.concatenate %106, %107, %108 in 0 : vector<4x126xf32>, vector<4x126xf32>, vector<4x126xf32> -> vector<12x126xf32>
    %cst_30 = arith.constant dense<0.000000e+00> : vector<4x126xf32>
    %110 = tpu.matmul %104, %109, %cst_30 {dimension_numbers = #tpu.dot_dimension_numbers<[1], [0], [0], [1], [0, 0, 1, 1], [], []>, precision = #tpu.contract_precision<fp32>} : vector<4x12xf32>, vector<12x126xf32>, vector<4x126xf32> -> vector<4x126xf32>
    %111 = vector.broadcast %105 : vector<4x1xf32> to vector<4x126xf32>
    %112 = arith.addf %110, %111 : vector<4x126xf32>
    %113 = arith.negf %112 : vector<4x126xf32>
    %114 = math.exp %113 : vector<4x126xf32>
    %cst_31 = arith.constant 1.000000e+00 : f32
    %115 = vector.broadcast %cst_31 : f32 to vector<4x126xf32>
    %116 = arith.addf %115, %114 : vector<4x126xf32>
    %117 = arith.divf %115, %116 : vector<4x126xf32>
    %118 = arith.mulf %112, %117 : vector<4x126xf32>
    %cst_32 = arith.constant 0.000000e+00 : f32
    %119 = vector.broadcast %cst_32 : f32 to vector<4x1xf32>
    %120 = tpu.concatenate %119, %118, %119 in 1 : vector<4x1xf32>, vector<4x126xf32>, vector<4x1xf32> -> vector<4x128xf32>
    %121 = vector.broadcast %18 : vector<1x128xf32> to vector<4x128xf32>
    %122 = arith.mulf %121, %120 : vector<4x128xf32>
    %123 = arith.addf %102, %122 : vector<4x128xf32>
    %124 = tpu.iota {dimensions = array<i32: 0>} : vector<128x62xi32>
    %125 = tpu.iota {dimensions = array<i32: 1>} : vector<128x62xi32>
    %c0_i32_33 = arith.constant 0 : i32
    %126 = vector.broadcast %c0_i32_33 : i32 to vector<128x62xi32>
    %c31_i32_34 = arith.constant 31 : i32
    %127 = vector.broadcast %c31_i32_34 : i32 to vector<128x62xi32>
    %128 = arith.cmpi sge, %125, %127 : vector<128x62xi32>
    %c1_i32_35 = arith.constant 1 : i32
    %c0_i32_36 = arith.constant 0 : i32
    %129 = vector.broadcast %c1_i32_35 : i32 to vector<128x62xi32>
    %130 = vector.broadcast %c0_i32_36 : i32 to vector<128x62xi32>
    %131 = arith.select %128, %129, %130 : vector<128x62xi1>, vector<128x62xi32>
    %132 = arith.addi %126, %131 : vector<128x62xi32>
    %c64_i32_37 = arith.constant 64 : i32
    %133 = vector.broadcast %c64_i32_37 : i32 to vector<128x62xi32>
    %134 = arith.muli %132, %133 : vector<128x62xi32>
    %c1_i32_38 = arith.constant 1 : i32
    %135 = vector.broadcast %c1_i32_38 : i32 to vector<128x62xi32>
    %136 = arith.addi %134, %135 : vector<128x62xi32>
    %c31_i32_39 = arith.constant 31 : i32
    %137 = vector.broadcast %c31_i32_39 : i32 to vector<128x62xi32>
    %138 = arith.muli %132, %137 : vector<128x62xi32>
    %139 = arith.subi %125, %138 : vector<128x62xi32>
    %c2_i32 = arith.constant 2 : i32
    %140 = vector.broadcast %c2_i32 : i32 to vector<128x62xi32>
    %141 = arith.muli %140, %139 : vector<128x62xi32>
    %142 = arith.addi %136, %141 : vector<128x62xi32>
    %c0_i32_40 = arith.constant 0 : i32
    %143 = vector.broadcast %c0_i32_40 : i32 to vector<128x62xi32>
    %144 = arith.addi %142, %143 : vector<128x62xi32>
    %145 = arith.cmpi eq, %124, %144 : vector<128x62xi32>
    %cst_41 = arith.constant 1.000000e+00 : f32
    %cst_42 = arith.constant 0.000000e+00 : f32
    %146 = vector.broadcast %cst_41 : f32 to vector<128x62xf32>
    %147 = vector.broadcast %cst_42 : f32 to vector<128x62xf32>
    %148 = arith.select %145, %146, %147 : vector<128x62xi1>, vector<128x62xf32>
    %149 = tpu.iota {dimensions = array<i32: 0>} : vector<128x62xi32>
    %150 = tpu.iota {dimensions = array<i32: 1>} : vector<128x62xi32>
    %c0_i32_43 = arith.constant 0 : i32
    %151 = vector.broadcast %c0_i32_43 : i32 to vector<128x62xi32>
    %c31_i32_44 = arith.constant 31 : i32
    %152 = vector.broadcast %c31_i32_44 : i32 to vector<128x62xi32>
    %153 = arith.cmpi sge, %150, %152 : vector<128x62xi32>
    %c1_i32_45 = arith.constant 1 : i32
    %c0_i32_46 = arith.constant 0 : i32
    %154 = vector.broadcast %c1_i32_45 : i32 to vector<128x62xi32>
    %155 = vector.broadcast %c0_i32_46 : i32 to vector<128x62xi32>
    %156 = arith.select %153, %154, %155 : vector<128x62xi1>, vector<128x62xi32>
    %157 = arith.addi %151, %156 : vector<128x62xi32>
    %c64_i32_47 = arith.constant 64 : i32
    %158 = vector.broadcast %c64_i32_47 : i32 to vector<128x62xi32>
    %159 = arith.muli %157, %158 : vector<128x62xi32>
    %c1_i32_48 = arith.constant 1 : i32
    %160 = vector.broadcast %c1_i32_48 : i32 to vector<128x62xi32>
    %161 = arith.addi %159, %160 : vector<128x62xi32>
    %c31_i32_49 = arith.constant 31 : i32
    %162 = vector.broadcast %c31_i32_49 : i32 to vector<128x62xi32>
    %163 = arith.muli %157, %162 : vector<128x62xi32>
    %164 = arith.subi %150, %163 : vector<128x62xi32>
    %c2_i32_50 = arith.constant 2 : i32
    %165 = vector.broadcast %c2_i32_50 : i32 to vector<128x62xi32>
    %166 = arith.muli %165, %164 : vector<128x62xi32>
    %167 = arith.addi %161, %166 : vector<128x62xi32>
    %c1_i32_51 = arith.constant 1 : i32
    %168 = vector.broadcast %c1_i32_51 : i32 to vector<128x62xi32>
    %169 = arith.addi %167, %168 : vector<128x62xi32>
    %170 = arith.cmpi eq, %149, %169 : vector<128x62xi32>
    %cst_52 = arith.constant 1.000000e+00 : f32
    %cst_53 = arith.constant 0.000000e+00 : f32
    %171 = vector.broadcast %cst_52 : f32 to vector<128x62xf32>
    %172 = vector.broadcast %cst_53 : f32 to vector<128x62xf32>
    %173 = arith.select %170, %171, %172 : vector<128x62xi1>, vector<128x62xf32>
    %cst_54 = arith.constant dense<0.000000e+00> : vector<4x62xf32>
    %174 = tpu.matmul %123, %148, %cst_54 {dimension_numbers = #tpu.dot_dimension_numbers<[1], [0], [0], [1], [0, 0, 1, 1], [], []>, precision = #tpu.contract_precision<fp32>} : vector<4x128xf32>, vector<128x62xf32>, vector<4x62xf32> -> vector<4x62xf32>
    %cst_55 = arith.constant dense<0.000000e+00> : vector<4x62xf32>
    %175 = tpu.matmul %123, %173, %cst_55 {dimension_numbers = #tpu.dot_dimension_numbers<[1], [0], [0], [1], [0, 0, 1, 1], [], []>, precision = #tpu.contract_precision<fp32>} : vector<4x128xf32>, vector<128x62xf32>, vector<4x62xf32> -> vector<4x62xf32>
    %c12 = arith.constant 12 : index
    %c0_56 = arith.constant 0 : index
    %176 = vector.load %arg1[%c12, %c0_56] : memref<72x49xf32, #tpu.memory_space<vmem>>, vector<8x25xf32>
    %177 = vector.extract_strided_slice %176 {offsets = [0, 0], sizes = [8, 24], strides = [1, 1]} : vector<8x25xf32> to vector<8x24xf32>
    %178 = vector.extract_strided_slice %176 {offsets = [0, 24], sizes = [8, 1], strides = [1, 1]} : vector<8x25xf32> to vector<8x1xf32>
    %179 = vector.extract_strided_slice %174 {offsets = [0, 0], sizes = [4, 60], strides = [1, 1]} : vector<4x62xf32> to vector<4x60xf32>
    %180 = vector.extract_strided_slice %175 {offsets = [0, 0], sizes = [4, 60], strides = [1, 1]} : vector<4x62xf32> to vector<4x60xf32>
    %181 = vector.extract_strided_slice %174 {offsets = [0, 1], sizes = [4, 60], strides = [1, 1]} : vector<4x62xf32> to vector<4x60xf32>
    %182 = vector.extract_strided_slice %175 {offsets = [0, 1], sizes = [4, 60], strides = [1, 1]} : vector<4x62xf32> to vector<4x60xf32>
    %183 = vector.extract_strided_slice %174 {offsets = [0, 2], sizes = [4, 60], strides = [1, 1]} : vector<4x62xf32> to vector<4x60xf32>
    %184 = vector.extract_strided_slice %175 {offsets = [0, 2], sizes = [4, 60], strides = [1, 1]} : vector<4x62xf32> to vector<4x60xf32>
    %185 = tpu.concatenate %179, %180, %181, %182, %183, %184 in 0 : vector<4x60xf32>, vector<4x60xf32>, vector<4x60xf32>, vector<4x60xf32>, vector<4x60xf32>, vector<4x60xf32> -> vector<24x60xf32>
    %cst_57 = arith.constant dense<0.000000e+00> : vector<8x60xf32>
    %186 = tpu.matmul %177, %185, %cst_57 {dimension_numbers = #tpu.dot_dimension_numbers<[1], [0], [0], [1], [0, 0, 1, 1], [], []>, precision = #tpu.contract_precision<fp32>} : vector<8x24xf32>, vector<24x60xf32>, vector<8x60xf32> -> vector<8x60xf32>
    %187 = vector.broadcast %178 : vector<8x1xf32> to vector<8x60xf32>
    %188 = arith.addf %186, %187 : vector<8x60xf32>
    %189 = arith.negf %188 : vector<8x60xf32>
    %190 = math.exp %189 : vector<8x60xf32>
    %cst_58 = arith.constant 1.000000e+00 : f32
    %191 = vector.broadcast %cst_58 : f32 to vector<8x60xf32>
    %192 = arith.addf %191, %190 : vector<8x60xf32>
    %193 = arith.divf %191, %192 : vector<8x60xf32>
    %194 = arith.mulf %188, %193 : vector<8x60xf32>
    %cst_59 = arith.constant 0.000000e+00 : f32
    %195 = vector.broadcast %cst_59 : f32 to vector<8x1xf32>
    %196 = tpu.concatenate %195, %194, %195 in 1 : vector<8x1xf32>, vector<8x60xf32>, vector<8x1xf32> -> vector<8x62xf32>
    %197 = vector.broadcast %37 : vector<1x62xf32> to vector<8x62xf32>
    %198 = arith.mulf %197, %196 : vector<8x62xf32>
    %c20 = arith.constant 20 : index
    %c0_60 = arith.constant 0 : index
    %199 = vector.load %arg1[%c20, %c0_60] : memref<72x49xf32, #tpu.memory_space<vmem>>, vector<8x25xf32>
    %200 = vector.extract_strided_slice %199 {offsets = [0, 0], sizes = [8, 24], strides = [1, 1]} : vector<8x25xf32> to vector<8x24xf32>
    %201 = vector.extract_strided_slice %199 {offsets = [0, 24], sizes = [8, 1], strides = [1, 1]} : vector<8x25xf32> to vector<8x1xf32>
    %202 = vector.extract_strided_slice %198 {offsets = [0, 0], sizes = [8, 60], strides = [1, 1]} : vector<8x62xf32> to vector<8x60xf32>
    %203 = vector.extract_strided_slice %198 {offsets = [0, 1], sizes = [8, 60], strides = [1, 1]} : vector<8x62xf32> to vector<8x60xf32>
    %204 = vector.extract_strided_slice %198 {offsets = [0, 2], sizes = [8, 60], strides = [1, 1]} : vector<8x62xf32> to vector<8x60xf32>
    %205 = tpu.concatenate %202, %203, %204 in 0 : vector<8x60xf32>, vector<8x60xf32>, vector<8x60xf32> -> vector<24x60xf32>
    %cst_61 = arith.constant dense<0.000000e+00> : vector<8x60xf32>
    %206 = tpu.matmul %200, %205, %cst_61 {dimension_numbers = #tpu.dot_dimension_numbers<[1], [0], [0], [1], [0, 0, 1, 1], [], []>, precision = #tpu.contract_precision<fp32>} : vector<8x24xf32>, vector<24x60xf32>, vector<8x60xf32> -> vector<8x60xf32>
    %207 = vector.broadcast %201 : vector<8x1xf32> to vector<8x60xf32>
    %208 = arith.addf %206, %207 : vector<8x60xf32>
    %209 = arith.negf %208 : vector<8x60xf32>
    %210 = math.exp %209 : vector<8x60xf32>
    %cst_62 = arith.constant 1.000000e+00 : f32
    %211 = vector.broadcast %cst_62 : f32 to vector<8x60xf32>
    %212 = arith.addf %211, %210 : vector<8x60xf32>
    %213 = arith.divf %211, %212 : vector<8x60xf32>
    %214 = arith.mulf %208, %213 : vector<8x60xf32>
    %cst_63 = arith.constant 0.000000e+00 : f32
    %215 = vector.broadcast %cst_63 : f32 to vector<8x1xf32>
    %216 = tpu.concatenate %215, %214, %215 in 1 : vector<8x1xf32>, vector<8x60xf32>, vector<8x1xf32> -> vector<8x62xf32>
    %217 = vector.broadcast %37 : vector<1x62xf32> to vector<8x62xf32>
    %218 = arith.mulf %217, %216 : vector<8x62xf32>
    %219 = arith.addf %198, %218 : vector<8x62xf32>
    %c28 = arith.constant 28 : index
    %c0_64 = arith.constant 0 : index
    %220 = vector.load %arg1[%c28, %c0_64] : memref<72x49xf32, #tpu.memory_space<vmem>>, vector<8x25xf32>
    %221 = vector.extract_strided_slice %220 {offsets = [0, 0], sizes = [8, 24], strides = [1, 1]} : vector<8x25xf32> to vector<8x24xf32>
    %222 = vector.extract_strided_slice %220 {offsets = [0, 24], sizes = [8, 1], strides = [1, 1]} : vector<8x25xf32> to vector<8x1xf32>
    %223 = vector.extract_strided_slice %219 {offsets = [0, 0], sizes = [8, 60], strides = [1, 1]} : vector<8x62xf32> to vector<8x60xf32>
    %224 = vector.extract_strided_slice %219 {offsets = [0, 1], sizes = [8, 60], strides = [1, 1]} : vector<8x62xf32> to vector<8x60xf32>
    %225 = vector.extract_strided_slice %219 {offsets = [0, 2], sizes = [8, 60], strides = [1, 1]} : vector<8x62xf32> to vector<8x60xf32>
    %226 = tpu.concatenate %223, %224, %225 in 0 : vector<8x60xf32>, vector<8x60xf32>, vector<8x60xf32> -> vector<24x60xf32>
    %cst_65 = arith.constant dense<0.000000e+00> : vector<8x60xf32>
    %227 = tpu.matmul %221, %226, %cst_65 {dimension_numbers = #tpu.dot_dimension_numbers<[1], [0], [0], [1], [0, 0, 1, 1], [], []>, precision = #tpu.contract_precision<fp32>} : vector<8x24xf32>, vector<24x60xf32>, vector<8x60xf32> -> vector<8x60xf32>
    %228 = vector.broadcast %222 : vector<8x1xf32> to vector<8x60xf32>
    %229 = arith.addf %227, %228 : vector<8x60xf32>
    %230 = arith.negf %229 : vector<8x60xf32>
    %231 = math.exp %230 : vector<8x60xf32>
    %cst_66 = arith.constant 1.000000e+00 : f32
    %232 = vector.broadcast %cst_66 : f32 to vector<8x60xf32>
    %233 = arith.addf %232, %231 : vector<8x60xf32>
    %234 = arith.divf %232, %233 : vector<8x60xf32>
    %235 = arith.mulf %229, %234 : vector<8x60xf32>
    %cst_67 = arith.constant 0.000000e+00 : f32
    %236 = vector.broadcast %cst_67 : f32 to vector<8x1xf32>
    %237 = tpu.concatenate %236, %235, %236 in 1 : vector<8x1xf32>, vector<8x60xf32>, vector<8x1xf32> -> vector<8x62xf32>
    %238 = vector.broadcast %37 : vector<1x62xf32> to vector<8x62xf32>
    %239 = arith.mulf %238, %237 : vector<8x62xf32>
    %240 = arith.addf %219, %239 : vector<8x62xf32>
    %241 = tpu.iota {dimensions = array<i32: 0>} : vector<62x28xi32>
    %242 = tpu.iota {dimensions = array<i32: 1>} : vector<62x28xi32>
    %c0_i32_68 = arith.constant 0 : i32
    %243 = vector.broadcast %c0_i32_68 : i32 to vector<62x28xi32>
    %c14_i32_69 = arith.constant 14 : i32
    %244 = vector.broadcast %c14_i32_69 : i32 to vector<62x28xi32>
    %245 = arith.cmpi sge, %242, %244 : vector<62x28xi32>
    %c1_i32_70 = arith.constant 1 : i32
    %c0_i32_71 = arith.constant 0 : i32
    %246 = vector.broadcast %c1_i32_70 : i32 to vector<62x28xi32>
    %247 = vector.broadcast %c0_i32_71 : i32 to vector<62x28xi32>
    %248 = arith.select %245, %246, %247 : vector<62x28xi1>, vector<62x28xi32>
    %249 = arith.addi %243, %248 : vector<62x28xi32>
    %c31_i32_72 = arith.constant 31 : i32
    %250 = vector.broadcast %c31_i32_72 : i32 to vector<62x28xi32>
    %251 = arith.muli %249, %250 : vector<62x28xi32>
    %c1_i32_73 = arith.constant 1 : i32
    %252 = vector.broadcast %c1_i32_73 : i32 to vector<62x28xi32>
    %253 = arith.addi %251, %252 : vector<62x28xi32>
    %c14_i32_74 = arith.constant 14 : i32
    %254 = vector.broadcast %c14_i32_74 : i32 to vector<62x28xi32>
    %255 = arith.muli %249, %254 : vector<62x28xi32>
    %256 = arith.subi %242, %255 : vector<62x28xi32>
    %c2_i32_75 = arith.constant 2 : i32
    %257 = vector.broadcast %c2_i32_75 : i32 to vector<62x28xi32>
    %258 = arith.muli %257, %256 : vector<62x28xi32>
    %259 = arith.addi %253, %258 : vector<62x28xi32>
    %c0_i32_76 = arith.constant 0 : i32
    %260 = vector.broadcast %c0_i32_76 : i32 to vector<62x28xi32>
    %261 = arith.addi %259, %260 : vector<62x28xi32>
    %262 = arith.cmpi eq, %241, %261 : vector<62x28xi32>
    %cst_77 = arith.constant 1.000000e+00 : f32
    %cst_78 = arith.constant 0.000000e+00 : f32
    %263 = vector.broadcast %cst_77 : f32 to vector<62x28xf32>
    %264 = vector.broadcast %cst_78 : f32 to vector<62x28xf32>
    %265 = arith.select %262, %263, %264 : vector<62x28xi1>, vector<62x28xf32>
    %266 = tpu.iota {dimensions = array<i32: 0>} : vector<62x28xi32>
    %267 = tpu.iota {dimensions = array<i32: 1>} : vector<62x28xi32>
    %c0_i32_79 = arith.constant 0 : i32
    %268 = vector.broadcast %c0_i32_79 : i32 to vector<62x28xi32>
    %c14_i32_80 = arith.constant 14 : i32
    %269 = vector.broadcast %c14_i32_80 : i32 to vector<62x28xi32>
    %270 = arith.cmpi sge, %267, %269 : vector<62x28xi32>
    %c1_i32_81 = arith.constant 1 : i32
    %c0_i32_82 = arith.constant 0 : i32
    %271 = vector.broadcast %c1_i32_81 : i32 to vector<62x28xi32>
    %272 = vector.broadcast %c0_i32_82 : i32 to vector<62x28xi32>
    %273 = arith.select %270, %271, %272 : vector<62x28xi1>, vector<62x28xi32>
    %274 = arith.addi %268, %273 : vector<62x28xi32>
    %c31_i32_83 = arith.constant 31 : i32
    %275 = vector.broadcast %c31_i32_83 : i32 to vector<62x28xi32>
    %276 = arith.muli %274, %275 : vector<62x28xi32>
    %c1_i32_84 = arith.constant 1 : i32
    %277 = vector.broadcast %c1_i32_84 : i32 to vector<62x28xi32>
    %278 = arith.addi %276, %277 : vector<62x28xi32>
    %c14_i32_85 = arith.constant 14 : i32
    %279 = vector.broadcast %c14_i32_85 : i32 to vector<62x28xi32>
    %280 = arith.muli %274, %279 : vector<62x28xi32>
    %281 = arith.subi %267, %280 : vector<62x28xi32>
    %c2_i32_86 = arith.constant 2 : i32
    %282 = vector.broadcast %c2_i32_86 : i32 to vector<62x28xi32>
    %283 = arith.muli %282, %281 : vector<62x28xi32>
    %284 = arith.addi %278, %283 : vector<62x28xi32>
    %c1_i32_87 = arith.constant 1 : i32
    %285 = vector.broadcast %c1_i32_87 : i32 to vector<62x28xi32>
    %286 = arith.addi %284, %285 : vector<62x28xi32>
    %287 = arith.cmpi eq, %266, %286 : vector<62x28xi32>
    %cst_88 = arith.constant 1.000000e+00 : f32
    %cst_89 = arith.constant 0.000000e+00 : f32
    %288 = vector.broadcast %cst_88 : f32 to vector<62x28xf32>
    %289 = vector.broadcast %cst_89 : f32 to vector<62x28xf32>
    %290 = arith.select %287, %288, %289 : vector<62x28xi1>, vector<62x28xf32>
    %cst_90 = arith.constant dense<0.000000e+00> : vector<8x28xf32>
    %291 = tpu.matmul %240, %265, %cst_90 {dimension_numbers = #tpu.dot_dimension_numbers<[1], [0], [0], [1], [0, 0, 1, 1], [], []>, precision = #tpu.contract_precision<fp32>} : vector<8x62xf32>, vector<62x28xf32>, vector<8x28xf32> -> vector<8x28xf32>
    %cst_91 = arith.constant dense<0.000000e+00> : vector<8x28xf32>
    %292 = tpu.matmul %240, %290, %cst_91 {dimension_numbers = #tpu.dot_dimension_numbers<[1], [0], [0], [1], [0, 0, 1, 1], [], []>, precision = #tpu.contract_precision<fp32>} : vector<8x62xf32>, vector<62x28xf32>, vector<8x28xf32> -> vector<8x28xf32>
    %c36 = arith.constant 36 : index
    %c0_92 = arith.constant 0 : index
    %293 = vector.load %arg1[%c36, %c0_92] : memref<72x49xf32, #tpu.memory_space<vmem>>, vector<12x49xf32>
    %294 = vector.extract_strided_slice %293 {offsets = [0, 0], sizes = [12, 48], strides = [1, 1]} : vector<12x49xf32> to vector<12x48xf32>
    %295 = vector.extract_strided_slice %293 {offsets = [0, 48], sizes = [12, 1], strides = [1, 1]} : vector<12x49xf32> to vector<12x1xf32>
    %296 = vector.extract_strided_slice %291 {offsets = [0, 0], sizes = [8, 26], strides = [1, 1]} : vector<8x28xf32> to vector<8x26xf32>
    %297 = vector.extract_strided_slice %292 {offsets = [0, 0], sizes = [8, 26], strides = [1, 1]} : vector<8x28xf32> to vector<8x26xf32>
    %298 = vector.extract_strided_slice %291 {offsets = [0, 1], sizes = [8, 26], strides = [1, 1]} : vector<8x28xf32> to vector<8x26xf32>
    %299 = vector.extract_strided_slice %292 {offsets = [0, 1], sizes = [8, 26], strides = [1, 1]} : vector<8x28xf32> to vector<8x26xf32>
    %300 = vector.extract_strided_slice %291 {offsets = [0, 2], sizes = [8, 26], strides = [1, 1]} : vector<8x28xf32> to vector<8x26xf32>
    %301 = vector.extract_strided_slice %292 {offsets = [0, 2], sizes = [8, 26], strides = [1, 1]} : vector<8x28xf32> to vector<8x26xf32>
    %302 = tpu.concatenate %296, %297, %298, %299, %300, %301 in 0 : vector<8x26xf32>, vector<8x26xf32>, vector<8x26xf32>, vector<8x26xf32>, vector<8x26xf32>, vector<8x26xf32> -> vector<48x26xf32>
    %cst_93 = arith.constant dense<0.000000e+00> : vector<12x26xf32>
    %303 = tpu.matmul %294, %302, %cst_93 {dimension_numbers = #tpu.dot_dimension_numbers<[1], [0], [0], [1], [0, 0, 1, 1], [], []>, precision = #tpu.contract_precision<fp32>} : vector<12x48xf32>, vector<48x26xf32>, vector<12x26xf32> -> vector<12x26xf32>
    %304 = vector.broadcast %295 : vector<12x1xf32> to vector<12x26xf32>
    %305 = arith.addf %303, %304 : vector<12x26xf32>
    %306 = arith.negf %305 : vector<12x26xf32>
    %307 = math.exp %306 : vector<12x26xf32>
    %cst_94 = arith.constant 1.000000e+00 : f32
    %308 = vector.broadcast %cst_94 : f32 to vector<12x26xf32>
    %309 = arith.addf %308, %307 : vector<12x26xf32>
    %310 = arith.divf %308, %309 : vector<12x26xf32>
    %311 = arith.mulf %305, %310 : vector<12x26xf32>
    %cst_95 = arith.constant 0.000000e+00 : f32
    %312 = vector.broadcast %cst_95 : f32 to vector<12x1xf32>
    %313 = tpu.concatenate %312, %311, %312 in 1 : vector<12x1xf32>, vector<12x26xf32>, vector<12x1xf32> -> vector<12x28xf32>
    %314 = vector.broadcast %56 : vector<1x28xf32> to vector<12x28xf32>
    %315 = arith.mulf %314, %313 : vector<12x28xf32>
    %c48 = arith.constant 48 : index
    %c0_96 = arith.constant 0 : index
    %316 = vector.load %arg1[%c48, %c0_96] : memref<72x49xf32, #tpu.memory_space<vmem>>, vector<12x37xf32>
    %317 = vector.extract_strided_slice %316 {offsets = [0, 0], sizes = [12, 36], strides = [1, 1]} : vector<12x37xf32> to vector<12x36xf32>
    %318 = vector.extract_strided_slice %316 {offsets = [0, 36], sizes = [12, 1], strides = [1, 1]} : vector<12x37xf32> to vector<12x1xf32>
    %319 = vector.extract_strided_slice %315 {offsets = [0, 0], sizes = [12, 26], strides = [1, 1]} : vector<12x28xf32> to vector<12x26xf32>
    %320 = vector.extract_strided_slice %315 {offsets = [0, 1], sizes = [12, 26], strides = [1, 1]} : vector<12x28xf32> to vector<12x26xf32>
    %321 = vector.extract_strided_slice %315 {offsets = [0, 2], sizes = [12, 26], strides = [1, 1]} : vector<12x28xf32> to vector<12x26xf32>
    %322 = tpu.concatenate %319, %320, %321 in 0 : vector<12x26xf32>, vector<12x26xf32>, vector<12x26xf32> -> vector<36x26xf32>
    %cst_97 = arith.constant dense<0.000000e+00> : vector<12x26xf32>
    %323 = tpu.matmul %317, %322, %cst_97 {dimension_numbers = #tpu.dot_dimension_numbers<[1], [0], [0], [1], [0, 0, 1, 1], [], []>, precision = #tpu.contract_precision<fp32>} : vector<12x36xf32>, vector<36x26xf32>, vector<12x26xf32> -> vector<12x26xf32>
    %324 = vector.broadcast %318 : vector<12x1xf32> to vector<12x26xf32>
    %325 = arith.addf %323, %324 : vector<12x26xf32>
    %326 = arith.negf %325 : vector<12x26xf32>
    %327 = math.exp %326 : vector<12x26xf32>
    %cst_98 = arith.constant 1.000000e+00 : f32
    %328 = vector.broadcast %cst_98 : f32 to vector<12x26xf32>
    %329 = arith.addf %328, %327 : vector<12x26xf32>
    %330 = arith.divf %328, %329 : vector<12x26xf32>
    %331 = arith.mulf %325, %330 : vector<12x26xf32>
    %cst_99 = arith.constant 0.000000e+00 : f32
    %332 = vector.broadcast %cst_99 : f32 to vector<12x1xf32>
    %333 = tpu.concatenate %332, %331, %332 in 1 : vector<12x1xf32>, vector<12x26xf32>, vector<12x1xf32> -> vector<12x28xf32>
    %334 = vector.broadcast %56 : vector<1x28xf32> to vector<12x28xf32>
    %335 = arith.mulf %334, %333 : vector<12x28xf32>
    %336 = arith.addf %315, %335 : vector<12x28xf32>
    %c60 = arith.constant 60 : index
    %c0_100 = arith.constant 0 : index
    %337 = vector.load %arg1[%c60, %c0_100] : memref<72x49xf32, #tpu.memory_space<vmem>>, vector<12x37xf32>
    %338 = vector.extract_strided_slice %337 {offsets = [0, 0], sizes = [12, 36], strides = [1, 1]} : vector<12x37xf32> to vector<12x36xf32>
    %339 = vector.extract_strided_slice %337 {offsets = [0, 36], sizes = [12, 1], strides = [1, 1]} : vector<12x37xf32> to vector<12x1xf32>
    %340 = vector.extract_strided_slice %336 {offsets = [0, 0], sizes = [12, 26], strides = [1, 1]} : vector<12x28xf32> to vector<12x26xf32>
    %341 = vector.extract_strided_slice %336 {offsets = [0, 1], sizes = [12, 26], strides = [1, 1]} : vector<12x28xf32> to vector<12x26xf32>
    %342 = vector.extract_strided_slice %336 {offsets = [0, 2], sizes = [12, 26], strides = [1, 1]} : vector<12x28xf32> to vector<12x26xf32>
    %343 = tpu.concatenate %340, %341, %342 in 0 : vector<12x26xf32>, vector<12x26xf32>, vector<12x26xf32> -> vector<36x26xf32>
    %cst_101 = arith.constant dense<0.000000e+00> : vector<12x26xf32>
    %344 = tpu.matmul %338, %343, %cst_101 {dimension_numbers = #tpu.dot_dimension_numbers<[1], [0], [0], [1], [0, 0, 1, 1], [], []>, precision = #tpu.contract_precision<fp32>} : vector<12x36xf32>, vector<36x26xf32>, vector<12x26xf32> -> vector<12x26xf32>
    %345 = vector.broadcast %339 : vector<12x1xf32> to vector<12x26xf32>
    %346 = arith.addf %344, %345 : vector<12x26xf32>
    %347 = arith.negf %346 : vector<12x26xf32>
    %348 = math.exp %347 : vector<12x26xf32>
    %cst_102 = arith.constant 1.000000e+00 : f32
    %349 = vector.broadcast %cst_102 : f32 to vector<12x26xf32>
    %350 = arith.addf %349, %348 : vector<12x26xf32>
    %351 = arith.divf %349, %350 : vector<12x26xf32>
    %352 = arith.mulf %346, %351 : vector<12x26xf32>
    %cst_103 = arith.constant 0.000000e+00 : f32
    %353 = vector.broadcast %cst_103 : f32 to vector<12x1xf32>
    %354 = tpu.concatenate %353, %352, %353 in 1 : vector<12x1xf32>, vector<12x26xf32>, vector<12x1xf32> -> vector<12x28xf32>
    %355 = vector.broadcast %56 : vector<1x28xf32> to vector<12x28xf32>
    %356 = arith.mulf %355, %354 : vector<12x28xf32>
    %357 = arith.addf %336, %356 : vector<12x28xf32>
    %c0_104 = arith.constant 0 : index
    %c0_105 = arith.constant 0 : index
    %358 = vector.load %arg2[%c0_104, %c0_105] : memref<12x28xf32, #tpu.memory_space<vmem>>, vector<12x28xf32>
    tpu.vector_store %arg2[%c0_104, %c0_105], %357 {strides = array<i32>} : memref<12x28xf32, #tpu.memory_space<vmem>>, vector<12x28xf32>,
    return
  }
}

</mosaic_0001>

<bundles_post_ra>
// kernel: en_cov_forward.1
= control target key start
LH: loop header
LB: loop body
LE: loop exit
PB: predicated region body
PF: predicated region fallthrough
CT: control target
= control target key end

     0   :  { %vm60_vm0 = vcmask 1040384   ;;  %s9891_s13 = smov 127   ;;  %s9892_s14 = smov 126   ;;  %v11962_v8 = vmov 0.0   ;;  %vm11931_vm1 = vmmov 0   ;;  %v9895_v10 = vmov 6   ;;  %s11918_s0 = inlined_call_operand.vmem [shape: f32[2,128], index: 0, kind: input, shape index: {}]   ;;  %s11919_s1 = inlined_call_operand.vmem [shape: f32[72,49], index: 1, kind: input, shape index: {}]   ;;  %s11920_s2 = inlined_call_operand.vmem [shape: f32[12,28], index: 2, kind: output, shape index: {}]  }
   0x1   :  { %v37_v0 = vld [vmem:[%s11918_s0] sm:$0x1]  ;;  %v38_v1 = vld [vmem:[%s11918_s0 + $0x1] sm:$0x1]  ;;  %7816 = vmatprep.subr.mxu0 %v11962_v8  ;;  %7818 = vmatprep.mubr.msk.f32.mxu0 %vm11931_vm1, %v11962_v8  ;;  %vm75_vm2 = vcmask 48128   ;;  %vm62_vm3 = vcmask 1041408   ;;  %v11_v31 = vlaneseq }
   0x2   :  { %v41_v2 = vrot.slane %v38_v1, 7  ;;  %v44_v3 = vrot.slane %v37_v0, 6  ;;  %v52_v4 = vrot.slane %v37_v0, 4  ;;  %v48_v5 = vrot.slane %v38_v1, 5  ;;  %7857 = vmatprep.mubr.msk.f32.mxu1 %vm11931_vm1, %v11962_v8  ;;  %v39_v9 = vld [vmem:[%s11919_s1] sm:$0xf]  ;;  %9836 = vset.pattern.permute.xlu0 %v9895_v10 }
   0x3   :  { %v56_v6 = vrot.slane %v38_v1, 3  ;;  %v76_v11 = vsel %vm75_vm2, %v39_v9, 0  ;;  %vm64_vm4 = vcmask 1042432   ;;  %vm11922_vm5 = vcmask 1043456   ;;  %s9897_s16 = smov 1  }
   0x4   :  { %45 = vrot.lane.b32.xlu0 %v44_v3, %s9891_s13  ;;  %53 = vrot.lane.b32.xlu1 %v52_v4, %s9892_s14  ;;  %v61_v7 = vsel %vm60_vm0, %v37_v0, %v41_v2  ;;  %v148_v12 = vand.u32 4294901760, %v76_v11  ;;  %vm68_vm6 = vcmask 1044480   ;;  %vm11921_vm7 = vcmask 1045504   ;;  %v544_v59 = vld [vmem:[%s11919_s1 + $0x4] sm:$0xf] }
   0x5   :  { %v12_v32 = vand.u32 127, %v11_v31  ;;  %v9896_v33 = vmov 0   ;;  %vm11950_vm14 = vcmask 7168   ;;  %vm11949_vm15 = vcmask 1039360  }
   0x6   :  { %v149_v13 = vsub.f32 %v76_v11, %v148_v12  ;;  %v11968_v52 = vmov 0.0|0.0   ;;  %v9899_v60 = vmov 12   ;;  %vm558_vm0 = vcmask 97280  }
   0x7   :  { %vm21_vm8 = vcmp.ge.s32.totalorder %v12_v32, 31  ;;  %vm29_vm9 = vcmp.ge.s32.totalorder %v12_v32, 14  ;;  %vm13_vm10 = vcmp.ge.s32.totalorder %v12_v32, 64  ;;  %8989 = vmatprep.subr.bf16.mxu1 %v11968_v52  ;;  %9837 = vset.pattern.permute.xlu1 %v9899_v60  ;;  %v559_v61 = vsel %vm558_vm0, %v544_v59, 0 }
   0x8   :  { %49 = vrot.lane.b32.xlu0 %v48_v5, %s9891_s13  ;;  %57 = vrot.lane.b32.xlu1 %v56_v6, %s9892_s14  ;;  %v150_v16 = vand.u32 4294901760, %v149_v13  ;;  %v9958_v34 = vsel %vm21_vm8, 1, %v9896_v33  ;;  %v9960_v35 = vsel %vm29_vm9, 1, %v9896_v33  ;;  %v14_v49 = vsel %vm13_vm10, 1, %v9896_v33 }
   0x9   :  { %12024 = vst [vmem:[#allocation2_spill] sm:$0xff] %v9960_v35  ;;  %v23_v36 = vmul.u32 31, %v9958_v34  ;;  %v31_v37 = vmul.u32 14, %v9960_v35  ;;  %v630_v62 = vand.u32 4294901760, %v559_v61 }
   0xa   :  { %v151_v20 = vsub.f32 %v149_v13, %v150_v16  ;;  %v15_v50 = vmul.u32 64, %v14_v49 }
   0xb   :  { %v9964_v38 = vsub.s32 %v12_v32, %v23_v36  ;;  %v9966_v39 = vsub.s32 %v12_v32, %v31_v37  ;;  %v631_v63 = vsub.f32 %v559_v61, %v630_v62 }
   0xc   :  { %72 = vperm.xlu0 %9836, %v39_v9   ;;  %v152_v25 = vand.u32 4294901760, %v151_v20  ;;  %v16_v51 = vsub.s32 %v12_v32, %v15_v50 }
   0xd   :  { %12025 = vst [vmem:[#allocation3_spill] sm:$0xff] %v9964_v38  ;;  %12026 = vst [vmem:[#allocation4_spill] sm:$0xff] %v9966_v39  ;;  %v632_v2 = vand.u32 4294901760, %v631_v63 }
   0xe   :  { %vm17_vm11 = vcmp.ge.s32.totalorder %v16_v51, 1  ;;  %vm18_vm12 = vcmp.le.s32.totalorder %v16_v51, 62 }
   0xf   :  { %vm19_vm13 = vmand %vm17_vm11, %vm18_vm12  ;;  %v633_v6 = vsub.f32 %v631_v63, %v632_v2 }
  0x10   :  { %v9972_v53 = vsel %vm19_vm13, 1.0, %v11962_v8 }
  0x76   :  { %v46_v14 = vpop.permute.xlu0 %45  ;;  %v54_v15 = vpop.permute.xlu1 %53 }
  0x77   :  { %v63_v17 = vsel %vm62_vm3, %v61_v7, %v46_v14 }
  0x7a   :  { %v50_v18 = vpop.permute.xlu0 %49  ;;  %v58_v19 = vpop.permute.xlu1 %57 }
  0x7b   :  { %v65_v21 = vsel %vm64_vm4, %v63_v17, %v50_v18 }
  0x7c   :  { %v67_v22 = vsel %vm11922_vm5, %v65_v21, %v54_v15 }
  0x7d   :  { %v69_v23 = vsel %vm68_vm6, %v67_v22, %v58_v19 }
  0x7e   :  { %v80_v24 = vsel %vm11921_vm7, %v69_v23, 0 }
  0x7f   :  { %v83_v26 = vand.u32 4294901760, %v80_v24 }
  0x81   :  { %v160_v27 = vsub.f32 %v80_v24, %v83_v26  ;;  %7817 = vmatpush3.msra.mxu0 %v83_v26 }
  0x82   :  { %7819 = vmatmul.mubr.f32.vlgmr.msra.gmra.mrb[0].mxu0 %v152_v25  ;;  %7821 = vmatprep.subr.mxu0 %v11962_v8 }
  0x83   :  { %v161_v28 = vand.u32 4294901760, %v160_v27  ;;  %7823 = vmatprep.mubr.msk.f32.mxu0 %vm11931_vm1, %v11962_v8 }
  0x85   :  { %v162_v29 = vsub.f32 %v160_v27, %v161_v28 }
  0x87   :  { %v163_v30 = vand.u32 4294901760, %v162_v29 }
  0x89   :  { %7822 = vmatpush3.msra.mxu0 %v163_v30 }
  0x8a   :  { %7824 = vmatmul.mubr.f32.vlgmr.msra.gmra.mrb[0].mxu0 %v148_v12  ;;  %7826 = vmatprep.subr.mxu0 %v11962_v8 }
  0x8b   :  { %7827 = vmatpush3.msra.mxu0 %v160_v27  ;;  %7828 = vmatprep.mubr.msk.f32.mxu0 %vm11931_vm1, %v11962_v8  ;;  %v73_v40 = vpop.permute.xlu0 %72 }
  0x8c   :  { %7831 = vmatprep.subr.mxu0 %v11962_v8 }
  0x92   :  { %7829 = vmatmul.mubr.f32.vlgmr.msra.gmra.mrb[0].mxu0 %v149_v13  ;;  %v634_v13 = vand.u32 4294901760, %v633_v6 }
  0x93   :  { %7832 = vmatpush3.msra.mxu0 %v83_v26  ;;  %7833 = vmatprep.mubr.msk.f32.mxu0 %vm11931_vm1, %v11962_v8 }
  0x94   :  { %7836 = vmatprep.subr.mxu0 %v11962_v8 }
  0x9a   :  { %7834 = vmatmul.mubr.f32.vlgmr.msra.gmra.mrb[0].mxu0 %v150_v16 }
  0x9b   :  { %7837 = vmatpush3.msra.mxu0 %v161_v28  ;;  %7838 = vmatprep.mubr.msk.f32.mxu0 %vm11931_vm1, %v11962_v8 }
  0x9c   :  { %7841 = vmatprep.subr.mxu0 %v11962_v8 }
  0xa2   :  { %7839 = vmatmul.mubr.f32.vlgmr.msra.gmra.mrb[0].mxu0 %v148_v12 }
  0xa3   :  { %7842 = vmatpush3.msra.mxu0 %v83_v26  ;;  %7843 = vmatprep.mubr.msk.f32.mxu0 %vm11931_vm1, %v11962_v8 }
  0xa4   :  { %8986 = vmatprep.subr.bf16.mxu0 %v11968_v52 }
  0xaa   :  { %7844 = vmatmul.mubr.f32.vlgmr.msra.gmra.mrb[0].mxu0 %v148_v12 }
  0xab   :  { %7850 = vmatprep.mubr.msk.f32.mxu0 %vm11931_vm1, %v11962_v8 }
 0x17d   :  { %v524_v41 = vpop.f32.mrb[0].mxu0 }
 0x17e   :  { %v9682_v42 = vadd.f32 %v524_v41, %v73_v40  ;;  %v7845_v43 = vpop.f32.mrb[1].mxu0 }
 0x180   :  { %v7096_v44 = vmul.f32 -1.442695, %v9682_v42 }
 0x182   :  { %9843 = vpow2.f32 %v7096_v44 }
 0x18c   :  { %v9844_v45 = vpop.eup %9843 }
 0x18d   :  { %v531_v46 = vadd.f32 1.0, %v9844_v45  ;;  %v1037_v45 = vld [vmem:[%s11919_s1 + $0x8] sm:$0xf] }
 0x18f   :  { %9845 = vrcp.f32 %v531_v46  ;;  %v1051_v46 = vsel %vm558_vm0, %v1037_v45, 0 }
 0x199   :  { %v9846_v47 = vpop.eup %9845 }
 0x19a   :  { %v534_v48 = vmul.f32 %v9846_v47, %v9682_v42  ;;  %v1122_v47 = vand.u32 4294901760, %v1051_v46 }
 0x19c   :  { %536 = vrot.lane.b32.xlu1 %v534_v48, %s9897_s16  ;;  %v1123_v48 = vsub.f32 %v1051_v46, %v1122_v47 }
 0x19e   :  { %v1124_v49 = vand.u32 4294901760, %v1123_v48 }
 0x20e   :  { %v537_v54 = vpop.permute.xlu1 %536 }
 0x20f   :  { %v540_v55 = vsel %vm11950_vm14, 0.0, %v537_v54 }
 0x210   :  { %v542_v56 = vsel %vm11949_vm15, %v540_v55, 0.0 }
 0x211   :  { %v9977_v57 = vmul.f32 %v542_v56, %v9972_v53 }
 0x213   :  { %550 = vrot.lane.b32.xlu0 %v9977_v57, %s9892_s14  ;;  %v546_v58 = vrot.slane %v9977_v57, 4 }
 0x215   :  { %547 = vrot.lane.b32.xlu1 %v546_v58, %s9891_s13 }
 0x219   :  { %555 = vperm.xlu1 %9837, %v544_v59  }
 0x285   :  { %v551_v0 = vpop.permute.xlu0 %550 }
 0x286   :  { %v561_v1 = vsel %vm11922_vm5, %v551_v0, 0 }
 0x287   :  { %v567_v3 = vand.u32 4294901760, %v561_v1  ;;  %v548_v4 = vpop.permute.xlu1 %547 }
 0x288   :  { %v552_v5 = vsel %vm11922_vm5, %v9977_v57, %v548_v4 }
 0x289   :  { %v649_v7 = vsub.f32 %v561_v1, %v567_v3  ;;  %v564_v9 = vand.u32 4294901760, %v552_v5 }
 0x28b   :  { %v8987_v10 = vpack.c.bf16 %v567_v3, %v564_v9  ;;  %v642_v11 = vsub.f32 %v552_v5, %v564_v9  ;;  %v650_v12 = vand.u32 4294901760, %v649_v7  ;;  %v1546_v9 = vmul.u32 64, %v9958_v34 }
 0x28d   :  { %8988 = vmatpush3.bf16.msra.mxu0 %v8987_v10  ;;  %v643_v14 = vand.u32 4294901760, %v642_v11  ;;  %v651_v15 = vsub.f32 %v649_v7, %v650_v12  ;;  %v8993_v20 = vpack.c.bf16 %v649_v7, %v642_v11 }
 0x28e   :  { %9004 = vmatprep.subr.bf16.mxu0 %v11968_v52 }
 0x28f   :  { %v644_v16 = vsub.f32 %v642_v11, %v643_v14  ;;  %v652_v18 = vand.u32 4294901760, %v651_v15  ;;  %v8999_v21 = vpack.c.bf16 %v650_v12, %v643_v14  ;;  %v1548_v11 = vmul.u32 2, %v9964_v38 }
 0x290   :  { %7851 = vmatmul.mubr.f32.vlgmr.msra.gmra.mrb[2].mxu0 %v634_v13  ;;  %v10047_v12 = vshrl.u32 %v11_v31, 7 }
 0x291   :  { %v645_v17 = vand.u32 4294901760, %v644_v16  ;;  %7892 = vmatprep.mubr.msk.f32.mxu0 %vm11931_vm1, %v11962_v8 }
 0x292   :  { %v10052_v14 = vadd.s32 8, %v10047_v12  ;;  %v10058_v16 = vadd.s32 16, %v10047_v12  ;;  %v10066_v31 = vadd.s32 32, %v10047_v12  ;;  %v10069_v34 = vadd.s32 40, %v10047_v12 }
 0x293   :  { %v8990_v19 = vpack.c.bf16 %v652_v18, %v645_v17  ;;  %v10061_v17 = vadd.s32 24, %v10047_v12 }
 0x295   :  { %8991 = vmatpush3.bf16.msra.mxu1 %v8990_v19 }
 0x296   :  { %8992 = vmatprep.subr.bf16.mxu1 %v11968_v52 }
 0x298   :  { %7858 = vmatmul.mubr.f32.vlgmr.msra.gmra.mrb[0].mxu1 %v630_v62  ;;  %v556_v24 = vpop.permute.xlu1 %555 }
 0x299   :  { %8994 = vmatpush3.bf16.msra.mxu1 %v8993_v20  ;;  %7864 = vmatprep.mubr.msk.f32.mxu1 %vm11931_vm1, %v11962_v8 }
 0x29a   :  { %8995 = vmatprep.subr.bf16.mxu1 %v11968_v52 }
 0x2a0   :  { %7865 = vmatmul.mubr.f32.vlgmr.msra.gmra.mrb[0].mxu1 %v631_v63 }
 0x2a1   :  { %8997 = vmatpush3.bf16.msra.mxu1 %v8987_v10  ;;  %7871 = vmatprep.mubr.msk.f32.mxu1 %vm11931_vm1, %v11962_v8 }
 0x2a2   :  { %8998 = vmatprep.subr.bf16.mxu1 %v11968_v52 }
 0x2a8   :  { %7872 = vmatmul.mubr.f32.vlgmr.msra.gmra.mrb[0].mxu1 %v632_v2 }
 0x2a9   :  { %9000 = vmatpush3.bf16.msra.mxu1 %v8999_v21  ;;  %7878 = vmatprep.mubr.msk.f32.mxu1 %vm11931_vm1, %v11962_v8 }
 0x2aa   :  { %9001 = vmatprep.subr.bf16.mxu1 %v11968_v52 }
 0x2b0   :  { %7879 = vmatmul.mubr.f32.vlgmr.msra.gmra.mrb[0].mxu1 %v630_v62 }
 0x2b1   :  { %9003 = vmatpush3.bf16.msra.mxu1 %v8987_v10  ;;  %7885 = vmatprep.mubr.msk.f32.mxu1 %vm11931_vm1, %v11962_v8  ;;  %v1547_v10 = vadd.s32 1, %v1546_v9 }
 0x2b2   :  { %9022 = vmatprep.subr.bf16.mxu1 %v11968_v52 }
 0x2b3   :  { %v10049_v13 = vadd.s32 %v1548_v11, %v1547_v10 }
 0x2b5   :  { %v10055_v15 = vadd.s32 1, %v10049_v13  ;;  %vm1550_vm2 = vcmp.eq.s32.totalorder %v10047_v12, %v10049_v13  ;;  %vm1551_vm9 = vcmp.eq.s32.totalorder %v10052_v14, %v10049_v13  ;;  %vm1552_vm13 = vcmp.eq.s32.totalorder %v10058_v16, %v10049_v13 }
 0x2b6   :  { %vm10119_vm12 = vmpackc.low %vm1551_vm9, %vm1550_vm2  ;;  %vm1553_vm0 = vcmp.eq.s32.totalorder %v10061_v17, %v10049_v13 }
 0x2b7   :  { %vm11930_vm3 = vcmp.eq.s32.totalorder %v10047_v12, %v10055_v15  ;;  %vm11929_vm4 = vcmp.eq.s32.totalorder %v10052_v14, %v10055_v15  ;;  %vm11926_vm6 = vcmp.eq.s32.totalorder %v10058_v16, %v10055_v15  ;;  %vm11925_vm8 = vcmp.eq.s32.totalorder %v10061_v17, %v10055_v15  ;;  %vm10163_vm7 = vmpackc.low %vm1553_vm0, %vm1552_vm13 }
 0x2b8   :  { %7886 = vmatmul.mubr.f32.vlgmr.msra.gmra.mrb[0].mxu1 %v630_v62  ;;  %v1599_v18 = vsel %vm11930_vm3, 1.0, %v11962_v8  ;;  %v1600_v19 = vsel %vm11929_vm4, 1.0, %v11962_v8  ;;  %v1601_v20 = vsel %vm11926_vm6, 1.0, %v11962_v8  ;;  %v1602_v21 = vsel %vm11925_vm8, 1.0, %v11962_v8 }
 0x2b9   :  { %7962 = vmatprep.mubr.msk.f32.mxu1 %vm11931_vm1, %v11962_v8  ;;  %vm11924_vm10 = vcmp.eq.s32.totalorder %v10066_v31, %v10055_v15  ;;  %vm11923_vm11 = vcmp.eq.s32.totalorder %v10069_v34, %v10055_v15 }
 0x363   :  { %v636_v22 = vpop.f32.mrb[2].mxu0 }
 0x364   :  { %v7852_v23 = vpop.f32.mrb[3].mxu0  ;;  %v637_v25 = vadd.f32 %v636_v22, %v556_v24  ;;  %v10095_v22 = vsub.f32 %v1599_v18, %v1599_v18  ;;  %v10099_v24 = vsub.f32 %v1601_v20, %v1601_v20  ;;  %v12037_v18 = vmov 0 }
 0x365   :  { %v10097_v23 = vsub.f32 %v1600_v19, %v1600_v19 }
 0x38b   :  { %v1018_v26 = vpop.f32.mrb[0].mxu1 }
 0x38c   :  { %v9684_v27 = vadd.f32 %v1018_v26, %v637_v25  ;;  %v7887_v28 = vpop.f32.mrb[1].mxu1  ;;  %v10101_v25 = vsub.f32 %v1602_v21, %v1602_v21  ;;  %v11961_v26 = vand.u32 4294901760, %v10095_v22 }
 0x38d   :  { %v11959_v28 = vand.u32 4294901760, %v10099_v24 }
 0x38e   :  { %v7097_v29 = vmul.f32 -1.442695, %v9684_v27 }
 0x390   :  { %9847 = vpow2.f32 %v7097_v29  ;;  %v11958_v29 = vand.u32 4294901760, %v10101_v25 }
 0x39a   :  { %v9848_v30 = vpop.eup %9847 }
 0x39b   :  { %v1025_v32 = vadd.f32 1.0, %v9848_v30  ;;  %v12027_v30 = vmov 0 }
 0x39c   :  { %v12028_v30 = vsel %vm10119_vm12, 4294967295, %v12027_v30 }
 0x39d   :  { %9849 = vrcp.f32 %v1025_v32  ;;  %12029 = vst [vmem:[#allocation5_spill] sm:$0xff] %v12028_v30  ;;  %v11964_v32 = vmov 1.0|1.0  }
 0x39e   :  { %9024 = vmatpush3.bf16.msk.msra.mxu1 %vm10119_vm12, %v11964_v32 }
 0x39f   :  { %9025 = vmatprep.subr.bf16.mxu1 %v11968_v52 }
 0x3a2   :  { %9027 = vmatpush3.bf16.msk.msra.mxu1 %vm10163_vm7, %v11964_v32 }
 0x3a3   :  { %9028 = vmatprep.subr.bf16.mxu1 %v11968_v52 }
 0x3a7   :  { %v9850_v33 = vpop.eup %9849 }
 0x3a8   :  { %v1028_v36 = vmul.f32 %v9850_v33, %v9684_v27  ;;  %v11960_v27 = vand.u32 4294901760, %v10097_v23  ;;  %v1603_v33 = vsel %vm11924_vm10, 1.0, %v11962_v8 }
 0x3aa   :  { %1030 = vrot.lane.b32.xlu0 %v1028_v36, %s9897_s16  ;;  %v1604_v36 = vsel %vm11923_vm11, 1.0, %v11962_v8  ;;  %vm1555_vm11 = vcmp.eq.s32.totalorder %v10069_v34, %v10049_v13 }
 0x41c   :  { %v1031_v37 = vpop.permute.xlu0 %1030 }
 0x41d   :  { %v1033_v40 = vsel %vm11950_vm14, 0.0, %v1031_v37  ;;  %v2238_v37 = vsub.f32 %v10095_v22, %v11961_v26 }
 0x41e   :  { %v1034_v41 = vsel %vm11949_vm15, %v1033_v40, 0.0  ;;  %v2244_v40 = vsub.f32 %v10097_v23, %v11960_v27 }
 0x41f   :  { %v1035_v42 = vmul.f32 %v1034_v41, %v9972_v53  ;;  %v2250_v41 = vsub.f32 %v10099_v24, %v11959_v28  ;;  %v2239_v46 = vand.u32 4294901760, %v2238_v37  ;;  %v10268_v37 = vadd.s32 80, %v10047_v12 }
 0x421   :  { %v10013_v43 = vadd.f32 %v1035_v42, %v9977_v57  ;;  %v1125_v57 = vsub.f32 %v1123_v48, %v1124_v49  ;;  %v2256_v42 = vsub.f32 %v10101_v25, %v11958_v29  ;;  %12040 = vst [vmem:[#allocation10_spill] sm:$0xff] %v10268_v37  ;;  %vm1560_vm14 = vcmp.eq.s32.totalorder %v10268_v37, %v10049_v13 }
 0x423   :  { %1043 = vrot.lane.b32.xlu0 %v10013_v43, %s9892_s14  ;;  %v1039_v44 = vrot.slane %v10013_v43, 4  ;;  %v1126_v63 = vand.u32 4294901760, %v1125_v57 }
 0x425   :  { %1040 = vrot.lane.b32.xlu1 %v1039_v44, %s9891_s13  ;;  %v10147_v44 = vsub.f32 %v1603_v33, %v1603_v33 }
 0x429   :  { %1048 = vperm.xlu1 %9837, %v1037_v45   ;;  %v10149_v45 = vsub.f32 %v1604_v36, %v1604_v36 }
 0x495   :  { %v1044_v50 = vpop.permute.xlu0 %1043 }
 0x496   :  { %v1053_v51 = vsel %vm11922_vm5, %v1044_v50, 0  ;;  %v11957_v50 = vand.u32 4294901760, %v10147_v44 }
 0x497   :  { %v1059_v54 = vand.u32 4294901760, %v1053_v51  ;;  %v1041_v55 = vpop.permute.xlu1 %1040 }
 0x498   :  { %v1045_v56 = vsel %vm11922_vm5, %v10013_v43, %v1041_v55  ;;  %v12030_v55 = vmov 0  ;;  %v2262_v57 = vsub.f32 %v10147_v44, %v11957_v50  ;;  %vm1554_vm5 = vcmp.eq.s32.totalorder %v10066_v31, %v10049_v13 }
 0x499   :  { %v1141_v58 = vsub.f32 %v1053_v51, %v1059_v54  ;;  %v1056_v59 = vand.u32 4294901760, %v1045_v56  ;;  %v11945_v51 = vand.u32 4294901760, %v10149_v45  ;;  %v12031_v55 = vsel %vm10163_vm7, 4294967295, %v12030_v55  ;;  %vm10199_vm8 = vmpackc.low %vm1555_vm11, %vm1554_vm5 }
 0x49a   :  { %12032 = vst [vmem:[#allocation6_spill] sm:$0xff] %v12031_v55  ;;  %9030 = vmatpush3.bf16.msk.msra.mxu1 %vm10199_vm8, %v11964_v32 }
 0x49b   :  { %v1142_v60 = vand.u32 4294901760, %v1141_v58  ;;  %v9005_v61 = vpack.c.bf16 %v1059_v54, %v1056_v59  ;;  %v1134_v62 = vsub.f32 %v1045_v56, %v1056_v59  ;;  %v10177_v59 = vadd.s32 48, %v10047_v12  ;;  %9031 = vmatprep.subr.bf16.mxu1 %v11968_v52 }
 0x49d   :  { %v1143_v0 = vsub.f32 %v1141_v58, %v1142_v60  ;;  %v1135_v1 = vand.u32 4294901760, %v1134_v62  ;;  %9006 = vmatpush3.bf16.msra.mxu0 %v9005_v61  ;;  %v9011_v6 = vpack.c.bf16 %v1141_v58, %v1134_v62  ;;  %v2268_v58 = vsub.f32 %v10149_v45, %v11945_v51 }
 0x49e   :  { %9007 = vmatprep.subr.bf16.mxu0 %v11968_v52  ;;  %vm11927_vm10 = vcmp.eq.s32.totalorder %v10177_v59, %v10055_v15 }
 0x49f   :  { %v1136_v2 = vsub.f32 %v1134_v62, %v1135_v1  ;;  %v1144_v3 = vand.u32 4294901760, %v1143_v0  ;;  %v9017_v7 = vpack.c.bf16 %v1142_v60, %v1135_v1  ;;  %v10180_v60 = vadd.s32 56, %v10047_v12 }
 0x4a0   :  { %7893 = vmatmul.mubr.f32.vlgmr.msra.gmra.mrb[4].mxu0 %v1126_v63  ;;  %v2263_v62 = vand.u32 4294901760, %v2262_v57  ;;  %v2269_v63 = vand.u32 4294901760, %v2268_v58  ;;  %v12033_v0 = vmov 0  ;;  %v1605_v1 = vsel %vm11927_vm10, 1.0, %v11962_v8 }
 0x4a1   :  { %v1137_v4 = vand.u32 4294901760, %v1136_v2  ;;  %7899 = vmatprep.mubr.msk.f32.mxu0 %vm11931_vm1, %v11962_v8  ;;  %v12034_v0 = vsel %vm10199_vm8, 4294967295, %v12033_v0  ;;  %vm11928_vm6 = vcmp.eq.s32.totalorder %v10180_v60, %v10055_v15  ;;  %vm1557_vm4 = vcmp.eq.s32.totalorder %v10180_v60, %v10049_v13 }
 0x4a2   :  { %12035 = vst [vmem:[#allocation7_spill] sm:$0xff] %v12034_v0  ;;  %v9197_v2 = vpack.c.bf16 %v2269_v63, %v2263_v62  ;;  %v1573_v29 = vsel %vm1557_vm4, 1.0, %v11962_v8 }
 0x4a3   :  { %v9008_v5 = vpack.c.bf16 %v1144_v3, %v1137_v4  ;;  %v1606_v3 = vsel %vm11928_vm6, 1.0, %v11962_v8  ;;  %v10213_v4 = vsub.f32 %v1605_v1, %v1605_v1  ;;  %vm1556_vm6 = vcmp.eq.s32.totalorder %v10177_v59, %v10049_v13 }
 0x4a4   :  { %v10510_v35 = vsub.f32 %v1573_v29, %v1573_v29 }
 0x4a5   :  { %9009 = vmatpush3.bf16.msra.mxu0 %v9008_v5  ;;  %v10218_v5 = vsub.f32 %v1606_v3, %v1606_v3 }
 0x4a6   :  { %9010 = vmatprep.subr.bf16.mxu0 %v11968_v52 }
 0x4a7   :  { %v11943_v10 = vand.u32 4294901760, %v10218_v5 }
 0x4a8   :  { %7900 = vmatmul.mubr.f32.vlgmr.msra.gmra.mrb[4].mxu0 %v1122_v47 }
 0x4a9   :  { %9012 = vmatpush3.bf16.msra.mxu0 %v9011_v6  ;;  %7906 = vmatprep.mubr.msk.f32.mxu0 %vm11931_vm1, %v11962_v8  ;;  %v10221_v6 = vadd.s32 72, %v10047_v12  ;;  %v2280_v21 = vsub.f32 %v10218_v5, %v11943_v10 }
 0x4aa   :  { %9013 = vmatprep.subr.bf16.mxu0 %v11968_v52 }
 0x4ab   :  { %12036 = vst [vmem:[#allocation8_spill] sm:$0xff] %v10221_v6  ;;  %vm11933_vm3 = vcmp.eq.s32.totalorder %v10221_v6, %v10055_v15 }
 0x4ac   :  { %v1608_v20 = vsel %vm11933_vm3, 1.0, %v11962_v8  ;;  %vm11936_vm3 = vcmp.eq.s32.totalorder %v10268_v37, %v10055_v15 }
 0x4ad   :  { %v10265_v36 = vsub.f32 %v1608_v20, %v1608_v20 }
 0x4b0   :  { %7907 = vmatmul.mubr.f32.vlgmr.msra.gmra.mrb[4].mxu0 %v1123_v48  ;;  %v2251_v48 = vand.u32 4294901760, %v2250_v41  ;;  %v10273_v41 = vadd.s32 88, %v10047_v12 }
 0x4b1   :  { %9015 = vmatpush3.bf16.msra.mxu0 %v9005_v61  ;;  %7913 = vmatprep.mubr.msk.f32.mxu0 %vm11931_vm1, %v11962_v8 }
 0x4b2   :  { %9016 = vmatprep.subr.bf16.mxu0 %v11968_v52  ;;  %12041 = vst [vmem:[#allocation11_spill] sm:$0xff] %v10273_v41 }
 0x4b8   :  { %7914 = vmatmul.mubr.f32.vlgmr.msra.gmra.mrb[4].mxu0 %v1124_v49  ;;  %v2257_v49 = vand.u32 4294901760, %v2256_v42  ;;  %v2281_v42 = vand.u32 4294901760, %v2280_v21 }
 0x4b9   :  { %9018 = vmatpush3.bf16.msra.mxu0 %v9017_v7  ;;  %7920 = vmatprep.mubr.msk.f32.mxu0 %vm11931_vm1, %v11962_v8  ;;  %v11944_v7 = vand.u32 4294901760, %v10213_v4 }
 0x4ba   :  { %9019 = vmatprep.subr.bf16.mxu0 %v11968_v52  ;;  %v9194_v56 = vpack.c.bf16 %v2257_v49, %v2251_v48  ;;  %v1609_v48 = vsel %vm11936_vm3, 1.0, %v11962_v8 }
 0x4bb   :  { %v2274_v19 = vsub.f32 %v10213_v4, %v11944_v7  ;;  %v10294_v58 = vsub.f32 %v1609_v48, %v1609_v48 }
 0x4bd   :  { %v11940_v1 = vand.u32 4294901760, %v10294_v58 }
 0x4c0   :  { %7921 = vmatmul.mubr.f32.vlgmr.msra.gmra.mrb[4].mxu0 %v1122_v47 }
 0x4c1   :  { %9021 = vmatpush3.bf16.msra.mxu0 %v9005_v61  ;;  %7927 = vmatprep.mubr.msk.f32.mxu0 %vm11931_vm1, %v11962_v8  ;;  %v10188_v61 = vadd.s32 64, %v10047_v12 }
 0x4c2   :  { %9190 = vmatprep.subr.bf16.mxu0 %v11968_v52 }
 0x4c3   :  { %vm11934_vm10 = vcmp.eq.s32.totalorder %v10188_v61, %v10055_v15 }
 0x4c4   :  { %v1607_v9 = vsel %vm11934_vm10, 1.0, %v11962_v8  ;;  %vm11935_vm10 = vcmp.eq.s32.totalorder %v10273_v41, %v10055_v15 }
 0x4c5   :  { %v10239_v11 = vsub.f32 %v1607_v9, %v1607_v9  ;;  %v1610_v57 = vsel %vm11935_vm10, 1.0, %v11962_v8  ;;  %v2298_v9 = vsub.f32 %v10294_v58, %v11940_v1 }
 0x4c6   :  { %v10296_v62 = vsub.f32 %v1610_v57, %v1610_v57  ;;  %v10316_v57 = vadd.s32 104, %v10047_v12 }
 0x4c7   :  { %v11942_v33 = vand.u32 4294901760, %v10239_v11  ;;  %v2299_v20 = vand.u32 4294901760, %v2298_v9 }
 0x4c8   :  { %7928 = vmatmul.mubr.f32.vlgmr.msra.gmra.mrb[4].mxu0 %v1122_v47  ;;  %v2245_v47 = vand.u32 4294901760, %v2244_v40  ;;  %v2275_v40 = vand.u32 4294901760, %v2274_v19  ;;  %12043 = vst [vmem:[#allocation13_spill] sm:$0xff] %v10316_v57  ;;  %vm11938_vm3 = vcmp.eq.s32.totalorder %v10316_v57, %v10055_v15 }
 0x4c9   :  { %8207 = vmatprep.mubr.msk.f32.mxu0 %vm11931_vm1, %v11962_v8  ;;  %vm10247_vm1 = vmpackc.low %vm1557_vm4, %vm1556_vm6  ;;  %vm12059_vm4 = vcmp.eq.s32.totalorder %v10188_v61, %v10049_v13 }
 0x4ca   :  { %v9191_v54 = vpack.c.bf16 %v2245_v47, %v2239_v46  ;;  %v12038_v18 = vsel %vm10247_vm1, 4294967295, %v12037_v18  ;;  %9033 = vmatpush3.bf16.msk.msra.mxu1 %vm10247_vm1, %v11964_v32  ;;  %v2286_v46 = vsub.f32 %v10239_v11, %v11942_v33  ;;  %v11941_v47 = vand.u32 4294901760, %v10265_v36 }
 0x4cb   :  { %12039 = vst [vmem:[#allocation9_spill] sm:$0xff] %v12038_v18  ;;  %9034 = vmatprep.subr.bf16.mxu1 %v11968_v52  ;;  %v9200_v49 = vpack.c.bf16 %v2281_v42, %v2275_v40  ;;  %v1049_v42 = vpop.permute.xlu1 %1048 }
 0x4cc   :  { %9192 = vmatpush3.bf16.msra.mxu0 %v9191_v54  ;;  %v2287_v54 = vand.u32 4294901760, %v2286_v46 }
 0x4cd   :  { %9193 = vmatprep.subr.bf16.mxu0 %v11968_v52 }
 0x4d0   :  { %9195 = vmatpush3.bf16.msra.mxu0 %v9194_v56  ;;  %v2292_v56 = vsub.f32 %v10265_v36, %v11941_v47 }
 0x4d1   :  { %9196 = vmatprep.subr.bf16.mxu0 %v11968_v52 }
 0x4d2   :  { %v2293_v63 = vand.u32 4294901760, %v2292_v56  ;;  %v10313_v56 = vadd.s32 96, %v10047_v12 }
 0x4d4   :  { %9198 = vmatpush3.bf16.msra.mxu0 %v9197_v2  ;;  %v11939_v2 = vand.u32 4294901760, %v10296_v62  ;;  %v9203_v3 = vpack.c.bf16 %v2293_v63, %v2287_v54  ;;  %12042 = vst [vmem:[#allocation12_spill] sm:$0xff] %v10313_v56  ;;  %vm11937_vm10 = vcmp.eq.s32.totalorder %v10313_v56, %v10055_v15 }
 0x4d5   :  { %9199 = vmatprep.subr.bf16.mxu0 %v11968_v52  ;;  %v1611_v63 = vsel %vm11937_vm10, 1.0, %v11962_v8 }
 0x4d6   :  { %v2304_v19 = vsub.f32 %v10296_v62, %v11939_v2  ;;  %v10330_v9 = vsub.f32 %v1611_v63, %v1611_v63 }
 0x4d8   :  { %9201 = vmatpush3.bf16.msra.mxu0 %v9200_v49  ;;  %v2305_v21 = vand.u32 4294901760, %v2304_v19 }
 0x4d9   :  { %9202 = vmatprep.subr.bf16.mxu0 %v11968_v52 }
 0x4da   :  { %v9206_v40 = vpack.c.bf16 %v2305_v21, %v2299_v20  ;;  %v10335_v20 = vadd.s32 112, %v10047_v12  ;;  %v10338_v21 = vadd.s32 120, %v10047_v12 }
 0x4dc   :  { %9204 = vmatpush3.bf16.msra.mxu0 %v9203_v3  ;;  %v1612_v3 = vsel %vm11938_vm3, 1.0, %v11962_v8  ;;  %12044 = vst [vmem:[#allocation14_spill] sm:$0xff] %v10335_v20  ;;  %12045 = vst [vmem:[#allocation15_spill] sm:$0xff] %v10338_v21  ;;  %vm11947_vm10 = vcmp.eq.s32.totalorder %v10335_v20, %v10055_v15  ;;  %vm11946_vm3 = vcmp.eq.s32.totalorder %v10338_v21, %v10055_v15 }
 0x4dd   :  { %9205 = vmatprep.subr.bf16.mxu0 %v11968_v52  ;;  %v10332_v19 = vsub.f32 %v1612_v3, %v1612_v3 }
 0x4e0   :  { %9207 = vmatpush3.bf16.msra.mxu0 %v9206_v40  ;;  %v11948_v40 = vand.u32 4294901760, %v10330_v9 }
 0x4e1   :  { %9208 = vmatprep.subr.bf16.mxu0 %v11968_v52 }
 0x59b   :  { %v1510_v46 = vpop.f32.mrb[4].mxu0 }
 0x59c   :  { %v10309_v48 = vadd.f32 %v1510_v46, %v1049_v42  ;;  %v7929_v49 = vpop.f32.mrb[5].mxu0  ;;  %v11955_v42 = vand.u32 4294901760, %v10332_v19  ;;  %v1613_v46 = vsel %vm11947_vm10, 1.0, %v11962_v8  ;;  %vm11951_vm10 = vcmp.eq.s32.totalorder %v10221_v6, %v10049_v13 }
 0x59d   :  { %v1614_v49 = vsel %vm11946_vm3, 1.0, %v11962_v8  ;;  %v10360_v3 = vsub.f32 %v1613_v46, %v1613_v46  ;;  %vm11952_vm3 = vcmp.eq.s32.totalorder %v10188_v61, %v10049_v13 }
 0x59e   :  { %v7098_v54 = vmul.f32 -1.442695, %v10309_v48  ;;  %v2316_v63 = vsub.f32 %v10332_v19, %v11955_v42  ;;  %v10362_v2 = vsub.f32 %v1614_v49, %v1614_v49  ;;  %vm10379_vm15 = vmpackc.low %vm11951_vm10, %vm11952_vm3  ;;  %vm1561_vm10 = vcmp.eq.s32.totalorder %v10273_v41, %v10049_v13 }
 0x59f   :  { %v11954_v10 = vand.u32 4294901760, %v10360_v3  ;;  %9036 = vmatpush3.bf16.msk.msra.mxu1 %vm10379_vm15, %v11964_v32  ;;  %vm10401_vm3 = vmpackc.low %vm1561_vm10, %vm1560_vm14 }
 0x5a0   :  { %9851 = vpow2.f32 %v7098_v54  ;;  %v2310_v54 = vsub.f32 %v10330_v9, %v11948_v40  ;;  %v2317_v33 = vand.u32 4294901760, %v2316_v63  ;;  %v11953_v7 = vand.u32 4294901760, %v10362_v2  ;;  %9037 = vmatprep.subr.bf16.mxu1 %v11968_v52 }
 0x5a1   :  { %v2322_v46 = vsub.f32 %v10360_v3, %v11954_v10  ;;  %v1567_v63 = vsel %vm1551_vm9, 1.0, %v11962_v8  ;;  %vm11956_vm9 = vcmp.eq.s32.totalorder %v10316_v57, %v10049_v13 }
 0x5a2   :  { %v2311_v47 = vand.u32 4294901760, %v2310_v54  ;;  %v2328_v49 = vsub.f32 %v10362_v2, %v11953_v7  ;;  %v1566_v54 = vsel %vm1550_vm2, 1.0, %v11962_v8  ;;  %vm1562_vm2 = vcmp.eq.s32.totalorder %v10313_v56, %v10049_v13 }
 0x5a3   :  { %9039 = vmatpush3.bf16.msk.msra.mxu1 %vm10401_vm3, %v11964_v32 }
 0x5a4   :  { %v9209_v40 = vpack.c.bf16 %v2317_v33, %v2311_v47  ;;  %v2329_v33 = vand.u32 4294901760, %v2328_v49  ;;  %v12049_v47 = vmov 0  ;;  %v1569_v49 = vsel %vm1553_vm0, 1.0, %v11962_v8  ;;  %9040 = vmatprep.subr.bf16.mxu1 %v11968_v52 }
 0x5a5   :  { %v12050_v47 = vsel %vm10401_vm3, 4294967295, %v12049_v47  ;;  %v10446_v10 = vsub.f32 %v1569_v49, %v1569_v49  ;;  %vm1564_vm0 = vcmp.eq.s32.totalorder %v10335_v20, %v10049_v13  ;;  %v12055_v49 = vmov 0 }
 0x5a6   :  { %9210 = vmatpush3.bf16.msra.mxu0 %v9209_v40  ;;  %12051 = vst [vmem:[#allocation17_spill] sm:$0xff] %v12050_v47 }
 0x5a7   :  { %9211 = vmatprep.subr.bf16.mxu0 %v11968_v52  ;;  %v11980_v27 = vand.u32 4294901760, %v10446_v10 }
 0x5a9   :  { %v1711_v39 = vsub.f32 %v10446_v10, %v11980_v27 }
 0x5aa   :  { %v9852_v1 = vpop.eup %9851 }
 0x5ab   :  { %v1517_v51 = vadd.f32 1.0, %v9852_v1  ;;  %v12046_v1 = vmov 0 }
 0x5ac   :  { %v12047_v1 = vsel %vm10379_vm15, 4294967295, %v12046_v1 }
 0x5ad   :  { %9853 = vrcp.f32 %v1517_v51  ;;  %12048 = vst [vmem:[#allocation16_spill] sm:$0xff] %v12047_v1  ;;  %v2323_v51 = vand.u32 4294901760, %v2322_v46  ;;  %v1568_v46 = vsel %vm1552_vm13, 1.0, %v11962_v8  ;;  %vm10438_vm13 = vmpackc.low %vm11956_vm9, %vm1562_vm2  ;;  %vm1565_vm9 = vcmp.eq.s32.totalorder %v10338_v21, %v10049_v13 }
 0x5ae   :  { %v10444_v7 = vsub.f32 %v1568_v46, %v1568_v46  ;;  %9042 = vmatpush3.bf16.msk.msra.mxu1 %vm10438_vm13, %v11964_v32  ;;  %v1571_v46 = vsel %vm1555_vm11, 1.0, %v11962_v8  ;;  %vm12063_vm11 = vcmask 1039360  }
 0x5af   :  { %v9212_v40 = vpack.c.bf16 %v2329_v33, %v2323_v51  ;;  %v10430_v51 = vsub.f32 %v1566_v54, %v1566_v54  ;;  %v12052_v33 = vmov 0  ;;  %v1570_v54 = vsel %vm1554_vm5, 1.0, %v11962_v8  ;;  %9043 = vmatprep.subr.bf16.mxu1 %v11968_v52  ;;  %vm10471_vm5 = vmpackc.low %vm1565_vm9, %vm1564_vm0 }
 0x5b0   :  { %v12053_v33 = vsel %vm10438_vm13, 4294967295, %v12052_v33  ;;  %v12056_v49 = vsel %vm10471_vm5, 4294967295, %v12055_v49  ;;  %v10475_v50 = vsub.f32 %v1570_v54, %v1570_v54  ;;  %v11981_v28 = vand.u32 4294901760, %v10444_v7 }
 0x5b1   :  { %9213 = vmatpush3.bf16.msra.mxu0 %v9212_v40  ;;  %12054 = vst [vmem:[#allocation18_spill] sm:$0xff] %v12053_v33  ;;  %v10442_v40 = vsub.f32 %v1567_v63, %v1567_v63  ;;  %12057 = vst [vmem:[#allocation19_spill] sm:$0xff] %v12056_v49  ;;  %v10493_v26 = vsub.f32 %v1571_v46, %v1571_v46  ;;  %v1712_v33 = vand.u32 4294901760, %v1711_v39 }
 0x5b2   :  { %9214 = vmatprep.subr.bf16.mxu0 %v11968_v52  ;;  %9045 = vmatpush3.bf16.msk.msra.mxu1 %vm10471_vm5, %v11964_v32  ;;  %v1705_v32 = vsub.f32 %v10444_v7, %v11981_v28  ;;  %v11982_v47 = vand.u32 4294901760, %v10475_v50 }
 0x5b3   :  { %v11975_v54 = vand.u32 4294901760, %v10442_v40  ;;  %9046 = vmatprep.subr.bf16.mxu1 %v11968_v52  ;;  %v12058_v52 = vmov 0.0  }
 0x5b4   :  { %v1576_v39 = vsel %vm1560_vm14, 1.0, %v12058_v52  ;;  %vm12061_vm14 = vcmp.eq.s32.totalorder %v10316_v57, %v10049_v13 }
 0x5b5   :  { %v10546_v1 = vsub.f32 %v1576_v39, %v1576_v39 }
 0x5b7   :  { %v9854_v42 = vpop.eup %9853 }
 0x5b8   :  { %v1520_v63 = vmul.f32 %v9854_v42, %v10309_v48  ;;  %v1572_v48 = vsel %vm1556_vm6, 1.0, %v11962_v8  ;;  %v11970_v42 = vand.u32 4294901760, %v10430_v51  ;;  %v1699_v8 = vsub.f32 %v10442_v40, %v11975_v54 }
 0x5b9   :  { %v10508_v46 = vsub.f32 %v1572_v48, %v1572_v48  ;;  %v1706_v54 = vand.u32 4294901760, %v1705_v32  ;;  %vm12060_vm6 = vcmp.eq.s32.totalorder %v10221_v6, %v10049_v13  ;;  %v11992_v48 = vand.u32 4294901760, %v10493_v26 }
 0x5ba   :  { %1522 = vrot.lane.b32.xlu0 %v1520_v63, %s9897_s16  ;;  %v1693_v63 = vsub.f32 %v10430_v51, %v11970_v42  ;;  %v1574_v42 = vsel %vm12059_vm4, 1.0, %v12058_v52  ;;  %v1700_v49 = vand.u32 4294901760, %v1699_v8  ;;  %v1575_v27 = vsel %vm12060_vm6, 1.0, %v12058_v52 }
 0x5bb   :  { %v10524_v28 = vpack.c.bf16 %v1712_v33, %v1706_v54  ;;  %v10529_v8 = vsub.f32 %v1574_v42, %v1574_v42  ;;  %v1577_v32 = vsel %vm1561_vm10, 1.0, %v12058_v52  ;;  %v10542_v33 = vsub.f32 %v1575_v27, %v1575_v27 }
 0x5bc   :  { %v1694_v38 = vand.u32 4294901760, %v1693_v63  ;;  %v1717_v63 = vsub.f32 %v10475_v50, %v11982_v47  ;;  %v11991_v42 = vand.u32 4294901760, %v10508_v46  ;;  %v11993_v54 = vand.u32 4294901760, %v10510_v35 }
 0x5bd   :  { %v10554_v55 = vsub.f32 %v1577_v32, %v1577_v32  ;;  %v1578_v27 = vsel %vm1562_vm2, 1.0, %v12058_v52  ;;  %vm12062_vm10 = vcmask 7168   ;;  %vm12064_vm2 = vmmov 0  }
 0x5be   :  { %v10522_v29 = vpack.c.bf16 %v1700_v49, %v1694_v38  ;;  %v1723_v38 = vsub.f32 %v10493_v26, %v11992_v48  ;;  %v1718_v49 = vand.u32 4294901760, %v1717_v63  ;;  %v1729_v18 = vsub.f32 %v10508_v46, %v11991_v42 }
 0x5bf   :  { %v1735_v0 = vsub.f32 %v10510_v35, %v11993_v54  ;;  %v1579_v63 = vsel %vm12061_vm14, 1.0, %v12058_v52  ;;  %v11999_v48 = vand.u32 4294901760, %v10529_v8  ;;  %v11998_v54 = vand.u32 4294901760, %v10542_v33 }
 0x5c0   :  { %v1724_v47 = vand.u32 4294901760, %v1723_v38  ;;  %v1730_v38 = vand.u32 4294901760, %v1729_v18  ;;  %v10576_v57 = vsub.f32 %v1578_v27, %v1578_v27  ;;  %v1581_v18 = vsel %vm1565_vm9, 1.0, %v12058_v52 }
 0x5c1   :  { %v1736_v42 = vand.u32 4294901760, %v1735_v0  ;;  %v1741_v30 = vsub.f32 %v10529_v8, %v11999_v48  ;;  %v1747_v56 = vsub.f32 %v10542_v33, %v11998_v54  ;;  %v1580_v0 = vsel %vm1564_vm0, 1.0, %v12058_v52 }
 0x5c2   :  { %v10564_v39 = vpack.c.bf16 %v1724_v47, %v1718_v49  ;;  %v10578_v47 = vsub.f32 %v1579_v63, %v1579_v63  ;;  %v12004_v54 = vand.u32 4294901760, %v10554_v55  ;;  %v10600_v21 = vsub.f32 %v1580_v0, %v1580_v0 }
 0x5c3   :  { %v10568_v32 = vpack.c.bf16 %v1736_v42, %v1730_v38  ;;  %v1742_v49 = vand.u32 4294901760, %v1741_v30  ;;  %v1748_v42 = vand.u32 4294901760, %v1747_v56  ;;  %v12003_v38 = vand.u32 4294901760, %v10546_v1 }
 0x5c4   :  { %v1759_v13 = vsub.f32 %v10554_v55, %v12004_v54  ;;  %v10602_v30 = vsub.f32 %v1581_v18, %v1581_v18  ;;  %vm12068_vm9 = vcmp.eq.s32.totalorder %v10047_v12, %v10055_v15  ;;  %vm12069_vm0 = vcmp.eq.s32.totalorder %v10052_v14, %v10055_v15 }
 0x5c5   :  { %v10590_v27 = vpack.c.bf16 %v1748_v42, %v1742_v49  ;;  %v1753_v48 = vsub.f32 %v10546_v1, %v12003_v38  ;;  %v12006_v49 = vand.u32 4294901760, %v10576_v57  ;;  %v12010_v42 = vand.u32 4294901760, %v10578_v47  ;;  %vm10710_vm4 = vmpackc.low %vm12069_vm0, %vm12068_vm9 }
 0x5c6   :  { %v1760_v20 = vand.u32 4294901760, %v1759_v13  ;;  %v12008_v13 = vand.u32 4294901760, %v10600_v21  ;;  %v12009_v54 = vand.u32 4294901760, %v10602_v30  ;;  %vm12073_vm6 = vcmp.eq.s32.totalorder %v10058_v16, %v10055_v15 }
 0x5c7   :  { %v1754_v56 = vand.u32 4294901760, %v1753_v48  ;;  %v1765_v38 = vsub.f32 %v10576_v57, %v12006_v49  ;;  %v1771_v0 = vsub.f32 %v10578_v47, %v12010_v42  ;;  %vm12074_vm14 = vcmp.eq.s32.totalorder %v10061_v17, %v10055_v15 }
 0x5c8   :  { %vm12078_vm9 = vcmp.eq.s32.totalorder %v10069_v34, %v10055_v15 }
 0x5c9   :  { %v10606_v41 = vpack.c.bf16 %v1760_v20, %v1754_v56  ;;  %v1766_v18 = vand.u32 4294901760, %v1765_v38  ;;  %v1772_v48 = vand.u32 4294901760, %v1771_v0  ;;  %v1777_v20 = vsub.f32 %v10600_v21, %v12008_v13 }
 0x5ca   :  { %v1783_v56 = vsub.f32 %v10602_v30, %v12009_v54  ;;  %v9071_v38 = vpack.c.bf16 %v10442_v40, %v10430_v51  ;;  %v9215_v13 = vpack.c.bf16 %v10097_v23, %v10095_v22 }
 0x5cb   :  { %v10618_v37 = vpack.c.bf16 %v1772_v48, %v1766_v18  ;;  %v1778_v49 = vand.u32 4294901760, %v1777_v20 }
 0x5cc   :  { %v1784_v63 = vand.u32 4294901760, %v1783_v56 }
 0x5ce   :  { %v10626_v6 = vpack.c.bf16 %v1784_v63, %v1778_v49  ;;  %v9089_v63 = vpack.c.bf16 %v10578_v47, %v10576_v57  ;;  %v9092_v49 = vpack.c.bf16 %v10602_v30, %v10600_v21 }
 0x62c   :  { %v1523_v56 = vpop.permute.xlu0 %1522 }
 0x62d   :  { %v1525_v54 = vsel %vm12062_vm10, 0.0, %v1523_v56  ;;  %v9218_v56 = vpack.c.bf16 %v10101_v25, %v10099_v24  ;;  %vm10727_vm10 = vmpackc.low %vm12074_vm14, %vm12073_vm6  ;;  %vm12081_vm6 = vcmp.eq.s32.totalorder %v10177_v59, %v10055_v15  ;;  %vm12082_vm14 = vcmp.eq.s32.totalorder %v10180_v60, %v10055_v15 }
 0x62e   :  { %v1526_v42 = vsel %vm12063_vm11, %v1525_v54, 0.0  ;;  %vm12077_vm11 = vcmp.eq.s32.totalorder %v10066_v31, %v10055_v15 }
 0x62f   :  { %v1527_v18 = vmul.f32 %v1526_v42, %v9972_v53  ;;  %v12065_v53 = vmov 0.0|0.0   ;;  %v9221_v42 = vpack.c.bf16 %v10149_v45, %v10147_v44  ;;  %vm10745_vm0 = vmpackc.low %vm12078_vm9, %vm12077_vm11  ;;  %vm12086_vm9 = vcmp.eq.s32.totalorder %v10188_v61, %v10055_v15  ;;  %v12092_v61 = vld [vmem:[#allocation10_spill] sm:$0xff] }
 0x630   :  { %vm10764_vm11 = vmpackc.low %vm12082_vm14, %vm12081_vm6 }
 0x631   :  { %v1528_v48 = vadd.f32 %v1527_v18, %v10013_v43  ;;  %v9224_v18 = vpack.c.bf16 %v10218_v5, %v10213_v4 }
 0x633   :  { %v10650_v0 = vand.u32 4294901760, %v1528_v48 }
 0x635   :  { %v10653_v20 = vsub.f32 %v1528_v48, %v10650_v0  ;;  %8208 = vmatmul.mubr.f32.vlgmr.msra.gmra.mrb[6].mxu0 %v10650_v0  ;;  %v9227_v48 = vpack.c.bf16 %v10265_v36, %v10239_v11 }
 0x636   :  { %9216 = vmatpush3.bf16.msra.mxu0 %v9215_v13  ;;  %8242 = vmatprep.mubr.msk.f32.mxu0 %vm12064_vm2, %v12058_v52 }
 0x637   :  { %9217 = vmatprep.subr.bf16.mxu0 %v12065_v53  ;;  %v10662_v43 = vand.u32 4294901760, %v10653_v20 }
 0x639   :  { %v1683_v54 = vsub.f32 %v10653_v20, %v10662_v43 }
 0x63a   :  { %9219 = vmatpush3.bf16.msra.mxu0 %v9218_v56  ;;  %v12087_v56 = vld [vmem:[#allocation8_spill] sm:$0xff] }
 0x63b   :  { %9220 = vmatprep.subr.bf16.mxu0 %v12065_v53  ;;  %v10669_v13 = vand.u32 4294901760, %v1683_v54  ;;  %vm12088_vm6 = vcmp.eq.s32.totalorder %v12087_v56, %v10055_v15  ;;  %v12089_v54 = vmov 0  ;;  %v12105_v56 = vpack.c.bf16 %v10542_v33, %v10529_v8 }
 0x63c   :  { %vm10784_vm14 = vmpackc.low %vm12088_vm6, %vm12086_vm9 }
 0x63d   :  { %7963 = vmatmul.mubr.f32.vlgmr.msra.gmra.mrb[2].mxu1 %v10669_v13  ;;  %v12090_v54 = vsel %vm10784_vm14, 4294967295, %v12089_v54 }
 0x63e   :  { %9048 = vmatpush3.bf16.msra.mxu1 %v10522_v29  ;;  %9222 = vmatpush3.bf16.msra.mxu0 %v9221_v42  ;;  %v9230_v29 = vpack.c.bf16 %v10296_v62, %v10294_v58  ;;  %v12091_v42 = vpack.c.bf16 %v10493_v26, %v10475_v50 }
 0x63f   :  { %9049 = vmatprep.subr.bf16.mxu1 %v12065_v53  ;;  %9223 = vmatprep.subr.bf16.mxu0 %v12065_v53 }
 0x640   :  { %7997 = vmatprep.mubr.msk.f32.mxu1 %vm12064_vm2, %v12058_v52 }
 0x642   :  { %9051 = vmatpush3.bf16.msra.mxu1 %v10524_v28  ;;  %9225 = vmatpush3.bf16.msra.mxu0 %v9224_v18  ;;  %v12066_v28 = vpack.c.bf16 %v10332_v19, %v10330_v9  ;;  %v12094_v18 = vld [vmem:[#allocation11_spill] sm:$0xff] }
 0x643   :  { %9052 = vmatprep.subr.bf16.mxu1 %v12065_v53  ;;  %9226 = vmatprep.subr.bf16.mxu0 %v12065_v53  ;;  %vm12095_vm9 = vcmp.eq.s32.totalorder %v12094_v18, %v10055_v15 }
 0x646   :  { %9054 = vmatpush3.bf16.msra.mxu1 %v10564_v39  ;;  %9228 = vmatpush3.bf16.msra.mxu0 %v9227_v48  ;;  %v12067_v39 = vpack.c.bf16 %v10362_v2, %v10360_v3  ;;  %v12096_v48 = vmov 0 }
 0x647   :  { %9055 = vmatprep.subr.bf16.mxu1 %v12065_v53  ;;  %9229 = vmatprep.subr.bf16.mxu0 %v12065_v53 }
 0x64a   :  { %9057 = vmatpush3.bf16.msra.mxu1 %v10568_v32  ;;  %9231 = vmatpush3.bf16.msra.mxu0 %v9230_v29  ;;  %v12098_v29 = vpack.c.bf16 %v10510_v35, %v10508_v46 }
 0x64b   :  { %9058 = vmatprep.subr.bf16.mxu1 %v12065_v53  ;;  %9232 = vmatprep.subr.bf16.mxu0 %v12065_v53 }
 0x64e   :  { %9060 = vmatpush3.bf16.msra.mxu1 %v10590_v27  ;;  %9234 = vmatpush3.bf16.msra.mxu0 %v12066_v28  ;;  %v12099_v28 = vld [vmem:[#allocation12_spill] sm:$0xff] }
 0x64f   :  { %9061 = vmatprep.subr.bf16.mxu1 %v12065_v53  ;;  %9235 = vmatprep.subr.bf16.mxu0 %v12065_v53 }
 0x652   :  { %9063 = vmatpush3.bf16.msra.mxu1 %v10606_v41  ;;  %9237 = vmatpush3.bf16.msra.mxu0 %v12067_v39  ;;  %v12072_v41 = vmov 1.0|1.0   ;;  %v12101_v39 = vld [vmem:[#allocation13_spill] sm:$0xff] }
 0x653   :  { %9064 = vmatprep.subr.bf16.mxu1 %v12065_v53  ;;  %9238 = vmatprep.subr.bf16.mxu0 %v12065_v53 }
 0x655   :  { %8243 = vmatmul.mubr.f32.vlgmr.msra.gmra.mrb[6].mxu0 %v10653_v20 }
 0x656   :  { %9066 = vmatpush3.bf16.msra.mxu1 %v10618_v37  ;;  %9240 = vmatpush3.bf16.msk.msra.mxu0 %vm10710_vm4, %v12072_v41 }
 0x657   :  { %9067 = vmatprep.subr.bf16.mxu1 %v12065_v53  ;;  %9241 = vmatprep.subr.bf16.mxu0 %v12065_v53 }
 0x658   :  { %8277 = vmatprep.mubr.msk.f32.mxu0 %vm12064_vm2, %v12058_v52 }
 0x65a   :  { %9069 = vmatpush3.bf16.msra.mxu1 %v10626_v6  ;;  %9243 = vmatpush3.bf16.msk.msra.mxu0 %vm10727_vm10, %v12072_v41  ;;  %v12083_v6 = vmov 0 }
 0x65b   :  { %9070 = vmatprep.subr.bf16.mxu1 %v12065_v53  ;;  %9244 = vmatprep.subr.bf16.mxu0 %v12065_v53  ;;  %v12084_v6 = vsel %vm10764_vm11, 4294967295, %v12083_v6 }
 0x65d   :  { %7998 = vmatmul.mubr.f32.vlgmr.msra.gmra.mrb[2].mxu1 %v10650_v0 }
 0x65e   :  { %9072 = vmatpush3.bf16.msra.mxu1 %v9071_v38  ;;  %9246 = vmatpush3.bf16.msk.msra.mxu0 %vm10745_vm0, %v12072_v41  ;;  %v12085_v38 = vpack.c.bf16 %v10446_v10, %v10444_v7 }
 0x65f   :  { %9073 = vmatprep.subr.bf16.mxu1 %v12065_v53  ;;  %9247 = vmatprep.subr.bf16.mxu0 %v12065_v53 }
 0x660   :  { %8032 = vmatprep.mubr.msk.f32.mxu1 %vm12064_vm2, %v12058_v52 }
 0x662   :  { %9075 = vmatpush3.bf16.msra.mxu1 %v12085_v38  ;;  %9249 = vmatpush3.bf16.msk.msra.mxu0 %vm10764_vm11, %v12072_v41  ;;  %vm12093_vm11 = vcmp.eq.s32.totalorder %v12092_v61, %v10055_v15  ;;  %v12108_v61 = vld [vmem:[#allocation15_spill] sm:$0xff] }
 0x663   :  { %9076 = vmatprep.subr.bf16.mxu1 %v12065_v53  ;;  %9250 = vmatprep.subr.bf16.mxu0 %v12065_v53  ;;  %vm10802_vm6 = vmpackc.low %vm12095_vm9, %vm12093_vm11  ;;  %vm12102_vm11 = vcmp.eq.s32.totalorder %v12101_v39, %v10055_v15  ;;  %v12114_v39 = vand.u32 4294901760, %v10097_v23  ;;  %v12118_v23 = vand.u32 4294901760, %v10149_v45  ;;  %v12123_v45 = vand.u32 4294901760, %v10239_v11 }
 0x664   :  { %v12097_v48 = vsel %vm10802_vm6, 4294967295, %v12096_v48 }
 0x666   :  { %9078 = vmatpush3.bf16.msra.mxu1 %v12091_v42  ;;  %9252 = vmatpush3.bf16.msk.msra.mxu0 %vm10784_vm14, %v12072_v41  ;;  %vm12100_vm14 = vcmp.eq.s32.totalorder %v12099_v28, %v10055_v15  ;;  %v12106_v42 = vld [vmem:[#allocation14_spill] sm:$0xff]  ;;  %v12113_v28 = vand.u32 4294901760, %v10095_v22  ;;  %v12117_v22 = vand.u32 4294901760, %v10147_v44 }
 0x667   :  { %9079 = vmatprep.subr.bf16.mxu1 %v12065_v53  ;;  %9253 = vmatprep.subr.bf16.mxu0 %v12065_v53  ;;  %vm10820_vm9 = vmpackc.low %vm12102_vm11, %vm12100_vm14  ;;  %vm12109_vm14 = vcmp.eq.s32.totalorder %v12108_v61, %v10055_v15 }
 0x66a   :  { %9081 = vmatpush3.bf16.msra.mxu1 %v12098_v29  ;;  %9255 = vmatpush3.bf16.msk.msra.mxu0 %vm10802_vm6, %v12072_v41  ;;  %vm12107_vm6 = vcmp.eq.s32.totalorder %v12106_v42, %v10055_v15  ;;  %v12112_v29 = vpack.c.bf16 %v10554_v55, %v10546_v1  ;;  %v12115_v15 = vand.u32 4294901760, %v10099_v24  ;;  %v12116_v42 = vand.u32 4294901760, %v10101_v25 }
 0x66b   :  { %9082 = vmatprep.subr.bf16.mxu1 %v12065_v53  ;;  %9256 = vmatprep.subr.bf16.mxu0 %v12065_v53  ;;  %vm10838_vm11 = vmpackc.low %vm12109_vm14, %vm12107_vm6  ;;  %v9269_v24 = vpack.c.bf16 %v12118_v23, %v12117_v22  ;;  %v12138_v23 = vand.u32 4294901760, %v10442_v40  ;;  %vm12141_vm6 = vnez %v12084_v6  ;;  %v12143_v40 = vand.u32 4294901760, %v10493_v26 }
 0x66c   :  { %v9266_v61 = vpack.c.bf16 %v12116_v42, %v12115_v15  ;;  %v12130_v15 = vand.u32 4294901760, %v10332_v19  ;;  %vm12144_vm14 = vnez %v12090_v54  ;;  %v12148_v26 = vand.u32 4294901760, %v10529_v8 }
 0x66d   :  { %v12152_v8 = vand.u32 4294901760, %v10576_v57  ;;  %v9901_v54 = vmov 24  }
 0x66e   :  { %9084 = vmatpush3.bf16.msra.mxu1 %v12105_v56  ;;  %9258 = vmatpush3.bf16.msk.msra.mxu0 %vm10820_vm9, %v12072_v41  ;;  %v9263_v56 = vpack.c.bf16 %v12114_v39, %v12113_v28  ;;  %v12126_v28 = vand.u32 4294901760, %v10294_v58  ;;  %v12127_v39 = vand.u32 4294901760, %v10296_v62  ;;  %v12132_v62 = vand.u32 4294901760, %v10360_v3 }
 0x66f   :  { %9085 = vmatprep.subr.bf16.mxu1 %v12065_v53  ;;  %9259 = vmatprep.subr.bf16.mxu0 %v12065_v53  ;;  %v12137_v3 = vand.u32 4294901760, %v10430_v51  ;;  %v12142_v51 = vand.u32 4294901760, %v10475_v50  ;;  %v12149_v50 = vand.u32 4294901760, %v10542_v33  ;;  %v12153_v33 = vand.u32 4294901760, %v10578_v47 }
 0x670   :  { %9838 = vset.pattern.permute.xlu1 %v9901_v54 }
 0x672   :  { %9087 = vmatpush3.bf16.msra.mxu1 %v12112_v29  ;;  %9261 = vmatpush3.bf16.msk.msra.mxu0 %vm10838_vm11, %v12072_v41 }
 0x673   :  { %9088 = vmatprep.subr.bf16.mxu1 %v12065_v53  ;;  %9262 = vmatprep.subr.bf16.mxu0 %v12065_v53 }
 0x675   :  { %8278 = vmatmul.mubr.f32.vlgmr.msra.gmra.mrb[6].mxu0 %v10662_v43 }
 0x676   :  { %9090 = vmatpush3.bf16.msra.mxu1 %v9089_v63  ;;  %9264 = vmatpush3.bf16.msra.mxu0 %v9263_v56  ;;  %v12120_v63 = vand.u32 4294901760, %v10213_v4  ;;  %v9278_v56 = vpack.c.bf16 %v12127_v39, %v12126_v28  ;;  %v9137_v28 = vpack.c.bf16 %v12153_v33, %v12152_v8 }
 0x677   :  { %9091 = vmatprep.subr.bf16.mxu1 %v12065_v53  ;;  %9265 = vmatprep.subr.bf16.mxu0 %v12065_v53 }
 0x678   :  { %8312 = vmatprep.mubr.msk.f32.mxu0 %vm12064_vm2, %v12058_v52 }
 0x67a   :  { %9093 = vmatpush3.bf16.msra.mxu1 %v9092_v49  ;;  %9267 = vmatpush3.bf16.msra.mxu0 %v9266_v61  ;;  %v12121_v49 = vand.u32 4294901760, %v10218_v5  ;;  %v12133_v61 = vand.u32 4294901760, %v10362_v2 }
 0x67b   :  { %9094 = vmatprep.subr.bf16.mxu1 %v12065_v53  ;;  %9268 = vmatprep.subr.bf16.mxu0 %v12065_v53 }
 0x67c   :  { %v9272_v29 = vpack.c.bf16 %v12121_v49, %v12120_v63  ;;  %v9284_v22 = vpack.c.bf16 %v12133_v61, %v12132_v62  ;;  %v12139_v63 = vand.u32 4294901760, %v10444_v7  ;;  %v12140_v49 = vand.u32 4294901760, %v10446_v10 }
 0x67d   :  { %8033 = vmatmul.mubr.f32.vlgmr.msra.gmra.mrb[2].mxu1 %v10653_v20  ;;  %v12124_v20 = vand.u32 4294901760, %v10265_v36  ;;  %v12129_v36 = vand.u32 4294901760, %v10330_v9  ;;  %v9125_v7 = vpack.c.bf16 %v12143_v40, %v12142_v51  ;;  %v12145_v10 = vand.u32 4294901760, %v10508_v46 }
 0x67e   :  { %9096 = vmatpush3.bf16.msk.msra.mxu1 %vm10119_vm12, %v12072_v41  ;;  %9270 = vmatpush3.bf16.msra.mxu0 %v9269_v24  ;;  %v9119_v24 = vpack.c.bf16 %v12138_v23, %v12137_v3  ;;  %v12151_v46 = vand.u32 4294901760, %v10554_v55  ;;  %v12154_v55 = vand.u32 4294901760, %v10600_v21 }
 0x67f   :  { %9097 = vmatprep.subr.bf16.mxu1 %v12065_v53  ;;  %9271 = vmatprep.subr.bf16.mxu0 %v12065_v53  ;;  %v9275_v4 = vpack.c.bf16 %v12124_v20, %v12123_v45  ;;  %v9281_v42 = vpack.c.bf16 %v12130_v15, %v12129_v36  ;;  %v9131_v20 = vpack.c.bf16 %v12149_v50, %v12148_v26 }
 0x680   :  { %8067 = vmatprep.mubr.msk.f32.mxu1 %vm12064_vm2, %v12058_v52 }
 0x682   :  { %9099 = vmatpush3.bf16.msk.msra.mxu1 %vm10163_vm7, %v12072_v41  ;;  %9273 = vmatpush3.bf16.msra.mxu0 %v9272_v29  ;;  %v9122_v29 = vpack.c.bf16 %v12140_v49, %v12139_v63 }
 0x683   :  { %9100 = vmatprep.subr.bf16.mxu1 %v12065_v53  ;;  %9274 = vmatprep.subr.bf16.mxu0 %v12065_v53 }
 0x686   :  { %9102 = vmatpush3.bf16.msk.msra.mxu1 %vm10199_vm8, %v12072_v41  ;;  %9276 = vmatpush3.bf16.msra.mxu0 %v9275_v4 }
 0x687   :  { %9103 = vmatprep.subr.bf16.mxu1 %v12065_v53  ;;  %9277 = vmatprep.subr.bf16.mxu0 %v12065_v53 }
 0x68a   :  { %9105 = vmatpush3.bf16.msk.msra.mxu1 %vm10247_vm1, %v12072_v41  ;;  %9279 = vmatpush3.bf16.msra.mxu0 %v9278_v56 }
 0x68b   :  { %9106 = vmatprep.subr.bf16.mxu1 %v12065_v53  ;;  %9280 = vmatprep.subr.bf16.mxu0 %v12065_v53 }
 0x68e   :  { %9108 = vmatpush3.bf16.msk.msra.mxu1 %vm10379_vm15, %v12072_v41  ;;  %9282 = vmatpush3.bf16.msra.mxu0 %v9281_v42 }
 0x68f   :  { %9109 = vmatprep.subr.bf16.mxu1 %v12065_v53  ;;  %9283 = vmatprep.subr.bf16.mxu0 %v12065_v53 }
 0x692   :  { %9111 = vmatpush3.bf16.msk.msra.mxu1 %vm10401_vm3, %v12072_v41  ;;  %9285 = vmatpush3.bf16.msra.mxu0 %v9284_v22 }
 0x693   :  { %9112 = vmatprep.subr.bf16.mxu1 %v12065_v53  ;;  %9286 = vmatprep.subr.bf16.mxu0 %v12065_v53 }
 0x695   :  { %8313 = vmatmul.mubr.f32.vlgmr.msra.gmra.mrb[6].mxu0 %v10650_v0 }
 0x696   :  { %9114 = vmatpush3.bf16.msk.msra.mxu1 %vm10438_vm13, %v12072_v41  ;;  %9288 = vmatpush3.bf16.msk.msra.mxu0 %vm10710_vm4, %v12072_v41 }
 0x697   :  { %9115 = vmatprep.subr.bf16.mxu1 %v12065_v53  ;;  %9289 = vmatprep.subr.bf16.mxu0 %v12065_v53 }
 0x698   :  { %8347 = vmatprep.mubr.msk.f32.mxu0 %vm12064_vm2, %v12058_v52 }
 0x69a   :  { %9117 = vmatpush3.bf16.msk.msra.mxu1 %vm10471_vm5, %v12072_v41  ;;  %9291 = vmatpush3.bf16.msk.msra.mxu0 %vm10727_vm10, %v12072_v41 }
 0x69b   :  { %9118 = vmatprep.subr.bf16.mxu1 %v12065_v53  ;;  %9292 = vmatprep.subr.bf16.mxu0 %v12065_v53 }
 0x69d   :  { %8068 = vmatmul.mubr.f32.vlgmr.msra.gmra.mrb[2].mxu1 %v10662_v43  ;;  %v12146_v43 = vand.u32 4294901760, %v10510_v35  ;;  %v12150_v35 = vand.u32 4294901760, %v10546_v1  ;;  %v12155_v1 = vand.u32 4294901760, %v10602_v30 }
 0x69e   :  { %9120 = vmatpush3.bf16.msra.mxu1 %v9119_v24  ;;  %9294 = vmatpush3.bf16.msk.msra.mxu0 %vm10745_vm0, %v12072_v41 }
 0x69f   :  { %9121 = vmatprep.subr.bf16.mxu1 %v12065_v53  ;;  %9295 = vmatprep.subr.bf16.mxu0 %v12065_v53  ;;  %v9128_v45 = vpack.c.bf16 %v12146_v43, %v12145_v10  ;;  %v9134_v4 = vpack.c.bf16 %v12151_v46, %v12150_v35  ;;  %v9140_v39 = vpack.c.bf16 %v12155_v1, %v12154_v55  ;;  %v12160_v1 = vld [vmem:[#allocation3_spill] sm:$0xff] }
 0x6a0   :  { %8102 = vmatprep.mubr.msk.f32.mxu1 %vm12064_vm2, %v12058_v52 }
 0x6a2   :  { %9123 = vmatpush3.bf16.msra.mxu1 %v9122_v29  ;;  %9297 = vmatpush3.bf16.msk.msra.mxu0 %vm12141_vm6, %v12072_v41  ;;  %vm12147_vm6 = vnez %v12097_v48 }
 0x6a3   :  { %9124 = vmatprep.subr.bf16.mxu1 %v12065_v53  ;;  %9298 = vmatprep.subr.bf16.mxu0 %v12065_v53 }
 0x6a6   :  { %9126 = vmatpush3.bf16.msra.mxu1 %v9125_v7  ;;  %9300 = vmatpush3.bf16.msk.msra.mxu0 %vm12144_vm14, %v12072_v41 }
 0x6a7   :  { %9127 = vmatprep.subr.bf16.mxu1 %v12065_v53  ;;  %9301 = vmatprep.subr.bf16.mxu0 %v12065_v53 }
 0x6aa   :  { %9129 = vmatpush3.bf16.msra.mxu1 %v9128_v45  ;;  %9303 = vmatpush3.bf16.msk.msra.mxu0 %vm12147_vm6, %v12072_v41 }
 0x6ab   :  { %9130 = vmatprep.subr.bf16.mxu1 %v12065_v53  ;;  %9304 = vmatprep.subr.bf16.mxu0 %v12065_v53 }
 0x6ae   :  { %9132 = vmatpush3.bf16.msra.mxu1 %v9131_v20  ;;  %9306 = vmatpush3.bf16.msk.msra.mxu0 %vm10820_vm9, %v12072_v41 }
 0x6af   :  { %9133 = vmatprep.subr.bf16.mxu1 %v12065_v53  ;;  %9307 = vmatprep.subr.bf16.mxu0 %v12065_v53 }
 0x6b2   :  { %9135 = vmatpush3.bf16.msra.mxu1 %v9134_v4  ;;  %9309 = vmatpush3.bf16.msk.msra.mxu0 %vm10838_vm11, %v12072_v41 }
 0x6b3   :  { %9136 = vmatprep.subr.bf16.mxu1 %v12065_v53  ;;  %9328 = vmatprep.subr.bf16.mxu0 %v12065_v53 }
 0x6b5   :  { %8348 = vmatmul.mubr.f32.vlgmr.msra.gmra.mrb[6].mxu0 %v10650_v0 }
 0x6b6   :  { %9138 = vmatpush3.bf16.msra.mxu1 %v9137_v28  ;;  %8410 = vmatprep.mubr.msk.f32.mxu0 %vm12064_vm2, %v12058_v52 }
 0x6b7   :  { %9139 = vmatprep.subr.bf16.mxu1 %v12065_v53 }
 0x6ba   :  { %9141 = vmatpush3.bf16.msra.mxu1 %v9140_v39 }
 0x6bb   :  { %9142 = vmatprep.subr.bf16.mxu1 %v12065_v53 }
 0x6bd   :  { %8103 = vmatmul.mubr.f32.vlgmr.msra.gmra.mrb[2].mxu1 %v10650_v0 }
 0x6be   :  { %9144 = vmatpush3.bf16.msk.msra.mxu1 %vm10119_vm12, %v12072_v41  ;;  %8137 = vmatprep.mubr.msk.f32.mxu1 %vm12064_vm2, %v12058_v52  ;;  %vm25_vm12 = vcmp.ge.s32.totalorder %v12160_v1, 1 }
 0x6bf   :  { %9145 = vmatprep.subr.bf16.mxu1 %v12065_v53 }
 0x6c2   :  { %9147 = vmatpush3.bf16.msk.msra.mxu1 %vm10163_vm7, %v12072_v41  ;;  %vm12157_vm7 = vcmask 1043456  }
 0x6c3   :  { %9148 = vmatprep.subr.bf16.mxu1 %v12065_v53 }
 0x6c6   :  { %9150 = vmatpush3.bf16.msk.msra.mxu1 %vm10199_vm8, %v12072_v41 }
 0x6c7   :  { %9151 = vmatprep.subr.bf16.mxu1 %v12065_v53 }
 0x6ca   :  { %9153 = vmatpush3.bf16.msk.msra.mxu1 %vm10247_vm1, %v12072_v41  ;;  %vm12156_vm1 = vnez %v12084_v6 }
 0x6cb   :  { %9154 = vmatprep.subr.bf16.mxu1 %v12065_v53 }
 0x6ce   :  { %9156 = vmatpush3.bf16.msk.msra.mxu1 %vm10379_vm15, %v12072_v41  ;;  %vm2730_vm15 = vcmask 195584  }
 0x6cf   :  { %9157 = vmatprep.subr.bf16.mxu1 %v12065_v53 }
 0x6d2   :  { %9159 = vmatpush3.bf16.msk.msra.mxu1 %vm10401_vm3, %v12072_v41  ;;  %vm12158_vm3 = vmmov %vm12157_vm7 }
 0x6d3   :  { %9160 = vmatprep.subr.bf16.mxu1 %v12065_v53  ;;  %vm12159_vm8 = vmmov %vm12158_vm3 }
 0x6d6   :  { %9162 = vmatpush3.bf16.msk.msra.mxu1 %vm10438_vm13, %v12072_v41  ;;  %vm26_vm13 = vcmp.le.s32.totalorder %v12160_v1, 29 }
 0x6d7   :  { %9163 = vmatprep.subr.bf16.mxu1 %v12065_v53 }
 0x6da   :  { %9165 = vmatpush3.bf16.msk.msra.mxu1 %vm10471_vm5, %v12072_v41  ;;  %vm27_vm5 = vmand %vm25_vm12, %vm26_vm13 }
 0x6db   :  { %9166 = vmatprep.subr.bf16.mxu1 %v12065_v53  ;;  %v11135_v39 = vsel %vm27_vm5, 1.0, %v12058_v52 }
 0x6dd   :  { %8138 = vmatmul.mubr.f32.vlgmr.msra.gmra.mrb[2].mxu1 %v10650_v0 }
 0x6de   :  { %9168 = vmatpush3.bf16.msk.msra.mxu1 %vm10710_vm4, %v12072_v41  ;;  %8172 = vmatprep.mubr.msk.f32.mxu1 %vm12064_vm2, %v12058_v52  ;;  %vm3217_vm4 = vcmask 498688  }
 0x6df   :  { %9169 = vmatprep.subr.bf16.mxu1 %v12065_v53 }
 0x6e2   :  { %9171 = vmatpush3.bf16.msk.msra.mxu1 %vm10727_vm10, %v12072_v41  ;;  %vm12161_vm10 = vcmask 7168  }
 0x6e3   :  { %9172 = vmatprep.subr.bf16.mxu1 %v12065_v53 }
 0x6e6   :  { %9174 = vmatpush3.bf16.msk.msra.mxu1 %vm10745_vm0, %v12072_v41  ;;  %vm12162_vm0 = vmmov %vm12161_vm10 }
 0x6e7   :  { %9175 = vmatprep.subr.bf16.mxu1 %v12065_v53 }
 0x6ea   :  { %9177 = vmatpush3.bf16.msk.msra.mxu1 %vm12156_vm1, %v12072_v41 }
 0x6eb   :  { %9178 = vmatprep.subr.bf16.mxu1 %v12065_v53 }
 0x6ee   :  { %9180 = vmatpush3.bf16.msk.msra.mxu1 %vm12144_vm14, %v12072_v41 }
 0x6ef   :  { %9181 = vmatprep.subr.bf16.mxu1 %v12065_v53 }
 0x6f2   :  { %9183 = vmatpush3.bf16.msk.msra.mxu1 %vm12147_vm6, %v12072_v41 }
 0x6f3   :  { %9184 = vmatprep.subr.bf16.mxu1 %v12065_v53 }
 0x6f6   :  { %9186 = vmatpush3.bf16.msk.msra.mxu1 %vm10820_vm9, %v12072_v41 }
 0x6f7   :  { %9187 = vmatprep.subr.bf16.mxu1 %v12065_v53 }
 0x6fa   :  { %9189 = vmatpush3.bf16.msk.msra.mxu1 %vm10838_vm11, %v12072_v41 }
 0x6fb   :  { %9310 = vmatprep.subr.bf16.mxu1 %v12065_v53 }
 0x6fd   :  { %8173 = vmatmul.mubr.f32.vlgmr.msra.gmra.mrb[4].mxu1 %v10669_v13  ;;  %v2705_v13 = vld [vmem:[%s11919_s1 + $0xc] sm:$0xff] }
 0x6fe   :  { %8356 = vmatprep.mubr.msk.f32.mxu1 %vm12064_vm2, %v12058_v52  ;;  %v2731_v48 = vsel %vm2730_vm15, %v2705_v13, 0 }
 0x6ff   :  { %v11099_v38 = vand.u32 4294901760, %v2731_v48 }
 0x701   :  { %v2802_v25 = vsub.f32 %v2731_v48, %v11099_v38 }
 0x703   :  { %v2803_v56 = vand.u32 4294901760, %v2802_v25 }
 0x705   :  { %v2804_v58 = vsub.f32 %v2802_v25, %v2803_v56 }
 0x707   :  { %v2805_v24 = vand.u32 4294901760, %v2804_v58 }
 0x788   :  { %v2701_v57 = vpop.f32.mrb[6].mxu0 }
 0x789   :  { %v8349_v21 = vpop.f32.mrb[7].mxu0 }
 0x7b0   :  { %v2156_v47 = vpop.f32.mrb[2].mxu1 }
 0x7b1   :  { %2710 = vrot.lane.b32.xlu1 %v2156_v47, %s9891_s13  ;;  %v8139_v30 = vpop.f32.mrb[3].mxu1 }
 0x7b5   :  { %2716 = vrot.lane.b32.xlu1 %v2156_v47, %s9892_s14 }
 0x7b9   :  { %2727 = vperm.xlu1 %9838, %v2705_v13  }
 0x7d0   :  { %v2231_v0 = vpop.f32.mrb[4].mxu1 }
 0x7d1   :  { %v9686_v32 = vadd.f32 %v2701_v57, %v2231_v0  ;;  %v8174_v27 = vpop.f32.mrb[5].mxu1  ;;  %v3220_v0 = vld [vmem:[%s11919_s1 + $0x14] sm:$0xff] }
 0x7d3   :  { %v2707_v37 = vrot.slane %v9686_v32, 4  ;;  %v3233_v32 = vsel %vm2730_vm15, %v3220_v0, 0 }
 0x7d4   :  { %v3303_v27 = vand.u32 4294901760, %v3233_v32 }
 0x7d5   :  { %v2722_v6 = vsel %vm12157_vm7, %v2156_v47, %v2707_v37  ;;  %2713 = vrot.lane.b32.xlu0 %v2707_v37, %s9891_s13 }
 0x7d6   :  { %v2734_v18 = vand.u32 4294901760, %v2722_v6 }
 0x7d8   :  { %v2813_v44 = vsub.f32 %v2722_v6, %v2734_v18  ;;  %v3304_v6 = vsub.f32 %v3233_v32, %v3303_v27 }
 0x7d9   :  { %2719 = vrot.lane.b32.xlu0 %v2707_v37, %s9892_s14 }
 0x7da   :  { %v2814_v15 = vand.u32 4294901760, %v2813_v44  ;;  %v3305_v54 = vand.u32 4294901760, %v3304_v6 }
 0x7dc   :  { %v2815_v23 = vsub.f32 %v2813_v44, %v2814_v15 }
 0x7de   :  { %v2816_v40 = vand.u32 4294901760, %v2815_v23 }
 0x823   :  { %v2711_v5 = vpop.permute.xlu1 %2710 }
 0x827   :  { %v2717_v62 = vpop.permute.xlu1 %2716 }
 0x838   :  { %v2728_v50 = vpop.permute.xlu1 %2727 }
 0x847   :  { %v2714_v11 = vpop.permute.xlu0 %2713 }
 0x848   :  { %v2723_v36 = vsel %vm12158_vm3, %v2711_v5, %v2714_v11  ;;  %v3306_v5 = vsub.f32 %v3304_v6, %v3305_v54 }
 0x849   :  { %v2737_v42 = vand.u32 4294901760, %v2723_v36 }
 0x84a   :  { %v3307_v58 = vand.u32 4294901760, %v3306_v5 }
 0x84b   :  { %v9311_v61 = vpack.c.bf16 %v2737_v42, %v2734_v18  ;;  %v2820_v22 = vsub.f32 %v2723_v36, %v2737_v42  ;;  %v2720_v9 = vpop.permute.xlu0 %2719 }
 0x84c   :  { %v2724_v19 = vsel %vm12159_vm8, %v2717_v62, %v2720_v9 }
 0x84d   :  { %v2821_v2 = vand.u32 4294901760, %v2820_v22  ;;  %v2740_v3 = vand.u32 4294901760, %v2724_v19  ;;  %9312 = vmatpush3.bf16.msra.mxu1 %v9311_v61  ;;  %v9317_v45 = vpack.c.bf16 %v2820_v22, %v2813_v44 }
 0x84e   :  { %8354 = vmatprep.subr.mxu1 %v12058_v52 }
 0x84f   :  { %v2822_v63 = vsub.f32 %v2820_v22, %v2821_v2  ;;  %v2827_v49 = vsub.f32 %v2724_v19, %v2740_v3  ;;  %v9323_v26 = vpack.c.bf16 %v2821_v2, %v2814_v15 }
 0x851   :  { %v2823_v29 = vand.u32 4294901760, %v2822_v63  ;;  %v2828_v51 = vand.u32 4294901760, %v2827_v49  ;;  %8355 = vmatpush3.msra.mxu1 %v2740_v3 }
 0x852   :  { %8357 = vmatmul.mubr.f32.vlgmr.msra.gmra.mrb[6].mxu1 %v2805_v24  ;;  %9313 = vmatprep.subr.bf16.mxu1 %v12065_v53 }
 0x853   :  { %v2829_v7 = vsub.f32 %v2827_v49, %v2828_v51  ;;  %v9314_v10 = vpack.c.bf16 %v2823_v29, %v2816_v40  ;;  %8365 = vmatprep.mubr.msk.f32.mxu1 %vm12064_vm2, %v12058_v52 }
 0x855   :  { %9315 = vmatpush3.bf16.msra.mxu1 %v9314_v10  ;;  %v2830_v43 = vand.u32 4294901760, %v2829_v7 }
 0x856   :  { %8363 = vmatprep.subr.mxu1 %v12058_v52 }
 0x859   :  { %8364 = vmatpush3.msra.mxu1 %v2830_v43 }
 0x85a   :  { %8366 = vmatmul.mubr.f32.vlgmr.msra.gmra.mrb[6].mxu1 %v11099_v38  ;;  %9316 = vmatprep.subr.bf16.mxu1 %v12065_v53 }
 0x85b   :  { %9318 = vmatpush3.bf16.msra.mxu1 %v9317_v45  ;;  %8374 = vmatprep.mubr.msk.f32.mxu1 %vm12064_vm2, %v12058_v52 }
 0x85c   :  { %8372 = vmatprep.subr.mxu1 %v12058_v52 }
 0x85f   :  { %8373 = vmatpush3.msra.mxu1 %v2827_v49 }
 0x860   :  { %9319 = vmatprep.subr.bf16.mxu1 %v12065_v53 }
 0x862   :  { %8375 = vmatmul.mubr.f32.vlgmr.msra.gmra.mrb[6].mxu1 %v2802_v25 }
 0x863   :  { %9321 = vmatpush3.bf16.msra.mxu1 %v9311_v61  ;;  %8383 = vmatprep.mubr.msk.f32.mxu1 %vm12064_vm2, %v12058_v52 }
 0x864   :  { %8381 = vmatprep.subr.mxu1 %v12058_v52 }
 0x867   :  { %8382 = vmatpush3.msra.mxu1 %v2740_v3 }
 0x868   :  { %9322 = vmatprep.subr.bf16.mxu1 %v12065_v53 }
 0x86a   :  { %8384 = vmatmul.mubr.f32.vlgmr.msra.gmra.mrb[6].mxu1 %v2803_v56 }
 0x86b   :  { %9324 = vmatpush3.bf16.msra.mxu1 %v9323_v26  ;;  %8392 = vmatprep.mubr.msk.f32.mxu1 %vm12064_vm2, %v12058_v52 }
 0x86c   :  { %8390 = vmatprep.subr.mxu1 %v12058_v52 }
 0x86f   :  { %8391 = vmatpush3.msra.mxu1 %v2828_v51 }
 0x870   :  { %9325 = vmatprep.subr.bf16.mxu1 %v12065_v53 }
 0x872   :  { %8393 = vmatmul.mubr.f32.vlgmr.msra.gmra.mrb[6].mxu1 %v11099_v38 }
 0x873   :  { %9327 = vmatpush3.bf16.msra.mxu1 %v9311_v61  ;;  %8401 = vmatprep.mubr.msk.f32.mxu1 %vm12064_vm2, %v12058_v52 }
 0x874   :  { %8399 = vmatprep.subr.mxu1 %v12058_v52 }
 0x877   :  { %8400 = vmatpush3.msra.mxu1 %v2740_v3 }
 0x878   :  { %9346 = vmatprep.subr.bf16.mxu1 %v12065_v53 }
 0x87a   :  { %8402 = vmatmul.mubr.f32.vlgmr.msra.gmra.mrb[6].mxu1 %v11099_v38 }
 0x87b   :  { %8464 = vmatprep.mubr.msk.f32.mxu1 %vm12064_vm2, %v12058_v52 }
 0x94d   :  { %v3201_v20 = vpop.f32.mrb[6].mxu1 }
 0x94e   :  { %v9687_v35 = vadd.f32 %v3201_v20, %v2728_v50  ;;  %v8403_v46 = vpop.f32.mrb[7].mxu1 }
 0x950   :  { %v7195_v4 = vmul.f32 -1.442695, %v9687_v35 }
 0x952   :  { %9855 = vpow2.f32 %v7195_v4  ;;  %v3722_v4 = vld [vmem:[%s11919_s1 + $0x1c] sm:$0xff] }
 0x95c   :  { %v9856_v8 = vpop.eup %9855 }
 0x95d   :  { %v3208_v33 = vadd.f32 1.0, %v9856_v8  ;;  %v3735_v8 = vsel %vm2730_vm15, %v3722_v4, 0 }
 0x95f   :  { %9857 = vrcp.f32 %v3208_v33  ;;  %v3805_v33 = vand.u32 4294901760, %v3735_v8 }
 0x969   :  { %v9858_v28 = vpop.eup %9857 }
 0x96a   :  { %v3211_v55 = vmul.f32 %v9858_v28, %v9687_v35 }
 0x96c   :  { %3213 = vrot.lane.b32.xlu0 %v3211_v55, %s9897_s16  ;;  %v3806_v55 = vsub.f32 %v3735_v8, %v3805_v33 }
 0x9de   :  { %v3214_v57 = vpop.permute.xlu0 %3213 }
 0x9df   :  { %v3216_v21 = vsel %vm12161_vm10, 0.0, %v3214_v57  ;;  %v3807_v57 = vand.u32 4294901760, %v3806_v55 }
 0x9e0   :  { %v3218_v47 = vsel %vm3217_vm4, %v3216_v21, 0.0 }
 0x9e1   :  { %v11140_v30 = vmul.f32 %v3218_v47, %v11135_v39 }
 0x9e3   :  { %3225 = vrot.lane.b32.xlu0 %v11140_v30, %s9892_s14  ;;  %3222 = vrot.lane.b32.xlu1 %v11140_v30, %s9891_s13  ;;  %v3236_v37 = vand.u32 4294901760, %v11140_v30 }
 0x9e5   :  { %v3315_v13 = vsub.f32 %v11140_v30, %v3236_v37 }
 0x9e7   :  { %3230 = vperm.xlu1 %9838, %v3220_v0   ;;  %v3316_v44 = vand.u32 4294901760, %v3315_v13 }
 0x9e9   :  { %v3317_v42 = vsub.f32 %v3315_v13, %v3316_v44 }
 0x9eb   :  { %v3318_v9 = vand.u32 4294901760, %v3317_v42 }
 0xa55   :  { %v3226_v48 = vpop.permute.xlu0 %3225  ;;  %v3223_v38 = vpop.permute.xlu1 %3222 }
 0xa56   :  { %v3242_v18 = vand.u32 4294901760, %v3226_v48  ;;  %v3239_v25 = vand.u32 4294901760, %v3223_v38 }
 0xa58   :  { %v3329_v56 = vsub.f32 %v3226_v48, %v3242_v18  ;;  %v9329_v11 = vpack.c.bf16 %v3239_v25, %v3236_v37  ;;  %v3322_v36 = vsub.f32 %v3223_v38, %v3239_v25 }
 0xa5a   :  { %v3323_v15 = vand.u32 4294901760, %v3322_v36  ;;  %9330 = vmatpush3.bf16.msra.mxu0 %v9329_v11  ;;  %v3330_v62 = vand.u32 4294901760, %v3329_v56  ;;  %v9335_v23 = vpack.c.bf16 %v3322_v36, %v3315_v13 }
 0xa5b   :  { %8408 = vmatprep.subr.mxu0 %v12058_v52 }
 0xa5c   :  { %v3324_v61 = vsub.f32 %v3322_v36, %v3323_v15  ;;  %v3331_v19 = vsub.f32 %v3329_v56, %v3330_v62  ;;  %v9341_v24 = vpack.c.bf16 %v3323_v15, %v3316_v44 }
 0xa5e   :  { %v3325_v22 = vand.u32 4294901760, %v3324_v61  ;;  %8409 = vmatpush3.msra.mxu0 %v3242_v18  ;;  %v3332_v3 = vand.u32 4294901760, %v3331_v19  ;;  %v12163_v19 = vld [vmem:[#allocation2_spill] sm:$0xff] }
 0xa5f   :  { %8411 = vmatmul.mubr.f32.vlgmr.msra.gmra.mrb[8].mxu0 %v3307_v58  ;;  %9331 = vmatprep.subr.bf16.mxu0 %v12065_v53 }
 0xa60   :  { %v9332_v2 = vpack.c.bf16 %v3325_v22, %v3318_v9  ;;  %8419 = vmatprep.mubr.msk.f32.mxu0 %vm12064_vm2, %v12058_v52 }
 0xa62   :  { %9333 = vmatpush3.bf16.msra.mxu0 %v9332_v2  ;;  %v4224_v2 = vmul.u32 31, %v12163_v19 }
 0xa63   :  { %8417 = vmatprep.subr.mxu0 %v12058_v52 }
 0xa66   :  { %8418 = vmatpush3.msra.mxu0 %v3332_v3  ;;  %v3231_v63 = vpop.permute.xlu1 %3230  ;;  %v4225_v3 = vadd.s32 1, %v4224_v2 }
 0xa67   :  { %8420 = vmatmul.mubr.f32.vlgmr.msra.gmra.mrb[8].mxu0 %v3303_v27  ;;  %9334 = vmatprep.subr.bf16.mxu0 %v12065_v53 }
 0xa68   :  { %9336 = vmatpush3.bf16.msra.mxu0 %v9335_v23  ;;  %8428 = vmatprep.mubr.msk.f32.mxu0 %vm12064_vm2, %v12058_v52  ;;  %v12164_v23 = vld [vmem:[#allocation4_spill] sm:$0xff] }
 0xa69   :  { %8426 = vmatprep.subr.mxu0 %v12058_v52 }
 0xa6c   :  { %8427 = vmatpush3.msra.mxu0 %v3329_v56 }
 0xa6d   :  { %9337 = vmatprep.subr.bf16.mxu0 %v12065_v53 }
 0xa6f   :  { %8429 = vmatmul.mubr.f32.vlgmr.msra.gmra.mrb[8].mxu0 %v3304_v6 }
 0xa70   :  { %9339 = vmatpush3.bf16.msra.mxu0 %v9329_v11  ;;  %8437 = vmatprep.mubr.msk.f32.mxu0 %vm12064_vm2, %v12058_v52 }
 0xa71   :  { %8435 = vmatprep.subr.mxu0 %v12058_v52 }
 0xa74   :  { %8436 = vmatpush3.msra.mxu0 %v3242_v18 }
 0xa75   :  { %9340 = vmatprep.subr.bf16.mxu0 %v12065_v53 }
 0xa77   :  { %8438 = vmatmul.mubr.f32.vlgmr.msra.gmra.mrb[8].mxu0 %v3305_v54 }
 0xa78   :  { %9342 = vmatpush3.bf16.msra.mxu0 %v9341_v24  ;;  %8446 = vmatprep.mubr.msk.f32.mxu0 %vm12064_vm2, %v12058_v52  ;;  %v4226_v24 = vmul.u32 2, %v12164_v23 }
 0xa79   :  { %8444 = vmatprep.subr.mxu0 %v12058_v52 }
 0xa7c   :  { %8445 = vmatpush3.msra.mxu0 %v3330_v62 }
 0xa7d   :  { %9343 = vmatprep.subr.bf16.mxu0 %v12065_v53 }
 0xa7f   :  { %8447 = vmatmul.mubr.f32.vlgmr.msra.gmra.mrb[8].mxu0 %v3303_v27 }
 0xa80   :  { %9345 = vmatpush3.bf16.msra.mxu0 %v9329_v11  ;;  %8455 = vmatprep.mubr.msk.f32.mxu0 %vm12064_vm2, %v12058_v52 }
 0xa81   :  { %8453 = vmatprep.subr.mxu0 %v12058_v52 }
 0xa84   :  { %8454 = vmatpush3.msra.mxu0 %v3242_v18 }
 0xa85   :  { %9364 = vmatprep.subr.bf16.mxu0 %v12065_v53 }
 0xa87   :  { %8456 = vmatmul.mubr.f32.vlgmr.msra.gmra.mrb[8].mxu0 %v3303_v27  ;;  %v3808_v27 = vsub.f32 %v3806_v55, %v3807_v57 }
 0xa88   :  { %8528 = vmatprep.mubr.msk.f32.mxu0 %vm12064_vm2, %v12058_v52 }
 0xa89   :  { %v3809_v38 = vand.u32 4294901760, %v3808_v27 }
 0xb5a   :  { %v3703_v49 = vpop.f32.mrb[8].mxu0 }
 0xb5b   :  { %v9688_v29 = vadd.f32 %v3703_v49, %v3231_v63  ;;  %v8457_v51 = vpop.f32.mrb[9].mxu0  ;;  %v11219_v63 = vadd.s32 %v4226_v24, %v4225_v3 }
 0xb5d   :  { %v7196_v40 = vmul.f32 -1.442695, %v9688_v29  ;;  %v11222_v51 = vadd.s32 1, %v11219_v63  ;;  %vm4228_vm9 = vcmp.eq.s32.totalorder %v10047_v12, %v11219_v63  ;;  %vm4229_vm11 = vcmp.eq.s32.totalorder %v10052_v14, %v11219_v63 }
 0xb5e   :  { %vm11236_vm14 = vmpackc.low %vm4229_vm11, %vm4228_vm9  ;;  %vm4230_vm15 = vcmp.eq.s32.totalorder %v10058_v16, %v11219_v63  ;;  %vm4231_vm3 = vcmp.eq.s32.totalorder %v10061_v17, %v11219_v63  ;;  %vm4232_vm10 = vcmp.eq.s32.totalorder %v10066_v31, %v11219_v63 }
 0xb5f   :  { %9859 = vpow2.f32 %v7196_v40  ;;  %vm4245_vm6 = vcmp.eq.s32.totalorder %v10047_v12, %v11222_v51  ;;  %vm4246_vm1 = vcmp.eq.s32.totalorder %v10052_v14, %v11222_v51  ;;  %9366 = vmatpush3.bf16.msk.msra.mxu0 %vm11236_vm14, %v12072_v41  ;;  %vm4247_vm8 = vcmp.eq.s32.totalorder %v10058_v16, %v11222_v51  ;;  %vm11274_vm13 = vmpackc.low %vm4231_vm3, %vm4230_vm15 }
 0xb60   :  { %vm11251_vm7 = vmpackc.low %vm4246_vm1, %vm4245_vm6  ;;  %9367 = vmatprep.subr.bf16.mxu0 %v12065_v53  ;;  %vm4248_vm12 = vcmp.eq.s32.totalorder %v10061_v17, %v11222_v51  ;;  %v4238_v12 = vsel %vm4230_vm15, 1.0, %v12058_v52  ;;  %v4239_v14 = vsel %vm4231_vm3, 1.0, %v12058_v52  ;;  %v4240_v16 = vsel %vm4232_vm10, 1.0, %v12058_v52 }
 0xb61   :  { %vm11287_vm5 = vmpackc.low %vm4248_vm12, %vm4247_vm8  ;;  %vm4234_vm15 = vcmp.eq.s32.totalorder %v10177_v59, %v11219_v63  ;;  %vm4235_vm3 = vcmp.eq.s32.totalorder %v10180_v60, %v11219_v63 }
 0xb63   :  { %9369 = vmatpush3.bf16.msk.msra.mxu0 %vm11274_vm13, %v12072_v41 }
 0xb64   :  { %9370 = vmatprep.subr.bf16.mxu0 %v12065_v53 }
 0xb69   :  { %v9860_v7 = vpop.eup %9859 }
 0xb6a   :  { %v3710_v10 = vadd.f32 1.0, %v9860_v7 }
 0xb6c   :  { %9861 = vrcp.f32 %v3710_v10 }
 0xb76   :  { %v9862_v43 = vpop.eup %9861 }
 0xb77   :  { %v3713_v45 = vmul.f32 %v9862_v43, %v9688_v29 }
 0xb79   :  { %3715 = vrot.lane.b32.xlu0 %v3713_v45, %s9897_s16  ;;  %v4236_v45 = vsel %vm4228_vm9, 1.0, %v12058_v52  ;;  %vm4249_vm9 = vcmp.eq.s32.totalorder %v10066_v31, %v11222_v51  ;;  %v11363_v31 = vsub.f32 %v4240_v16, %v4240_v16 }
 0xb7a   :  { %v4257_v27 = vsel %vm4249_vm9, 1.0, %v12058_v52 }
 0xb7b   :  { %v4370_v16 = vand.u32 4294901760, %v11363_v31 }
 0xbeb   :  { %v3716_v26 = vpop.permute.xlu0 %3715 }
 0xbec   :  { %v3718_v50 = vsel %vm12162_vm0, 0.0, %v3716_v26  ;;  %v4237_v26 = vsel %vm4229_vm11, 1.0, %v12058_v52  ;;  %vm4233_vm0 = vcmp.eq.s32.totalorder %v10069_v34, %v11219_v63 }
 0xbed   :  { %v3719_v20 = vsel %vm3217_vm4, %v3718_v50, 0.0  ;;  %v4253_v50 = vsel %vm4245_vm6, 1.0, %v12058_v52  ;;  %v4241_v17 = vsel %vm4233_vm0, 1.0, %v12058_v52  ;;  %vm11352_vm11 = vmpackc.low %vm4233_vm0, %vm4232_vm10  ;;  %vm4250_vm6 = vcmp.eq.s32.totalorder %v10069_v34, %v11222_v51 }
 0xbee   :  { %v3720_v35 = vmul.f32 %v3719_v20, %v11135_v39  ;;  %v4254_v20 = vsel %vm4246_vm1, 1.0, %v12058_v52  ;;  %v11315_v8 = vsub.f32 %v4253_v50, %v4253_v50  ;;  %9372 = vmatpush3.bf16.msk.msra.mxu0 %vm11352_vm11, %v12072_v41  ;;  %vm11368_vm1 = vmpackc.low %vm4250_vm6, %vm4249_vm9  ;;  %vm4251_vm10 = vcmp.eq.s32.totalorder %v10177_v59, %v11222_v51 }
 0xbef   :  { %9373 = vmatprep.subr.bf16.mxu0 %v12065_v53  ;;  %vm4252_vm0 = vcmp.eq.s32.totalorder %v10180_v60, %v11222_v51 }
 0xbf0   :  { %v11181_v46 = vadd.f32 %v3720_v35, %v11140_v30  ;;  %v11311_v35 = vsub.f32 %v4236_v45, %v4236_v45 }
 0xbf2   :  { %3727 = vrot.lane.b32.xlu0 %v11181_v46, %s9892_s14  ;;  %3724 = vrot.lane.b32.xlu1 %v11181_v46, %s9891_s13  ;;  %v3738_v28 = vand.u32 4294901760, %v11181_v46  ;;  %v12021_v60 = vand.u32 4294901760, %v11311_v35 }
 0xbf4   :  { %v3817_v1 = vsub.f32 %v11181_v46, %v3738_v28  ;;  %v4347_v19 = vsub.f32 %v11311_v35, %v12021_v60 }
 0xbf6   :  { %3732 = vperm.xlu1 %9838, %v3722_v4   ;;  %v3818_v32 = vand.u32 4294901760, %v3817_v1  ;;  %v11313_v4 = vsub.f32 %v4237_v26, %v4237_v26  ;;  %v4348_v51 = vand.u32 4294901760, %v4347_v19 }
 0xbf8   :  { %v3819_v48 = vsub.f32 %v3817_v1, %v3818_v32 }
 0xbfa   :  { %v3820_v5 = vand.u32 4294901760, %v3819_v48  ;;  %v4242_v48 = vsel %vm4234_vm15, 1.0, %v12058_v52 }
 0xc64   :  { %v3728_v21 = vpop.permute.xlu0 %3727  ;;  %v3725_v47 = vpop.permute.xlu1 %3724 }
 0xc65   :  { %v3744_v30 = vand.u32 4294901760, %v3728_v21  ;;  %v3741_v0 = vand.u32 4294901760, %v3725_v47 }
 0xc67   :  { %v3831_v37 = vsub.f32 %v3728_v21, %v3744_v30  ;;  %v9347_v6 = vpack.c.bf16 %v3741_v0, %v3738_v28  ;;  %v3824_v13 = vsub.f32 %v3725_v47, %v3741_v0  ;;  %v4255_v28 = vsel %vm4247_vm8, 1.0, %v12058_v52 }
 0xc68   :  { %v11338_v21 = vsub.f32 %v4239_v14, %v4239_v14  ;;  %v11340_v47 = vsub.f32 %v4255_v28, %v4255_v28  ;;  %vm12177_vm8 = vcmask 1045504  }
 0xc69   :  { %v3825_v54 = vand.u32 4294901760, %v3824_v13  ;;  %9348 = vmatpush3.bf16.msra.mxu1 %v9347_v6  ;;  %v3832_v18 = vand.u32 4294901760, %v3831_v37  ;;  %v9353_v15 = vpack.c.bf16 %v3824_v13, %v3817_v1  ;;  %vm12180_vm9 = vmmov %vm12177_vm8 }
 0xc6a   :  { %8462 = vmatprep.subr.mxu1 %v12058_v52 }
 0xc6b   :  { %v3826_v25 = vsub.f32 %v3824_v13, %v3825_v54  ;;  %v3833_v56 = vsub.f32 %v3831_v37, %v3832_v18  ;;  %v9359_v42 = vpack.c.bf16 %v3825_v54, %v3818_v32  ;;  %v11372_v54 = vsub.f32 %v4257_v27, %v4257_v27 }
 0xc6d   :  { %v3827_v44 = vand.u32 4294901760, %v3826_v25  ;;  %8463 = vmatpush3.msra.mxu1 %v3744_v30  ;;  %v3834_v36 = vand.u32 4294901760, %v3833_v56  ;;  %v11399_v56 = vsub.f32 %v4242_v48, %v4242_v48 }
 0xc6e   :  { %8465 = vmatmul.mubr.f32.vlgmr.msra.gmra.mrb[8].mxu1 %v3809_v38  ;;  %9349 = vmatprep.subr.bf16.mxu1 %v12065_v53  ;;  %v4243_v38 = vsel %vm4235_vm3, 1.0, %v12058_v52 }
 0xc6f   :  { %v9350_v11 = vpack.c.bf16 %v3827_v44, %v3820_v5  ;;  %8473 = vmatprep.mubr.msk.f32.mxu1 %vm12064_vm2, %v12058_v52  ;;  %v4266_v25 = vsel %vm12180_vm9, %v4243_v38, 0  ;;  %v9902_v44 = vmov 1.0  }
 0xc70   :  { %v11397_v5 = vpack.c.bf16 %v4243_v38, %v9902_v44 }
 0xc71   :  { %9351 = vmatpush3.bf16.msra.mxu1 %v9350_v11  ;;  %v4259_v11 = vsel %vm4251_vm10, 1.0, %v12058_v52 }
 0xc72   :  { %8471 = vmatprep.subr.mxu1 %v12058_v52  ;;  %v11410_v59 = vsub.f32 %v4259_v11, %v4259_v11  ;;  %v4868_v11 = vand.u32 4294901760, %v11372_v54 }
 0xc75   :  { %8472 = vmatpush3.msra.mxu1 %v3834_v36  ;;  %v3733_v58 = vpop.permute.xlu1 %3732  ;;  %v11402_v36 = vsub.f32 %v4266_v25, %v4266_v25 }
 0xc76   :  { %8474 = vmatmul.mubr.f32.vlgmr.msra.gmra.mrb[8].mxu1 %v3805_v33  ;;  %9352 = vmatprep.subr.bf16.mxu1 %v12065_v53 }
 0xc77   :  { %9354 = vmatpush3.bf16.msra.mxu1 %v9353_v15  ;;  %8482 = vmatprep.mubr.msk.f32.mxu1 %vm12064_vm2, %v12058_v52  ;;  %v4260_v15 = vsel %vm4252_vm0, 1.0, %v12058_v52 }
 0xc78   :  { %8480 = vmatprep.subr.mxu1 %v12058_v52 }
 0xc7b   :  { %8481 = vmatpush3.msra.mxu1 %v3831_v37  ;;  %v11365_v37 = vsub.f32 %v4241_v17, %v4241_v17 }
 0xc7c   :  { %9355 = vmatprep.subr.bf16.mxu1 %v12065_v53 }
 0xc7d   :  { %v4376_v48 = vand.u32 4294901760, %v11365_v37 }
 0xc7e   :  { %8483 = vmatmul.mubr.f32.vlgmr.msra.gmra.mrb[8].mxu1 %v3806_v55  ;;  %v4256_v55 = vsel %vm4248_vm12, 1.0, %v12058_v52  ;;  %vm11388_vm12 = vmpackc.low %vm12177_vm8, %vm4234_vm15 }
 0xc7f   :  { %9357 = vmatpush3.bf16.msra.mxu1 %v9347_v6  ;;  %8491 = vmatprep.mubr.msk.f32.mxu1 %vm12064_vm2, %v12058_v52 }
 0xc80   :  { %8489 = vmatprep.subr.mxu1 %v12058_v52  ;;  %9376 = vmatpush3.bf16.msk.msra.mxu0 %vm11388_vm12, %v11397_v5 }
 0xc81   :  { %9377 = vmatprep.subr.bf16.mxu0 %v12065_v53 }
 0xc83   :  { %8490 = vmatpush3.msra.mxu1 %v3744_v30 }
 0xc84   :  { %9358 = vmatprep.subr.bf16.mxu1 %v12065_v53 }
 0xc86   :  { %8492 = vmatmul.mubr.f32.vlgmr.msra.gmra.mrb[8].mxu1 %v3807_v57  ;;  %v11336_v57 = vsub.f32 %v4238_v12, %v4238_v12 }
 0xc87   :  { %9360 = vmatpush3.bf16.msra.mxu1 %v9359_v42  ;;  %8500 = vmatprep.mubr.msk.f32.mxu1 %vm12064_vm2, %v12058_v52  ;;  %v12182_v42 = vmov 0 }
 0xc88   :  { %8498 = vmatprep.subr.mxu1 %v12058_v52  ;;  %v12017_v3 = vand.u32 4294901760, %v11336_v57 }
 0xc8a   :  { %v4359_v26 = vsub.f32 %v11336_v57, %v12017_v3 }
 0xc8b   :  { %8499 = vmatpush3.msra.mxu1 %v3832_v18 }
 0xc8c   :  { %9361 = vmatprep.subr.bf16.mxu1 %v12065_v53 }
 0xc8e   :  { %8501 = vmatmul.mubr.f32.vlgmr.msra.gmra.mrb[8].mxu1 %v3805_v33 }
 0xc8f   :  { %9363 = vmatpush3.bf16.msra.mxu1 %v9347_v6  ;;  %8509 = vmatprep.mubr.msk.f32.mxu1 %vm12064_vm2, %v12058_v52  ;;  %v4258_v6 = vsel %vm4250_vm6, 1.0, %v12058_v52  ;;  %vm12181_vm6 = vmmov %vm12177_vm8  ;;  %vm12191_vm8 = vcmask 7168  }
 0xc90   :  { %8507 = vmatprep.subr.mxu1 %v12058_v52  ;;  %v11377_v34 = vsub.f32 %v4258_v6, %v4258_v6  ;;  %vm11406_vm15 = vmpackc.low %vm12181_vm6, %vm4251_vm10  ;;  %vm4261_vm10 = vcmask 506880  }
 0xc91   :  { %v12183_v42 = vsel %vm11406_vm15, 4294967295, %v12182_v42  ;;  %vm12185_vm3 = vmmov %vm12181_vm6 }
 0xc92   :  { %12184 = vst [vmem:[#allocation8_spill] sm:$0xff] %v12183_v42  ;;  %v4874_v19 = vand.u32 4294901760, %v11377_v34 }
 0xc93   :  { %8508 = vmatpush3.msra.mxu1 %v3744_v30  ;;  %v11342_v30 = vsub.f32 %v4256_v55, %v4256_v55 }
 0xc94   :  { %9439 = vmatprep.subr.bf16.mxu1 %v12065_v53 }
 0xc95   :  { %v4862_v50 = vand.u32 4294901760, %v11342_v30 }
 0xc96   :  { %8510 = vmatmul.mubr.f32.vlgmr.msra.gmra.mrb[8].mxu1 %v3805_v33  ;;  %v11317_v33 = vsub.f32 %v4254_v20, %v4254_v20 }
 0xc97   :  { %8642 = vmatprep.mubr.msk.f32.mxu1 %vm12064_vm2, %v12058_v52  ;;  %9441 = vmatpush3.bf16.msk.msra.mxu1 %vm11251_vm7, %v12072_v41 }
 0xc98   :  { %9442 = vmatprep.subr.bf16.mxu1 %v12065_v53  ;;  %v12018_v2 = vand.u32 4294901760, %v11317_v33 }
 0xc9a   :  { %v4851_v45 = vsub.f32 %v11317_v33, %v12018_v2 }
 0xc9b   :  { %9444 = vmatpush3.bf16.msk.msra.mxu1 %vm11287_vm5, %v12072_v41 }
 0xc9c   :  { %9445 = vmatprep.subr.bf16.mxu1 %v12065_v53  ;;  %v4852_v55 = vand.u32 4294901760, %v4851_v45  ;;  %v4869_v45 = vsub.f32 %v11372_v54, %v4868_v11 }
 0xc9f   :  { %9447 = vmatpush3.bf16.msk.msra.mxu1 %vm11368_vm1, %v12072_v41 }
 0xca0   :  { %9448 = vmatprep.subr.bf16.mxu1 %v12065_v53 }
 0xd69   :  { %v4205_v62 = vpop.f32.mrb[8].mxu1 }
 0xd6a   :  { %v9689_v61 = vadd.f32 %v4205_v62, %v3733_v58  ;;  %v8511_v22 = vpop.f32.mrb[9].mxu1  ;;  %v4764_v58 = vsel %vm12185_vm3, %v4260_v15, 0  ;;  %v11417_v62 = vpack.c.bf16 %v4260_v15, %v9902_v44  ;;  %v4371_v44 = vsub.f32 %v11363_v31, %v4370_v16 }
 0xd6b   :  { %v12019_v22 = vand.u32 4294901760, %v11315_v8 }
 0xd6c   :  { %v7197_v9 = vmul.f32 -1.442695, %v9689_v61  ;;  %9451 = vmatpush3.bf16.msk.msra.mxu1 %vm11406_vm15, %v11417_v62 }
 0xd6d   :  { %v4845_v63 = vsub.f32 %v11315_v8, %v12019_v22  ;;  %9452 = vmatprep.subr.bf16.mxu1 %v12065_v53 }
 0xd6e   :  { %9863 = vpow2.f32 %v7197_v9  ;;  %v11421_v9 = vsub.f32 %v4764_v58, %v4764_v58  ;;  %v4377_v58 = vsub.f32 %v11365_v37, %v4376_v48 }
 0xd6f   :  { %v4846_v12 = vand.u32 4294901760, %v4845_v63 }
 0xd71   :  { %v9453_v38 = vpack.c.bf16 %v4852_v55, %v4846_v12  ;;  %v4875_v12 = vsub.f32 %v11377_v34, %v4874_v19  ;;  %v4870_v55 = vand.u32 4294901760, %v4869_v45  ;;  %v9465_v45 = vpack.c.bf16 %v11317_v33, %v11315_v8 }
 0xd73   :  { %v4876_v3 = vand.u32 4294901760, %v4875_v12  ;;  %v9396_v12 = vpack.c.bf16 %v11365_v37, %v11363_v31  ;;  %v12190_v37 = vand.u32 4294901760, %v11336_v57 }
 0xd78   :  { %v9864_v49 = vpop.eup %9863 }
 0xd79   :  { %v4212_v29 = vadd.f32 1.0, %v9864_v49  ;;  %v4364_v49 = vand.u32 4294901760, %v11338_v21 }
 0xd7b   :  { %9865 = vrcp.f32 %v4212_v29  ;;  %v4856_v29 = vand.u32 4294901760, %v11340_v47  ;;  %v4365_v14 = vsub.f32 %v11338_v21, %v4364_v49 }
 0xd7d   :  { %v4857_v28 = vsub.f32 %v11340_v47, %v4856_v29  ;;  %v4366_v27 = vand.u32 4294901760, %v4365_v14 }
 0xd7f   :  { %v4858_v6 = vand.u32 4294901760, %v4857_v28  ;;  %v4880_v28 = vand.u32 4294901760, %v11410_v59 }
 0xd85   :  { %v9866_v1 = vpop.eup %9865 }
 0xd86   :  { %v4215_v0 = vmul.f32 %v9866_v1, %v9689_v61  ;;  %v12020_v61 = vand.u32 4294901760, %v11313_v4  ;;  %v4360_v1 = vand.u32 4294901760, %v4359_v26  ;;  %v4389_v26 = vand.u32 4294901760, %v11402_v36 }
 0xd88   :  { %4217 = vrot.lane.b32.xlu0 %v4215_v0, %s9897_s16  ;;  %v4353_v24 = vsub.f32 %v11313_v4, %v12020_v61  ;;  %v4863_v0 = vsub.f32 %v11342_v30, %v4862_v50  ;;  %v9381_v15 = vpack.c.bf16 %v4366_v27, %v4360_v1  ;;  %v4390_v1 = vsub.f32 %v11402_v36, %v4389_v26 }
 0xd89   :  { %v9390_v61 = vpack.c.bf16 %v11313_v4, %v11311_v35 }
 0xd8a   :  { %v4354_v20 = vand.u32 4294901760, %v4353_v24  ;;  %v4864_v25 = vand.u32 4294901760, %v4863_v0  ;;  %v4382_v24 = vand.u32 4294901760, %v11399_v56  ;;  %v4887_v0 = vand.u32 4294901760, %v11421_v9 }
 0xd8c   :  { %v11452_v17 = vpack.c.bf16 %v4354_v20, %v4348_v51  ;;  %v9456_v63 = vpack.c.bf16 %v4864_v25, %v4858_v6  ;;  %v4372_v51 = vand.u32 4294901760, %v4371_v44  ;;  %v4378_v20 = vand.u32 4294901760, %v4377_v58 }
 0xd8d   :  { %v4383_v14 = vsub.f32 %v11399_v56, %v4382_v24  ;;  %v4881_v25 = vsub.f32 %v11410_v59, %v4880_v28  ;;  %v4391_v44 = vand.u32 4294901760, %v4390_v1  ;;  %v4888_v2 = vsub.f32 %v11421_v9, %v4887_v0 }
 0xd8e   :  { %v9384_v27 = vpack.c.bf16 %v4378_v20, %v4372_v51  ;;  %v9459_v58 = vpack.c.bf16 %v4876_v3, %v4870_v55  ;;  %v9393_v51 = vpack.c.bf16 %v11338_v21, %v11336_v57  ;;  %v9468_v20 = vpack.c.bf16 %v11342_v30, %v11340_v47 }
 0xd8f   :  { %v4384_v6 = vand.u32 4294901760, %v4383_v14  ;;  %v4882_v22 = vand.u32 4294901760, %v4881_v25  ;;  %v4889_v23 = vand.u32 4294901760, %v4888_v2  ;;  %v9471_v3 = vpack.c.bf16 %v11377_v34, %v11372_v54 }
 0xd90   :  { %v9399_v14 = vpack.c.bf16 %v11402_v36, %v11399_v56  ;;  %v9474_v55 = vpack.c.bf16 %v11421_v9, %v11410_v59  ;;  %v12188_v47 = vand.u32 4294901760, %v11315_v8  ;;  %v12189_v30 = vand.u32 4294901760, %v11317_v33 }
 0xd91   :  { %v9387_v60 = vpack.c.bf16 %v4391_v44, %v4384_v6  ;;  %v9462_v42 = vpack.c.bf16 %v4889_v23, %v4882_v22  ;;  %v12186_v23 = vand.u32 4294901760, %v11311_v35  ;;  %v12187_v22 = vand.u32 4294901760, %v11313_v4 }
 0xd92   :  { %v11495_v31 = vpack.c.bf16 %v12189_v30, %v12188_v47  ;;  %v11499_v54 = vpack.c.bf16 %v4364_v49, %v12190_v37  ;;  %v11501_v34 = vpack.c.bf16 %v4862_v50, %v4856_v29  ;;  %v11503_v56 = vpack.c.bf16 %v4376_v48, %v4370_v16 }
 0xd93   :  { %v11489_v21 = vpack.c.bf16 %v12187_v22, %v12186_v23  ;;  %v11505_v36 = vpack.c.bf16 %v4874_v19, %v4868_v11  ;;  %v11507_v35 = vpack.c.bf16 %v4389_v26, %v4382_v24  ;;  %v11509_v4 = vpack.c.bf16 %v4887_v0, %v4880_v28  ;;  %v5262_v0 = vld [vmem:[%s11919_s1 + $0x2c] sm:$0xf] }
 0xdfa   :  { %v4218_v59 = vpop.permute.xlu0 %4217 }
 0xdfb   :  { %v4220_v8 = vsel %vm12191_vm8, 0.0, %v4218_v59 }
 0xdfc   :  { %v4221_v33 = vsel %vm3217_vm4, %v4220_v8, 0.0 }
 0xdfd   :  { %v4222_v9 = vmul.f32 %v4221_v33, %v11135_v39 }
 0xdff   :  { %v4223_v57 = vadd.f32 %v4222_v9, %v11181_v46 }
 0xe01   :  { %v4263_v2 = vsel %vm4261_vm10, %v4223_v57, 0 }
 0xe02   :  { %v11515_v49 = vand.u32 4294901760, %v4263_v2 }
 0xe04   :  { %v4335_v29 = vsub.f32 %v4263_v2, %v11515_v49 }
 0xe06   :  { %v11518_v50 = vand.u32 4294901760, %v4335_v29 }
 0xe08   :  { %v4337_v16 = vsub.f32 %v4335_v29, %v11518_v50 }
 0xe0a   :  { %v4338_v48 = vand.u32 4294901760, %v4337_v16 }
 0xe0c   :  { %8529 = vmatmul.mubr.f32.vlgmr.msra.gmra.mrb[10].mxu0 %v4338_v48  ;;  %8643 = vmatmul.mubr.f32.vlgmr.msra.gmra.mrb[10].mxu1 %v4338_v48 }
 0xe0d   :  { %9379 = vmatpush3.bf16.msra.mxu0 %v11452_v17  ;;  %9454 = vmatpush3.bf16.msra.mxu1 %v9453_v38 }
 0xe0e   :  { %9380 = vmatprep.subr.bf16.mxu0 %v12065_v53  ;;  %9455 = vmatprep.subr.bf16.mxu1 %v12065_v53 }
 0xe0f   :  { %8547 = vmatprep.mubr.msk.f32.mxu0 %vm12064_vm2, %v12058_v52  ;;  %8661 = vmatprep.mubr.msk.f32.mxu1 %vm12064_vm2, %v12058_v52 }
 0xe11   :  { %9382 = vmatpush3.bf16.msra.mxu0 %v9381_v15  ;;  %9457 = vmatpush3.bf16.msra.mxu1 %v9456_v63 }
 0xe12   :  { %9383 = vmatprep.subr.bf16.mxu0 %v12065_v53  ;;  %9458 = vmatprep.subr.bf16.mxu1 %v12065_v53 }
 0xe15   :  { %9385 = vmatpush3.bf16.msra.mxu0 %v9384_v27  ;;  %9460 = vmatpush3.bf16.msra.mxu1 %v9459_v58  ;;  %v9903_v27 = vmov 48  }
 0xe16   :  { %9386 = vmatprep.subr.bf16.mxu0 %v12065_v53  ;;  %9461 = vmatprep.subr.bf16.mxu1 %v12065_v53 }
 0xe17   :  { %9840 = vset.pattern.permute.xlu0 %v9903_v27  ;;  %9839 = vset.pattern.permute.xlu1 %v9903_v27 }
 0xe19   :  { %9388 = vmatpush3.bf16.msra.mxu0 %v9387_v60  ;;  %9463 = vmatpush3.bf16.msra.mxu1 %v9462_v42 }
 0xe1a   :  { %9389 = vmatprep.subr.bf16.mxu0 %v12065_v53  ;;  %9464 = vmatprep.subr.bf16.mxu1 %v12065_v53 }
 0xe1c   :  { %8548 = vmatmul.mubr.f32.vlgmr.msra.gmra.mrb[10].mxu0 %v11515_v49  ;;  %8662 = vmatmul.mubr.f32.vlgmr.msra.gmra.mrb[10].mxu1 %v11515_v49 }
 0xe1d   :  { %9391 = vmatpush3.bf16.msra.mxu0 %v9390_v61  ;;  %9466 = vmatpush3.bf16.msra.mxu1 %v9465_v45 }
 0xe1e   :  { %9392 = vmatprep.subr.bf16.mxu0 %v12065_v53  ;;  %9467 = vmatprep.subr.bf16.mxu1 %v12065_v53 }
 0xe1f   :  { %8566 = vmatprep.mubr.msk.f32.mxu0 %vm12064_vm2, %v12058_v52  ;;  %8680 = vmatprep.mubr.msk.f32.mxu1 %vm12064_vm2, %v12058_v52 }
 0xe21   :  { %9394 = vmatpush3.bf16.msra.mxu0 %v9393_v51  ;;  %9469 = vmatpush3.bf16.msra.mxu1 %v9468_v20 }
 0xe22   :  { %9395 = vmatprep.subr.bf16.mxu0 %v12065_v53  ;;  %9470 = vmatprep.subr.bf16.mxu1 %v12065_v53 }
 0xe25   :  { %9397 = vmatpush3.bf16.msra.mxu0 %v9396_v12  ;;  %9472 = vmatpush3.bf16.msra.mxu1 %v9471_v3 }
 0xe26   :  { %9398 = vmatprep.subr.bf16.mxu0 %v12065_v53  ;;  %9473 = vmatprep.subr.bf16.mxu1 %v12065_v53 }
 0xe29   :  { %9400 = vmatpush3.bf16.msra.mxu0 %v9399_v14  ;;  %9475 = vmatpush3.bf16.msra.mxu1 %v9474_v55 }
 0xe2a   :  { %9401 = vmatprep.subr.bf16.mxu0 %v12065_v53  ;;  %9476 = vmatprep.subr.bf16.mxu1 %v12065_v53 }
 0xe2c   :  { %8567 = vmatmul.mubr.f32.vlgmr.msra.gmra.mrb[10].mxu0 %v4335_v29  ;;  %8681 = vmatmul.mubr.f32.vlgmr.msra.gmra.mrb[10].mxu1 %v4335_v29 }
 0xe2d   :  { %9403 = vmatpush3.bf16.msk.msra.mxu0 %vm11236_vm14, %v12072_v41  ;;  %9478 = vmatpush3.bf16.msk.msra.mxu1 %vm11251_vm7, %v12072_v41 }
 0xe2e   :  { %9404 = vmatprep.subr.bf16.mxu0 %v12065_v53  ;;  %9479 = vmatprep.subr.bf16.mxu1 %v12065_v53 }
 0xe2f   :  { %8585 = vmatprep.mubr.msk.f32.mxu0 %vm12064_vm2, %v12058_v52  ;;  %8699 = vmatprep.mubr.msk.f32.mxu1 %vm12064_vm2, %v12058_v52 }
 0xe31   :  { %9406 = vmatpush3.bf16.msk.msra.mxu0 %vm11274_vm13, %v12072_v41  ;;  %9481 = vmatpush3.bf16.msk.msra.mxu1 %vm11287_vm5, %v12072_v41 }
 0xe32   :  { %9407 = vmatprep.subr.bf16.mxu0 %v12065_v53  ;;  %9482 = vmatprep.subr.bf16.mxu1 %v12065_v53 }
 0xe35   :  { %9409 = vmatpush3.bf16.msk.msra.mxu0 %vm11352_vm11, %v12072_v41  ;;  %9484 = vmatpush3.bf16.msk.msra.mxu1 %vm11368_vm1, %v12072_v41 }
 0xe36   :  { %9410 = vmatprep.subr.bf16.mxu0 %v12065_v53  ;;  %9485 = vmatprep.subr.bf16.mxu1 %v12065_v53 }
 0xe39   :  { %9413 = vmatpush3.bf16.msk.msra.mxu0 %vm11388_vm12, %v11397_v5  ;;  %9488 = vmatpush3.bf16.msk.msra.mxu1 %vm11406_vm15, %v11417_v62 }
 0xe3a   :  { %9414 = vmatprep.subr.bf16.mxu0 %v12065_v53  ;;  %9489 = vmatprep.subr.bf16.mxu1 %v12065_v53 }
 0xe3c   :  { %8586 = vmatmul.mubr.f32.vlgmr.msra.gmra.mrb[10].mxu0 %v11518_v50  ;;  %8700 = vmatmul.mubr.f32.vlgmr.msra.gmra.mrb[10].mxu1 %v11518_v50 }
 0xe3d   :  { %9416 = vmatpush3.bf16.msra.mxu0 %v11489_v21  ;;  %9491 = vmatpush3.bf16.msra.mxu1 %v11495_v31 }
 0xe3e   :  { %9417 = vmatprep.subr.bf16.mxu0 %v12065_v53  ;;  %9492 = vmatprep.subr.bf16.mxu1 %v12065_v53 }
 0xe3f   :  { %8604 = vmatprep.mubr.msk.f32.mxu0 %vm12064_vm2, %v12058_v52  ;;  %8718 = vmatprep.mubr.msk.f32.mxu1 %vm12064_vm2, %v12058_v52 }
 0xe41   :  { %9419 = vmatpush3.bf16.msra.mxu0 %v11499_v54  ;;  %9494 = vmatpush3.bf16.msra.mxu1 %v11501_v34 }
 0xe42   :  { %9420 = vmatprep.subr.bf16.mxu0 %v12065_v53  ;;  %9495 = vmatprep.subr.bf16.mxu1 %v12065_v53 }
 0xe45   :  { %9422 = vmatpush3.bf16.msra.mxu0 %v11503_v56  ;;  %9497 = vmatpush3.bf16.msra.mxu1 %v11505_v36 }
 0xe46   :  { %9423 = vmatprep.subr.bf16.mxu0 %v12065_v53  ;;  %9498 = vmatprep.subr.bf16.mxu1 %v12065_v53 }
 0xe49   :  { %9425 = vmatpush3.bf16.msra.mxu0 %v11507_v35  ;;  %9500 = vmatpush3.bf16.msra.mxu1 %v11509_v4 }
 0xe4a   :  { %9426 = vmatprep.subr.bf16.mxu0 %v12065_v53  ;;  %9501 = vmatprep.subr.bf16.mxu1 %v12065_v53 }
 0xe4c   :  { %8605 = vmatmul.mubr.f32.vlgmr.msra.gmra.mrb[10].mxu0 %v11515_v49  ;;  %8719 = vmatmul.mubr.f32.vlgmr.msra.gmra.mrb[10].mxu1 %v11515_v49 }
 0xe4d   :  { %9428 = vmatpush3.bf16.msk.msra.mxu0 %vm11236_vm14, %v12072_v41  ;;  %9503 = vmatpush3.bf16.msk.msra.mxu1 %vm11251_vm7, %v12072_v41 }
 0xe4e   :  { %9429 = vmatprep.subr.bf16.mxu0 %v12065_v53  ;;  %9504 = vmatprep.subr.bf16.mxu1 %v12065_v53 }
 0xe4f   :  { %8623 = vmatprep.mubr.msk.f32.mxu0 %vm12064_vm2, %v12058_v52  ;;  %8737 = vmatprep.mubr.msk.f32.mxu1 %vm12064_vm2, %v12058_v52  ;;  %vm5287_vm2 = vcmask 392192  }
 0xe50   :  { %v5290_v6 = vsel %vm5287_vm2, %v5262_v0, 0 }
 0xe51   :  { %9431 = vmatpush3.bf16.msk.msra.mxu0 %vm11274_vm13, %v12072_v41  ;;  %9506 = vmatpush3.bf16.msk.msra.mxu1 %vm11287_vm5, %v12072_v41  ;;  %v11673_v25 = vand.u32 4294901760, %v5290_v6  ;;  %vm5904_vm13 = vcmask 293888   ;;  %vm5870_vm5 = vcmask 220160  }
 0xe52   :  { %9432 = vmatprep.subr.bf16.mxu0 %v12065_v53  ;;  %9507 = vmatprep.subr.bf16.mxu1 %v12065_v53 }
 0xe53   :  { %v11676_v44 = vsub.f32 %v5290_v6, %v11673_v25 }
 0xe55   :  { %9434 = vmatpush3.bf16.msk.msra.mxu0 %vm11352_vm11, %v12072_v41  ;;  %9509 = vmatpush3.bf16.msk.msra.mxu1 %vm11368_vm1, %v12072_v41  ;;  %v5261_v41 = vld [vmem:[%s11919_s1 + $0x24] sm:$0xff]  ;;  %v5375_v51 = vand.u32 4294901760, %v11676_v44  ;;  %vm12194_vm11 = vmmov %vm12191_vm8 }
 0xe56   :  { %9435 = vmatprep.subr.bf16.mxu0 %v12065_v53  ;;  %9510 = vmatprep.subr.bf16.mxu1 %v12065_v53  ;;  %v5288_v46 = vsel %vm5287_vm2, %v5261_v41, 0  ;;  %vm12195_vm1 = vmmov %vm12191_vm8 }
 0xe57   :  { %v11648_v53 = vand.u32 4294901760, %v5288_v46  ;;  %v5376_v21 = vsub.f32 %v11676_v44, %v5375_v51  ;;  %vm12199_vm6 = vmmov %vm12195_vm1 }
 0xe58   :  { %vm12204_vm2 = vmmov %vm12195_vm1 }
 0xe59   :  { %9438 = vmatpush3.bf16.msk.msra.mxu0 %vm11388_vm12, %v11397_v5  ;;  %9513 = vmatpush3.bf16.msk.msra.mxu1 %vm11406_vm15, %v11417_v62  ;;  %v11651_v40 = vsub.f32 %v5288_v46, %v11648_v53  ;;  %v5377_v59 = vand.u32 4294901760, %v5376_v21  ;;  %vm12196_vm12 = vcmask 1043456   ;;  %vm12200_vm15 = vmmov %vm12195_vm1 }
 0xe5a   :  { %vm12197_vm0 = vmmov %vm12196_vm12 }
 0xe5b   :  { %v5365_v7 = vand.u32 4294901760, %v11651_v40  ;;  %vm12198_vm9 = vmmov %vm12197_vm0 }
 0xe5c   :  { %8624 = vmatmul.mubr.f32.vlgmr.msra.gmra.mrb[10].mxu0 %v11515_v49  ;;  %8738 = vmatmul.mubr.f32.vlgmr.msra.gmra.mrb[10].mxu1 %v11515_v49  ;;  %vm12201_vm3 = vmmov %vm12197_vm0 }
 0xe5d   :  { %v5366_v10 = vsub.f32 %v11651_v40, %v5365_v7  ;;  %vm12202_vm8 = vmmov %vm12197_vm0 }
 0xe5e   :  { %vm12203_vm10 = vmmov %vm12197_vm0 }
 0xe5f   :  { %v5367_v43 = vand.u32 4294901760, %v5366_v10 }
 0xe61   :  { %8752 = vmatprep.mubr.f32.mxu0 %v5367_v43 }
 0xf2f   :  { %v4759_v32 = vpop.f32.mrb[10].mxu0  ;;  %v5257_v13 = vpop.f32.mrb[10].mxu1 }
 0xf30   :  { %v5293_v18 = vand.u32 4294901760, %v4759_v32  ;;  %v5296_v5 = vand.u32 4294901760, %v5257_v13  ;;  %5264 = vrot.lane.b32.xlu1 %v4759_v32, %s9891_s13  ;;  %v8625_v42 = vpop.f32.mrb[11].mxu0  ;;  %5268 = vrot.lane.b32.xlu0 %v5257_v13, %s9891_s13  ;;  %v8739_v60 = vpop.f32.mrb[11].mxu1 }
 0xf32   :  { %v5385_v62 = vsub.f32 %v4759_v32, %v5293_v18  ;;  %v11659_v61 = vpack.c.bf16 %v5296_v5, %v5293_v18  ;;  %v5392_v17 = vsub.f32 %v5257_v13, %v5296_v5 }
 0xf34   :  { %5271 = vrot.lane.b32.xlu1 %v4759_v32, %s9892_s14  ;;  %5274 = vrot.lane.b32.xlu0 %v5257_v13, %s9892_s14  ;;  %v5386_v38 = vand.u32 4294901760, %v5385_v62  ;;  %v5393_v11 = vand.u32 4294901760, %v5392_v17  ;;  %v11663_v15 = vpack.c.bf16 %v5392_v17, %v5385_v62 }
 0xf35   :  { %9515 = vmatprep.subr.bf16.mxu0 %v11659_v61 }
 0xf36   :  { %9517 = vmatpush3.bf16.msra.mxu0 %v11659_v61  ;;  %v5387_v19 = vsub.f32 %v5385_v62, %v5386_v38  ;;  %v5394_v24 = vsub.f32 %v5392_v17, %v5393_v11  ;;  %v11667_v63 = vpack.c.bf16 %v5393_v11, %v5386_v38 }
 0xf38   :  { %v5388_v26 = vand.u32 4294901760, %v5387_v19  ;;  %v5395_v28 = vand.u32 4294901760, %v5394_v24  ;;  %5284 = vperm.xlu0 %9840, %v5262_v0   ;;  %5279 = vperm.xlu1 %9839, %v5261_v41   ;;  %v5875_v19 = vld [vmem:[%s11919_s1 + $0x30] sm:$0xff] }
 0xf39   :  { %v5905_v24 = vsel %vm5904_vm13, %v5875_v19, 0 }
 0xf3a   :  { %v9526_v1 = vpack.c.bf16 %v5395_v28, %v5388_v26  ;;  %v11717_v28 = vand.u32 4294901760, %v5905_v24 }
 0xf3c   :  { %v11722_v27 = vsub.f32 %v5905_v24, %v11717_v28 }
 0xfa2   :  { %v5265_v58 = vpop.permute.xlu1 %5264  ;;  %v5269_v45 = vpop.permute.xlu0 %5268 }
 0xfa3   :  { %v5299_v20 = vand.u32 4294901760, %v5265_v58  ;;  %v5302_v12 = vand.u32 4294901760, %v5269_v45 }
 0xfa5   :  { %v5399_v3 = vsub.f32 %v5265_v58, %v5299_v20  ;;  %v11679_v14 = vpack.c.bf16 %v5302_v12, %v5299_v20  ;;  %v5406_v55 = vsub.f32 %v5269_v45, %v5302_v12 }
 0xfa6   :  { %v5272_v23 = vpop.permute.xlu1 %5271  ;;  %v5275_v22 = vpop.permute.xlu0 %5274 }
 0xfa7   :  { %v5400_v47 = vand.u32 4294901760, %v5399_v3  ;;  %v5407_v30 = vand.u32 4294901760, %v5406_v55  ;;  %v5305_v31 = vand.u32 4294901760, %v5272_v23  ;;  %v5308_v37 = vand.u32 4294901760, %v5275_v22  ;;  %9519 = vmatprep.subr.bf16.mxu0 %v11679_v14 }
 0xfa8   :  { %9521 = vmatpush3.bf16.msra.mxu0 %v11679_v14  ;;  %v9542_v48 = vpack.c.bf16 %v5406_v55, %v5399_v3 }
 0xfa9   :  { %v5401_v54 = vsub.f32 %v5399_v3, %v5400_v47  ;;  %v5408_v34 = vsub.f32 %v5406_v55, %v5407_v30  ;;  %v5413_v56 = vsub.f32 %v5272_v23, %v5305_v31  ;;  %v9522_v36 = vpack.c.bf16 %v5308_v37, %v5305_v31  ;;  %v5876_v55 = vld [vmem:[%s11919_s1 + $0x38] sm:$0xf] }
 0xfaa   :  { %v5420_v35 = vsub.f32 %v5275_v22, %v5308_v37  ;;  %v9566_v41 = vpack.c.bf16 %v5407_v30, %v5400_v47  ;;  %v9904_v23 = vmov 36   ;;  %v5907_v22 = vsel %vm5904_vm13, %v5876_v55, 0 }
 0xfab   :  { %v5414_v4 = vand.u32 4294901760, %v5413_v56  ;;  %9523 = vmatprep.subr.bf16.mxu0 %v9522_v36  ;;  %v5402_v8 = vand.u32 4294901760, %v5401_v54  ;;  %v5409_v33 = vand.u32 4294901760, %v5408_v34  ;;  %9842 = vset.pattern.permute.xlu1 %v9904_v23  ;;  %v11749_v21 = vand.u32 4294901760, %v5907_v22 }
 0xfac   :  { %v5421_v9 = vand.u32 4294901760, %v5420_v35  ;;  %9525 = vmatpush3.bf16.msra.mxu0 %v9522_v36  ;;  %v9546_v39 = vpack.c.bf16 %v5420_v35, %v5413_v56  ;;  %9841 = vset.pattern.permute.xlu0 %v9904_v23 }
 0xfad   :  { %v5415_v57 = vsub.f32 %v5413_v56, %v5414_v4  ;;  %9527 = vmatprep.subr.bf16.mxu0 %v9526_v1  ;;  %v9530_v49 = vpack.c.bf16 %v5409_v33, %v5402_v8  ;;  %v11753_v30 = vsub.f32 %v5907_v22, %v11749_v21  ;;  %v6482_v22 = vld [vmem:[%s11919_s1 + $0x3c] sm:$0xff] }
 0xfae   :  { %v5422_v2 = vsub.f32 %v5420_v35, %v5421_v9  ;;  %v9570_v46 = vpack.c.bf16 %v5421_v9, %v5414_v4 }
 0xfaf   :  { %8753 = vmatmul.mubr.f32.vlgmr.msra.gmra.mrb[12].mxu0 %v5377_v59  ;;  %v5416_v29 = vand.u32 4294901760, %v5415_v57  ;;  %v5993_v56 = vand.u32 4294901760, %v11753_v30 }
 0xfb0   :  { %9529 = vmatpush3.bf16.msra.mxu0 %v9526_v1  ;;  %v5423_v50 = vand.u32 4294901760, %v5422_v2  ;;  %8767 = vmatprep.mubr.f32.mxu0 %v11648_v53 }
 0xfb1   :  { %9531 = vmatprep.subr.bf16.mxu0 %v9530_v49 }
 0xfb2   :  { %v9534_v16 = vpack.c.bf16 %v5423_v50, %v5416_v29 }
 0xfb4   :  { %9533 = vmatpush3.bf16.msra.mxu0 %v9530_v49  ;;  %v5994_v49 = vsub.f32 %v11753_v30, %v5993_v56 }
 0xfb5   :  { %9535 = vmatprep.subr.bf16.mxu0 %v9534_v16 }
 0xfb8   :  { %9537 = vmatpush3.bf16.msra.mxu0 %v9534_v16 }
 0xfb9   :  { %9539 = vmatprep.subr.bf16.mxu0 %v11663_v15 }
 0xfbb   :  { %8768 = vmatmul.mubr.f32.vlgmr.msra.gmra.mrb[12].mxu0 %v11673_v25 }
 0xfbc   :  { %9541 = vmatpush3.bf16.msra.mxu0 %v11663_v15  ;;  %8782 = vmatprep.mubr.f32.mxu0 %v11651_v40  ;;  %v5285_v40 = vpop.permute.xlu0 %5284  ;;  %v12193_v15 = vld [vmem:[#allocation4_spill] sm:$0xff] }
 0xfbd   :  { %9543 = vmatprep.subr.bf16.mxu0 %v9542_v48  ;;  %vm33_vm4 = vcmp.ge.s32.totalorder %v12193_v15, 1  ;;  %vm34_vm14 = vcmp.le.s32.totalorder %v12193_v15, 12 }
 0xfbe   :  { %vm35_vm7 = vmand %vm33_vm4, %vm34_vm14  ;;  %vm7090_vm14 = vcmask 224256  }
 0xfbf   :  { %vm12205_vm4 = vmmov %vm12195_vm1 }
 0xfc0   :  { %9545 = vmatpush3.bf16.msra.mxu0 %v9542_v48 }
 0xfc1   :  { %9547 = vmatprep.subr.bf16.mxu0 %v9546_v39 }
 0xfc4   :  { %9549 = vmatpush3.bf16.msra.mxu0 %v9546_v39 }
 0xfc5   :  { %9551 = vmatprep.subr.bf16.mxu0 %v11659_v61 }
 0xfc7   :  { %8783 = vmatmul.mubr.f32.vlgmr.msra.gmra.mrb[12].mxu0 %v11676_v44  ;;  %v5983_v44 = vand.u32 4294901760, %v11722_v27 }
 0xfc8   :  { %9553 = vmatpush3.bf16.msra.mxu0 %v11659_v61  ;;  %8797 = vmatprep.mubr.f32.mxu0 %v5365_v7  ;;  %v5280_v7 = vpop.permute.xlu1 %5279 }
 0xfc9   :  { %9555 = vmatprep.subr.bf16.mxu0 %v11679_v14 }
 0xfcc   :  { %9557 = vmatpush3.bf16.msra.mxu0 %v11679_v14 }
 0xfcd   :  { %9559 = vmatprep.subr.bf16.mxu0 %v9522_v36 }
 0xfd0   :  { %9561 = vmatpush3.bf16.msra.mxu0 %v9522_v36 }
 0xfd1   :  { %9563 = vmatprep.subr.bf16.mxu0 %v11667_v63 }
 0xfd3   :  { %8798 = vmatmul.mubr.f32.vlgmr.msra.gmra.mrb[12].mxu0 %v5375_v51  ;;  %v5984_v51 = vsub.f32 %v11722_v27, %v5983_v44 }
 0xfd4   :  { %9565 = vmatpush3.bf16.msra.mxu0 %v11667_v63  ;;  %8812 = vmatprep.mubr.f32.mxu0 %v11648_v53  ;;  %v11715_v63 = vsel %vm35_vm7, 1.0, %v12058_v52  ;;  %vm7088_vm7 = vcmask 228352  }
 0xfd5   :  { %9567 = vmatprep.subr.bf16.mxu0 %v9566_v41  ;;  %v5985_v12 = vand.u32 4294901760, %v5984_v51 }
 0xfd7   :  { %8840 = vmatprep.mubr.f32.mxu1 %v5985_v12 }
 0xfd8   :  { %9569 = vmatpush3.bf16.msra.mxu0 %v9566_v41 }
 0xfd9   :  { %9571 = vmatprep.subr.bf16.mxu0 %v9570_v46 }
 0xfdc   :  { %9573 = vmatpush3.bf16.msra.mxu0 %v9570_v46 }
 0xfdd   :  { %9575 = vmatprep.subr.bf16.mxu0 %v11659_v61 }
 0xfdf   :  { %8813 = vmatmul.mubr.f32.vlgmr.msra.gmra.mrb[12].mxu0 %v11673_v25 }
 0xfe0   :  { %9577 = vmatpush3.bf16.msra.mxu0 %v11659_v61  ;;  %8827 = vmatprep.mubr.f32.mxu0 %v11648_v53 }
 0xfe1   :  { %9579 = vmatprep.subr.bf16.mxu0 %v11679_v14 }
 0xfe4   :  { %9581 = vmatpush3.bf16.msra.mxu0 %v11679_v14 }
 0xfe5   :  { %9583 = vmatprep.subr.bf16.mxu0 %v9522_v36 }
 0xfe8   :  { %9585 = vmatpush3.bf16.msra.mxu0 %v9522_v36 }
 0xfeb   :  { %8828 = vmatmul.mubr.f32.vlgmr.msra.gmra.mrb[12].mxu0 %v11673_v25 }
0x10be   :  { %v8829_v10 = vpop.f32.mrb[12].mxu0 }
0x10bf   :  { %v9690_v43 = vadd.f32 %v8829_v10, %v5285_v40  ;;  %v5836_v32 = vpop.f32.mrb[13].mxu0 }
0x10c0   :  { %v9691_v13 = vadd.f32 %v5836_v32, %v5280_v7 }
0x10c1   :  { %v7247_v18 = vmul.f32 -1.442695, %v9690_v43 }
0x10c2   :  { %v7246_v5 = vmul.f32 -1.442695, %v9691_v13 }
0x10c3   :  { %9867 = vpow2.f32 %v7247_v18  ;;  %v5995_v18 = vand.u32 4294901760, %v5994_v49 }
0x10c4   :  { %9869 = vpow2.f32 %v7246_v5 }
0x10cd   :  { %v9868_v42 = vpop.eup %9867 }
0x10ce   :  { %v9870_v53 = vpop.eup %9869  ;;  %v5853_v60 = vadd.f32 1.0, %v9868_v42 }
0x10cf   :  { %v5852_v62 = vadd.f32 1.0, %v9870_v53 }
0x10d1   :  { %9871 = vrcp.f32 %v5852_v62 }
0x10d2   :  { %9873 = vrcp.f32 %v5853_v60 }
0x10db   :  { %v9872_v61 = vpop.eup %9871 }
0x10dc   :  { %v5858_v17 = vmul.f32 %v9872_v61, %v9691_v13  ;;  %v9874_v38 = vpop.eup %9873 }
0x10dd   :  { %v5859_v11 = vmul.f32 %v9874_v38, %v9690_v43 }
0x10de   :  { %5862 = vrot.lane.b32.xlu1 %v5858_v17, %s9897_s16 }
0x10e2   :  { %5864 = vrot.lane.b32.xlu1 %v5859_v11, %s9897_s16 }
0x1150   :  { %v5863_v26 = vpop.permute.xlu1 %5862 }
0x1151   :  { %v5868_v1 = vsel %vm12194_vm11, 0.0, %v5863_v26 }
0x1152   :  { %v5871_v0 = vsel %vm5870_vm5, %v5868_v1, 0.0 }
0x1153   :  { %v11725_v6 = vmul.f32 %v5871_v0, %v11715_v63 }
0x1154   :  { %v5865_v25 = vpop.permute.xlu1 %5864 }
0x1155   :  { %v5869_v58 = vsel %vm12195_vm1, 0.0, %v5865_v25  ;;  %v5879_v52 = vrot.slane %v11725_v6, 4  ;;  %v5912_v47 = vand.u32 4294901760, %v11725_v6 }
0x1156   :  { %v5872_v45 = vsel %vm5870_vm5, %v5869_v58, 0.0 }
0x1157   :  { %v11735_v20 = vmul.f32 %v5872_v45, %v11715_v63  ;;  %5882 = vrot.lane.b32.xlu0 %v5879_v52, %s9891_s13  ;;  %v11756_v31 = vsub.f32 %v11725_v6, %v5912_v47 }
0x1159   :  { %v5880_v3 = vrot.slane %v11735_v20, 4  ;;  %v6004_v59 = vand.u32 4294901760, %v11756_v31 }
0x115b   :  { %5888 = vrot.lane.b32.xlu0 %v11725_v6, %s9892_s14  ;;  %v5881_v14 = vsel %vm12196_vm12, %v5879_v52, %v5880_v3  ;;  %v6005_v16 = vsub.f32 %v11756_v31, %v6004_v59 }
0x115c   :  { %5884 = vrot.lane.b32.xlu1 %v5881_v14, %s9891_s13 }
0x115d   :  { %v6006_v13 = vand.u32 4294901760, %v6005_v16 }
0x115f   :  { %5896 = vperm.xlu0 %9841, %v5875_v19  }
0x1160   :  { %5890 = vrot.lane.b32.xlu1 %v11735_v20, %s9892_s14 }
0x1164   :  { %5901 = vperm.xlu1 %9842, %v5876_v55  }
0x11c9   :  { %v5883_v37 = vpop.permute.xlu0 %5882 }
0x11ca   :  { %v5893_v54 = vsel %vm12197_vm0, %v11735_v20, %v5883_v37 }
0x11cb   :  { %v5915_v34 = vand.u32 4294901760, %v5893_v54 }
0x11cd   :  { %v11761_v36 = vpack.c.bf16 %v5915_v34, %v5912_v47  ;;  %v11763_v35 = vsub.f32 %v5893_v54, %v5915_v34  ;;  %v5889_v4 = vpop.permute.xlu0 %5888 }
0x11ce   :  { %v5921_v8 = vand.u32 4294901760, %v5889_v4  ;;  %v5885_v33 = vpop.permute.xlu1 %5884 }
0x11cf   :  { %v6011_v9 = vand.u32 4294901760, %v11763_v35  ;;  %v5918_v57 = vand.u32 4294901760, %v5885_v33  ;;  %9587 = vmatprep.subr.bf16.mxu1 %v11761_v36  ;;  %v9602_v11 = vpack.c.bf16 %v11763_v35, %v11756_v31 }
0x11d0   :  { %v6024_v2 = vsub.f32 %v5889_v4, %v5921_v8  ;;  %9589 = vmatpush3.bf16.msra.mxu1 %v11761_v36 }
0x11d1   :  { %v11772_v29 = vpack.c.bf16 %v5921_v8, %v5918_v57  ;;  %v6017_v50 = vsub.f32 %v5885_v33, %v5918_v57  ;;  %v6012_v48 = vsub.f32 %v11763_v35, %v6011_v9  ;;  %v9618_v19 = vpack.c.bf16 %v6011_v9, %v6004_v59 }
0x11d2   :  { %v6025_v39 = vand.u32 4294901760, %v6024_v2  ;;  %v5891_v41 = vpop.permute.xlu1 %5890 }
0x11d3   :  { %v6018_v46 = vand.u32 4294901760, %v6017_v50  ;;  %v5909_v40 = vsel %vm12198_vm9, %v5891_v41, 0  ;;  %9591 = vmatprep.subr.bf16.mxu1 %v11772_v29  ;;  %v6013_v7 = vand.u32 4294901760, %v6012_v48  ;;  %v9606_v15 = vpack.c.bf16 %v6024_v2, %v6017_v50 }
0x11d4   :  { %v6026_v10 = vsub.f32 %v6024_v2, %v6025_v39  ;;  %v5924_v43 = vand.u32 4294901760, %v5909_v40  ;;  %9593 = vmatpush3.bf16.msra.mxu1 %v11772_v29 }
0x11d5   :  { %v6019_v32 = vsub.f32 %v6017_v50, %v6018_v46  ;;  %v9594_v53 = vpack.c.bf16 %v6013_v7, %v6006_v13  ;;  %v9622_v24 = vpack.c.bf16 %v6025_v39, %v6018_v46 }
0x11d6   :  { %v6031_v5 = vsub.f32 %v5909_v40, %v5924_v43  ;;  %8838 = vmatprep.subr.mxu1 %v5924_v43  ;;  %v6027_v42 = vand.u32 4294901760, %v6026_v10 }
0x11d7   :  { %v6020_v60 = vand.u32 4294901760, %v6019_v32 }
0x11d8   :  { %8839 = vmatpush3.msra.mxu1 %v5924_v43  ;;  %v6032_v62 = vand.u32 4294901760, %v6031_v5 }
0x11d9   :  { %9595 = vmatprep.subr.bf16.mxu1 %v9594_v53  ;;  %8841 = vmatmul.mubr.f32.vlgmr.msra.gmra.mrb[12].mxu1 %v5995_v18  ;;  %v9598_v61 = vpack.c.bf16 %v6027_v42, %v6020_v60 }
0x11da   :  { %9597 = vmatpush3.bf16.msra.mxu1 %v9594_v53  ;;  %v6033_v17 = vsub.f32 %v6031_v5, %v6032_v62  ;;  %8853 = vmatprep.mubr.f32.mxu1 %v11717_v28 }
0x11db   :  { %9599 = vmatprep.subr.bf16.mxu1 %v9598_v61 }
0x11dc   :  { %v6034_v38 = vand.u32 4294901760, %v6033_v17 }
0x11de   :  { %9601 = vmatpush3.bf16.msra.mxu1 %v9598_v61  ;;  %v5897_v1 = vpop.permute.xlu0 %5896 }
0x11df   :  { %8851 = vmatprep.subr.mxu1 %v6034_v38 }
0x11e2   :  { %8852 = vmatpush3.msra.mxu1 %v6034_v38 }
0x11e3   :  { %9603 = vmatprep.subr.bf16.mxu1 %v9602_v11  ;;  %8854 = vmatmul.mubr.f32.vlgmr.msra.gmra.mrb[12].mxu1 %v11749_v21  ;;  %v5902_v26 = vpop.permute.xlu1 %5901 }
0x11e4   :  { %9605 = vmatpush3.bf16.msra.mxu1 %v9602_v11  ;;  %8866 = vmatprep.mubr.f32.mxu1 %v11722_v27 }
0x11e5   :  { %9607 = vmatprep.subr.bf16.mxu1 %v9606_v15 }
0x11e8   :  { %9609 = vmatpush3.bf16.msra.mxu1 %v9606_v15 }
0x11e9   :  { %8864 = vmatprep.subr.mxu1 %v6031_v5 }
0x11ec   :  { %8865 = vmatpush3.msra.mxu1 %v6031_v5 }
0x11ed   :  { %9611 = vmatprep.subr.bf16.mxu1 %v11761_v36  ;;  %8867 = vmatmul.mubr.f32.vlgmr.msra.gmra.mrb[12].mxu1 %v11753_v30 }
0x11ee   :  { %9613 = vmatpush3.bf16.msra.mxu1 %v11761_v36  ;;  %8879 = vmatprep.mubr.f32.mxu1 %v5983_v44 }
0x11ef   :  { %9615 = vmatprep.subr.bf16.mxu1 %v11772_v29 }
0x11f2   :  { %9617 = vmatpush3.bf16.msra.mxu1 %v11772_v29 }
0x11f3   :  { %8877 = vmatprep.subr.mxu1 %v5924_v43 }
0x11f6   :  { %8878 = vmatpush3.msra.mxu1 %v5924_v43 }
0x11f7   :  { %9619 = vmatprep.subr.bf16.mxu1 %v9618_v19  ;;  %8880 = vmatmul.mubr.f32.vlgmr.msra.gmra.mrb[12].mxu1 %v5993_v56 }
0x11f8   :  { %9621 = vmatpush3.bf16.msra.mxu1 %v9618_v19  ;;  %8892 = vmatprep.mubr.f32.mxu1 %v11717_v28 }
0x11f9   :  { %9623 = vmatprep.subr.bf16.mxu1 %v9622_v24 }
0x11fc   :  { %9625 = vmatpush3.bf16.msra.mxu1 %v9622_v24 }
0x11fd   :  { %8890 = vmatprep.subr.mxu1 %v6032_v62 }
0x1200   :  { %8891 = vmatpush3.msra.mxu1 %v6032_v62 }
0x1201   :  { %9627 = vmatprep.subr.bf16.mxu1 %v11761_v36  ;;  %8893 = vmatmul.mubr.f32.vlgmr.msra.gmra.mrb[12].mxu1 %v11749_v21 }
0x1202   :  { %9629 = vmatpush3.bf16.msra.mxu1 %v11761_v36  ;;  %8905 = vmatprep.mubr.f32.mxu1 %v11717_v28 }
0x1203   :  { %9631 = vmatprep.subr.bf16.mxu1 %v11772_v29 }
0x1206   :  { %9633 = vmatpush3.bf16.msra.mxu1 %v11772_v29 }
0x1207   :  { %8903 = vmatprep.subr.mxu1 %v5924_v43 }
0x120a   :  { %8904 = vmatpush3.msra.mxu1 %v5924_v43 }
0x120b   :  { %8906 = vmatmul.mubr.f32.vlgmr.msra.gmra.mrb[12].mxu1 %v11749_v21  ;;  %v6511_v21 = vsel %vm5904_vm13, %v6482_v22, 0 }
0x120c   :  { %v11807_v47 = vand.u32 4294901760, %v6511_v21 }
0x120e   :  { %v11815_v35 = vsub.f32 %v6511_v21, %v11807_v47 }
0x1210   :  { %v6589_v9 = vand.u32 4294901760, %v11815_v35 }
0x1212   :  { %v6590_v2 = vsub.f32 %v11815_v35, %v6589_v9 }
0x12de   :  { %v8907_v0 = vpop.f32.mrb[12].mxu1 }
0x12df   :  { %v9692_v27 = vadd.f32 %v8907_v0, %v5902_v26  ;;  %v6442_v25 = vpop.f32.mrb[13].mxu1 }
0x12e0   :  { %v9693_v44 = vadd.f32 %v6442_v25, %v5897_v1 }
0x12e1   :  { %v7249_v58 = vmul.f32 -1.442695, %v9692_v27 }
0x12e2   :  { %v7248_v52 = vmul.f32 -1.442695, %v9693_v44 }
0x12e3   :  { %9875 = vpow2.f32 %v7249_v58 }
0x12e4   :  { %9877 = vpow2.f32 %v7248_v52 }
0x12ed   :  { %v9876_v45 = vpop.eup %9875 }
0x12ee   :  { %v9878_v28 = vpop.eup %9877  ;;  %v6459_v51 = vadd.f32 1.0, %v9876_v45 }
0x12ef   :  { %v6458_v12 = vadd.f32 1.0, %v9878_v28 }
0x12f0   :  { %9879 = vrcp.f32 %v6459_v51 }
0x12f1   :  { %9881 = vrcp.f32 %v6458_v12 }
0x12fa   :  { %v9880_v3 = vpop.eup %9879 }
0x12fb   :  { %v9882_v14 = vpop.eup %9881  ;;  %v6465_v55 = vmul.f32 %v9880_v3, %v9692_v27 }
0x12fc   :  { %v6464_v23 = vmul.f32 %v9882_v14, %v9693_v44 }
0x12fd   :  { %6470 = vrot.lane.b32.xlu0 %v6465_v55, %s9897_s16 }
0x12fe   :  { %6468 = vrot.lane.b32.xlu1 %v6464_v23, %s9897_s16 }
0x136f   :  { %v6471_v30 = vpop.permute.xlu0 %6470 }
0x1370   :  { %v6475_v31 = vsel %vm12199_vm6, 0.0, %v6471_v30  ;;  %v6469_v37 = vpop.permute.xlu1 %6468 }
0x1371   :  { %v6477_v54 = vsel %vm5870_vm5, %v6475_v31, 0.0  ;;  %v6474_v34 = vsel %vm12200_vm15, 0.0, %v6469_v37 }
0x1372   :  { %v6479_v56 = vmul.f32 %v6477_v54, %v11715_v63  ;;  %v6476_v36 = vsel %vm5870_vm5, %v6474_v34, 0.0 }
0x1373   :  { %v6478_v4 = vmul.f32 %v6476_v36, %v11715_v63 }
0x1374   :  { %v11819_v59 = vadd.f32 %v6479_v56, %v11735_v20  ;;  %v6591_v20 = vand.u32 4294901760, %v6590_v2 }
0x1375   :  { %v11822_v8 = vadd.f32 %v6478_v4, %v11725_v6  ;;  %v6483_v6 = vld [vmem:[%s11919_s1 + $0x44] sm:$0xf] }
0x1376   :  { %v6487_v33 = vrot.slane %v11819_v59, 4  ;;  %8918 = vmatprep.mubr.f32.mxu0 %v6591_v20  ;;  %v6513_v29 = vsel %vm5904_vm13, %v6483_v6, 0 }
0x1377   :  { %v6486_v57 = vrot.slane %v11822_v8, 4  ;;  %v11841_v50 = vand.u32 4294901760, %v6513_v29  ;;  %v6518_v16 = vand.u32 4294901760, %v11822_v8 }
0x1379   :  { %6489 = vrot.lane.b32.xlu1 %v6486_v57, %s9891_s13  ;;  %v6488_v49 = vsel %vm12201_vm3, %v6486_v57, %v6487_v33  ;;  %v11845_v48 = vsub.f32 %v6513_v29, %v11841_v50  ;;  %v11848_v39 = vsub.f32 %v11822_v8, %v6518_v16 }
0x137a   :  { %6491 = vrot.lane.b32.xlu0 %v6488_v49, %s9891_s13 }
0x137b   :  { %v6599_v43 = vand.u32 4294901760, %v11845_v48  ;;  %v6610_v42 = vand.u32 4294901760, %v11848_v39 }
0x137d   :  { %6495 = vrot.lane.b32.xlu1 %v11822_v8, %s9892_s14  ;;  %v6611_v19 = vsub.f32 %v11848_v39, %v6610_v42  ;;  %v6600_v26 = vsub.f32 %v11845_v48, %v6599_v43 }
0x137e   :  { %6497 = vrot.lane.b32.xlu0 %v11819_v59, %s9892_s14 }
0x137f   :  { %v6612_v58 = vand.u32 4294901760, %v6611_v19  ;;  %v6601_v52 = vand.u32 4294901760, %v6600_v26 }
0x1381   :  { %6503 = vperm.xlu1 %9842, %v6482_v22  }
0x1382   :  { %6508 = vperm.xlu0 %9841, %v6483_v6  }
0x13eb   :  { %v6490_v41 = vpop.permute.xlu1 %6489 }
0x13ec   :  { %v6500_v46 = vsel %vm12202_vm8, %v11819_v59, %v6490_v41  ;;  %v6492_v40 = vpop.permute.xlu0 %6491 }
0x13ed   :  { %v6521_v7 = vand.u32 4294901760, %v6500_v46  ;;  %v6524_v10 = vand.u32 4294901760, %v6492_v40 }
0x13ef   :  { %v11853_v32 = vpack.c.bf16 %v6521_v7, %v6518_v16  ;;  %v6616_v13 = vsub.f32 %v6500_v46, %v6521_v7  ;;  %v11855_v18 = vsub.f32 %v6492_v40, %v6524_v10  ;;  %v6496_v5 = vpop.permute.xlu1 %6495 }
0x13f0   :  { %v6527_v53 = vand.u32 4294901760, %v6496_v5  ;;  %v6498_v60 = vpop.permute.xlu0 %6497 }
0x13f1   :  { %v6617_v62 = vand.u32 4294901760, %v6616_v13  ;;  %v6624_v61 = vand.u32 4294901760, %v11855_v18  ;;  %v6515_v17 = vsel %vm12203_vm10, %v6498_v60, 0  ;;  %9635 = vmatprep.subr.bf16.mxu0 %v11853_v32  ;;  %v9650_v23 = vpack.c.bf16 %v6616_v13, %v11848_v39 }
0x13f2   :  { %v11861_v38 = vpack.c.bf16 %v6527_v53, %v6524_v10  ;;  %v6630_v11 = vsub.f32 %v6496_v5, %v6527_v53  ;;  %v11863_v15 = vand.u32 4294901760, %v6515_v17  ;;  %9637 = vmatpush3.bf16.msra.mxu0 %v11853_v32 }
0x13f3   :  { %v6618_v24 = vsub.f32 %v6616_v13, %v6617_v62  ;;  %v6625_v1 = vsub.f32 %v11855_v18, %v6624_v61  ;;  %v9666_v21 = vpack.c.bf16 %v6617_v62, %v6610_v42 }
0x13f4   :  { %v6631_v0 = vand.u32 4294901760, %v6630_v11  ;;  %v6637_v27 = vsub.f32 %v6515_v17, %v11863_v15  ;;  %9639 = vmatprep.subr.bf16.mxu0 %v11861_v38  ;;  %v9654_v22 = vpack.c.bf16 %v6630_v11, %v11855_v18 }
0x13f5   :  { %v6619_v25 = vand.u32 4294901760, %v6618_v24  ;;  %v6626_v28 = vand.u32 4294901760, %v6625_v1 }
0x13f6   :  { %v6632_v44 = vsub.f32 %v6630_v11, %v6631_v0  ;;  %9641 = vmatpush3.bf16.msra.mxu0 %v11861_v38  ;;  %v6638_v45 = vand.u32 4294901760, %v6637_v27  ;;  %v9670_v30 = vpack.c.bf16 %v6631_v0, %v6624_v61 }
0x13f7   :  { %8916 = vmatprep.subr.mxu0 %v11863_v15  ;;  %v9642_v12 = vpack.c.bf16 %v6619_v25, %v6612_v58 }
0x13f8   :  { %v6633_v51 = vand.u32 4294901760, %v6632_v44  ;;  %v6639_v14 = vsub.f32 %v6637_v27, %v6638_v45 }
0x13fa   :  { %8917 = vmatpush3.msra.mxu0 %v11863_v15  ;;  %v9646_v3 = vpack.c.bf16 %v6633_v51, %v6626_v28  ;;  %v6640_v55 = vand.u32 4294901760, %v6639_v14 }
0x13fb   :  { %9643 = vmatprep.subr.bf16.mxu0 %v9642_v12  ;;  %8919 = vmatmul.mubr.f32.vlgmr.msra.gmra.mrb[14].mxu0 %v6601_v52 }
0x13fc   :  { %9645 = vmatpush3.bf16.msra.mxu0 %v9642_v12  ;;  %8931 = vmatprep.mubr.f32.mxu0 %v11807_v47 }
0x13fd   :  { %9647 = vmatprep.subr.bf16.mxu0 %v9646_v3 }
0x1400   :  { %9649 = vmatpush3.bf16.msra.mxu0 %v9646_v3  ;;  %v6504_v54 = vpop.permute.xlu1 %6503 }
0x1401   :  { %8929 = vmatprep.subr.mxu0 %v6640_v55  ;;  %v6509_v31 = vpop.permute.xlu0 %6508 }
0x1404   :  { %8930 = vmatpush3.msra.mxu0 %v6640_v55 }
0x1405   :  { %9651 = vmatprep.subr.bf16.mxu0 %v9650_v23  ;;  %8932 = vmatmul.mubr.f32.vlgmr.msra.gmra.mrb[14].mxu0 %v11841_v50 }
0x1406   :  { %9653 = vmatpush3.bf16.msra.mxu0 %v9650_v23  ;;  %8944 = vmatprep.mubr.f32.mxu0 %v11815_v35 }
0x1407   :  { %9655 = vmatprep.subr.bf16.mxu0 %v9654_v22 }
0x140a   :  { %9657 = vmatpush3.bf16.msra.mxu0 %v9654_v22 }
0x140b   :  { %8942 = vmatprep.subr.mxu0 %v6637_v27 }
0x140e   :  { %8943 = vmatpush3.msra.mxu0 %v6637_v27 }
0x140f   :  { %9659 = vmatprep.subr.bf16.mxu0 %v11853_v32  ;;  %8945 = vmatmul.mubr.f32.vlgmr.msra.gmra.mrb[14].mxu0 %v11845_v48 }
0x1410   :  { %9661 = vmatpush3.bf16.msra.mxu0 %v11853_v32  ;;  %8957 = vmatprep.mubr.f32.mxu0 %v6589_v9 }
0x1411   :  { %9663 = vmatprep.subr.bf16.mxu0 %v11861_v38 }
0x1414   :  { %9665 = vmatpush3.bf16.msra.mxu0 %v11861_v38 }
0x1415   :  { %8955 = vmatprep.subr.mxu0 %v11863_v15 }
0x1418   :  { %8956 = vmatpush3.msra.mxu0 %v11863_v15 }
0x1419   :  { %9667 = vmatprep.subr.bf16.mxu0 %v9666_v21  ;;  %8958 = vmatmul.mubr.f32.vlgmr.msra.gmra.mrb[14].mxu0 %v6599_v43 }
0x141a   :  { %9669 = vmatpush3.bf16.msra.mxu0 %v9666_v21  ;;  %8970 = vmatprep.mubr.f32.mxu0 %v11807_v47 }
0x141b   :  { %9671 = vmatprep.subr.bf16.mxu0 %v9670_v30 }
0x141e   :  { %9673 = vmatpush3.bf16.msra.mxu0 %v9670_v30 }
0x141f   :  { %8968 = vmatprep.subr.mxu0 %v6638_v45 }
0x1422   :  { %8969 = vmatpush3.msra.mxu0 %v6638_v45 }
0x1423   :  { %9675 = vmatprep.subr.bf16.mxu0 %v11853_v32  ;;  %8971 = vmatmul.mubr.f32.vlgmr.msra.gmra.mrb[14].mxu0 %v11841_v50 }
0x1424   :  { %9677 = vmatpush3.bf16.msra.mxu0 %v11853_v32  ;;  %8983 = vmatprep.mubr.f32.mxu0 %v11807_v47 }
0x1425   :  { %9679 = vmatprep.subr.bf16.mxu0 %v11861_v38 }
0x1428   :  { %9681 = vmatpush3.bf16.msra.mxu0 %v11861_v38 }
0x1429   :  { %8981 = vmatprep.subr.mxu0 %v11863_v15 }
0x142c   :  { %8982 = vmatpush3.msra.mxu0 %v11863_v15 }
0x142d   :  { %8984 = vmatmul.mubr.f32.vlgmr.msra.gmra.mrb[14].mxu0 %v11841_v50 }
0x1500   :  { %v8985_v37 = vpop.f32.mrb[14].mxu0 }
0x1501   :  { %v9694_v34 = vadd.f32 %v8985_v37, %v6509_v31  ;;  %v7048_v56 = vpop.f32.mrb[15].mxu0 }
0x1502   :  { %v9695_v36 = vadd.f32 %v7048_v56, %v6504_v54 }
0x1503   :  { %v7251_v35 = vmul.f32 -1.442695, %v9694_v34 }
0x1504   :  { %v7250_v4 = vmul.f32 -1.442695, %v9695_v36 }
0x1505   :  { %9883 = vpow2.f32 %v7251_v35 }
0x1506   :  { %9885 = vpow2.f32 %v7250_v4 }
0x150f   :  { %v9884_v47 = vpop.eup %9883 }
0x1510   :  { %v9886_v33 = vpop.eup %9885  ;;  %v7065_v9 = vadd.f32 1.0, %v9884_v47 }
0x1511   :  { %v7064_v57 = vadd.f32 1.0, %v9886_v33 }
0x1512   :  { %9887 = vrcp.f32 %v7065_v9 }
0x1513   :  { %9889 = vrcp.f32 %v7064_v57 }
0x151c   :  { %v9888_v2 = vpop.eup %9887 }
0x151d   :  { %v9890_v49 = vpop.eup %9889  ;;  %v7071_v20 = vmul.f32 %v9888_v2, %v9694_v34 }
0x151e   :  { %v7070_v6 = vmul.f32 %v9890_v49, %v9695_v36 }
0x151f   :  { %7076 = vrot.lane.b32.xlu0 %v7071_v20, %s9897_s16 }
0x1520   :  { %7074 = vrot.lane.b32.xlu1 %v7070_v6, %s9897_s16 }
0x1591   :  { %v7077_v29 = vpop.permute.xlu0 %7076 }
0x1592   :  { %v7081_v50 = vsel %vm12204_vm2, 0.0, %v7077_v29  ;;  %v7075_v16 = vpop.permute.xlu1 %7074 }
0x1593   :  { %v7083_v48 = vsel %vm5870_vm5, %v7081_v50, 0.0  ;;  %v7080_v39 = vsel %vm12205_vm4, 0.0, %v7075_v16 }
0x1594   :  { %v7085_v41 = vmul.f32 %v7083_v48, %v11715_v63  ;;  %v7082_v46 = vsel %vm5870_vm5, %v7080_v39, 0.0 }
0x1595   :  { %v7084_v40 = vmul.f32 %v7082_v46, %v11715_v63 }
0x1596   :  { %v7087_v7 = vadd.f32 %v7085_v41, %v11819_v59 }
0x1597   :  { %v7086_v10 = vadd.f32 %v7084_v40, %v11822_v8 }
0x1598   :  { %7091 = vst.msk [vmem:[%s11920_s2 + $0x8] sm:$0xf] %vm7090_vm14, %v7087_v7 }
0x1599   :  { %7089 = vst.msk [vmem:[%s11920_s2] sm:$0xff] %vm7088_vm7, %v7086_v10 }

</bundles_post_ra>
